<compile_context>
chip_gen: v7x
topology: tpu7x:2x2x1
jax: 0.10.0
libtpu: 0.0.40
codegen_flags: <defaults>
</compile_context>

<pallas_src>
import jax
import jax.numpy as jnp
from jax import lax
from jax.experimental import pallas as pl
from jax.experimental.pallas import tpu as pltpu


# ----------------------------------------------------------------------------
# helpers
# ----------------------------------------------------------------------------
def _round_up(x, m):
    return (x + m - 1) // m * m


def _vmem_limit_bytes():
    """Per-chip scoped-VMEM limit.  Only raise above the conservative default
    when we positively identify a 128 MiB-VMEM chip (v5e / v6e)."""
    try:
        kind = jax.devices()[0].device_kind.lower()
    except Exception:
        kind = ""
    if ("v5e" in kind or "v5 lite" in kind or "v5lite" in kind
            or "v6" in kind or "trillium" in kind):
        return 96 * 1024 * 1024          # 128 MiB physical VMEM
    return 48 * 1024 * 1024              # safe on v7x (64 MiB per TensorCore)


def _pick_tile_h(hout, wt, wph, num_phases, rows_extra, cin, k_dim, coutp, budget):
    """Largest tile_h whose honest (lane-padded, temp-inclusive) footprint fits."""
    cin_p = _round_up(cin, 128)          # minor dim lane padding in VMEM
    k_p = _round_up(k_dim, 128)
    wph_p = _round_up(wph, 16)           # bf16 sublane tiling
    w_bytes = 2 * _round_up(k_dim, 16) * coutp * 2   # resident bf16 weights (x2 slack)
    best = 1
    for th in range(1, hout + 1):
        m = th * wt
        est = (2 * num_phases * (th + rows_extra) * wph_p * cin_p * 2   # dbl-buffered input
               + 2 * m * coutp * 2                                      # dbl-buffered bf16 out
               + 2 * m * k_p * 2                                        # folded bf16 operand
               + 2 * m * coutp * 4                                      # f32 acc + epilogue temps
               + w_bytes)
        if est <= budget:
            best = th
    return best


# ----------------------------------------------------------------------------
# Pallas kernels: one row-tile of   leaky_relu(conv(x) + b, 0.1)
# ----------------------------------------------------------------------------
def _make_kernel(taps, tile_h, wt, cin, fold):
    m = tile_h * wt

    if fold:
        # Single MXU contraction with K = len(taps) * cin (lane-aligned concat).
        def kernel(x_ref, w_ref, b_ref, o_ref):
            pieces = []
            for (p, r0, c0) in taps:
                win = x_ref[0, p, r0:r0 + tile_h, c0:c0 + wt, :]
                pieces.append(win.reshape(m, cin))
            op = pieces[0] if len(pieces) == 1 else jnp.concatenate(pieces, axis=-1)
            acc = jnp.dot(op, w_ref[...], preferred_element_type=jnp.float32)
            acc = acc + b_ref[...]
            o_ref[0] = jnp.maximum(acc, 0.1 * acc).astype(jnp.bfloat16)

        return kernel

    # Fallback: 9 accumulating dots into a VMEM scratch (v7x MRB friendly).
    def kernel(x_ref, w_ref, b_ref, o_ref, acc_ref):
        for k, (p, r0, c0) in enumerate(taps):
            win = x_ref[0, p, r0:r0 + tile_h, c0:c0 + wt, :].reshape(m, cin)
            d = jnp.dot(win, w_ref[k], preferred_element_type=jnp.float32)
            if k == 0:
                acc_ref[...] = d
            else:
                acc_ref[...] += d
        acc = acc_ref[...] + b_ref[...]
        o_ref[0] = jnp.maximum(acc, 0.1 * acc).astype(jnp.bfloat16)

    return kernel


# ----------------------------------------------------------------------------
# One layer (wrapper): layout glue + pallas_call
# ----------------------------------------------------------------------------
def _tile_conv(x, w, b, stride, ksize):
    """x: (N, Hin, Win, Cin) bf16 NHWC.
       ksize==3: w is torch OIHW (Cout, Cin, 3, 3); ksize==1: w is (Cin, Cout).
       Returns (N, Hout, Wout, Cout) bf16 NHWC."""
    N, Hin, Win, Cin = x.shape
    if ksize == 1:
        Cout = w.shape[1]
        Hout, Wout = Hin, Win
    else:
        Cout = w.shape[0]
        Hout = (Hin - 1) // stride + 1
        Wout = (Win - 1) // stride + 1

    wt = _round_up(Wout, 8)
    coutp = _round_up(Cout, 128)

    if ksize == 1:
        num_phases, rows_extra, wph = 1, 0, wt
        taps = [(0, 0, 0)]
    elif stride == 1:
        num_phases, rows_extra, wph = 1, 2, wt + 2
        taps = [(0, dy, dx) for dy in range(3) for dx in range(3)]
    else:
        num_phases, rows_extra, wph = 4, 1, wt + 1
        taps = [((dy % 2) * 2 + (dx % 2), dy // 2, dx // 2)
                for dy in range(3) for dx in range(3)]

    fold = (ksize == 1) or (Cin % 128 == 0)
    k_total = len(taps) * Cin

    vmem_limit = _vmem_limit_bytes()
    tile_h = _pick_tile_h(Hout, wt, wph, num_phases, rows_extra, Cin,
                          k_total, coutp, budget=vmem_limit // 2)
    T = -(-Hout // tile_h)                 # cdiv: non-divisor tile_h allowed
    Hp = T * tile_h
    rows_in = tile_h + rows_extra
    M = tile_h * wt

    # ---- wrapper layout pass (bf16): zero-pad, phase-split (stride 2), halo rows.
    if ksize == 1:
        xp = jnp.pad(x, ((0, 0), (0, Hp - Hout), (0, wt - Wout), (0, 0)))
        tiles = xp.reshape(N, T, 1, tile_h, wph, Cin)
    elif stride == 1:
        xp = jnp.pad(x, ((0, 0), (1, Hp + 1 - Hin), (1, wph - 1 - Win), (0, 0)))
        tiles = jnp.stack(
            [xp[:, t * tile_h:t * tile_h + rows_in] for t in range(T)],
            axis=1)[:, :, None]            # (N, T, 1, rows_in, wph, Cin)
    else:
        hp, wp = 2 * Hp + 2, 2 * wt + 2
        xp = jnp.pad(x, ((0, 0), (1, hp - 1 - Hin), (1, wp - 1 - Win), (0, 0)))
        phases = jnp.stack(
            [xp[:, py::2, px::2, :] for py in (0, 1) for px in (0, 1)],
            axis=1)                        # (N, 4, Hp+1, wt+1, Cin)
        tiles = jnp.stack(
            [phases[:, :, t * tile_h:t * tile_h + rows_in] for t in range(T)],
            axis=1)                        # (N, T, 4, rows_in, wph, Cin)
    tiles = tiles.reshape(N * T, num_phases, rows_in, wph, Cin).astype(jnp.bfloat16)

    # ---- weights / bias (bf16 weights, f32 bias), Cout zero-padded to 128.
    if ksize == 1:
        w_mat = w                                             # (Cin, Cout)
    elif fold:
        w_mat = jnp.transpose(w, (2, 3, 1, 0)).reshape(9 * Cin, Cout)
    else:
        w_mat = jnp.transpose(w, (2, 3, 1, 0)).reshape(9, Cin, Cout)
    pad_n = coutp - Cout
    if w_mat.ndim == 2:
        w_mat = jnp.pad(w_mat, ((0, 0), (0, pad_n)))
        w_spec = pl.BlockSpec(w_mat.shape, lambda g: (0, 0))
    else:
        w_mat = jnp.pad(w_mat, ((0, 0), (0, 0), (0, pad_n)))
        w_spec = pl.BlockSpec(w_mat.shape, lambda g: (0, 0, 0))
    w_mat = w_mat.astype(jnp.bfloat16)
    b_vec = jnp.pad(b, (0, pad_n)).reshape(1, coutp).astype(jnp.float32)

    kernel = _make_kernel(taps, tile_h, wt, Cin, fold)
    scratch = [] if fold else [pltpu.VMEM((M, coutp), jnp.float32)]

    flops = 2 * (N * T) * M * k_total * coutp
    bytes_accessed = (tiles.size * 2 + w_mat.size * 2 + b_vec.size * 4
                      + (N * T) * M * coutp * 2)

    out = pl.pallas_call(
        kernel,
        out_shape=jax.ShapeDtypeStruct((N * T, M, coutp), jnp.bfloat16),
        grid_spec=pltpu.PrefetchScalarGridSpec(
            num_scalar_prefetch=0,
            grid=(N * T,),
            in_specs=[
                pl.BlockSpec((1, num_phases, rows_in, wph, Cin),
                             lambda g: (g, 0, 0, 0, 0)),
                w_spec,                                        # resident weights
                pl.BlockSpec((1, coutp), lambda g: (0, 0)),    # resident bias
            ],
            out_specs=pl.BlockSpec((1, M, coutp), lambda g: (g, 0, 0)),
            scratch_shapes=scratch,
        ),
        compiler_params=pltpu.CompilerParams(
            dimension_semantics=("parallel",),
            vmem_limit_bytes=vmem_limit,
        ),
        cost_estimate=pl.CostEstimate(
            flops=flops, transcendentals=0, bytes_accessed=bytes_accessed),
    )(tiles, w_mat, b_vec)

    # Strip row / width / channel padding (bf16, fuses with next layer's pad).
    out = out.reshape(N, Hp, wt, coutp)[:, :Hout, :Wout, :Cout]
    return out


def _conv_layer(x, w, b, stride):
    """One encoder layer.  x: (N, H, W, Cin) bf16.  w: (Cout, Cin, 3, 3), b: (Cout,)."""
    N, Hin, Win, Cin = x.shape
    Cout = w.shape[0]

    if Cin <= 16:
        # Tiny-Cin stem: wrapper-side im2col to K = 9*Cin, then a single-dot layer.
        Hout = (Hin - 1) // stride + 1
        Wout = (Win - 1) // stride + 1
        xp = jnp.pad(x, ((0, 0), (1, 1), (1, 1), (0, 0)))
        cols = [xp[:, dy:dy + (Hout - 1) * stride + 1:stride,
                      dx:dx + (Wout - 1) * stride + 1:stride, :]
                for dy in range(3) for dx in range(3)]
        xi = jnp.concatenate(cols, axis=-1)                   # (N, Hout, Wout, 9*Cin)
        w_mat = jnp.transpose(w, (2, 3, 1, 0)).reshape(9 * Cin, Cout)
        return _tile_conv(xi, w_mat, b, stride=1, ksize=1)

    return _tile_conv(x, w, b, stride, ksize=3)


# ----------------------------------------------------------------------------
# BasicConvEncoder
# ----------------------------------------------------------------------------
def init_params(in_channels, config, key=jax.random.PRNGKey(0)):
    """Deterministic synthetic parameters (torch Conv2d layout: OIHW + bias)."""
    channels = [in_channels] + list(config)
    params = []
    for i in range(len(channels) - 1):
        k = jax.random.fold_in(key, i)
        kw_, kb_ = jax.random.split(k)
        w = 0.1 * jax.random.normal(
            kw_, (channels[i + 1], channels[i], 3, 3), jnp.float32)
        b = 0.05 * jax.random.normal(kb_, (channels[i + 1],), jnp.float32)
        params.append((w, b))
    return params


def basic_conv_encoder(x_nchw, params):
    """Forward pass.  x_nchw: (N, C, H, W).  Returns list of NCHW f32 tensors."""
    x = jnp.transpose(x_nchw, (0, 2, 3, 1)).astype(jnp.bfloat16)   # NCHW -> NHWC bf16
    outputs = []
    for i, (w, b) in enumerate(params):
        stride = 1 if i % 2 == 0 else 2
        x = _conv_layer(x, w, b, stride)
        if outputs and outputs[-1].shape[1:] == x.shape[1:]:
            outputs[-1] = x            # same-shape layer replaces previous output
        else:
            outputs.append(x)
    return [jnp.transpose(o.astype(jnp.float32), (0, 3, 1, 2)) for o in outputs]


# ----------------------------------------------------------------------------
# Pure-JAX reference (lax conv, f32) for a correctness check
# ----------------------------------------------------------------------------
def _reference_encoder(x_nchw, params):
    x = x_nchw
    outputs = []
    for i, (w, b) in enumerate(params):
        stride = 1 if i % 2 == 0 else 2
        y = lax.conv_general_dilated(
            x, w, window_strides=(stride, stride), padding=((1, 1), (1, 1)),
            dimension_numbers=("NCHW", "OIHW", "NCHW"),
            precision=lax.Precision.HIGHEST)
        y = y + b.reshape(1, -1, 1, 1)
        x = jnp.where(y > 0, y, 0.1 * y)
        if outputs and outputs[-1].shape[1:] == x.shape[1:]:
            outputs[-1] = x
        else:
            outputs.append(x)
    return outputs


if __name__ == "__main__":
    key = jax.random.PRNGKey(0)
    # Small shapes consistent with the module: NCHW input, in_channels=3.
    # config exercises: im2col stem (Cin=3), multi-dot fallback (Cin=64, stride 2),
    # K-folded path (Cin=128, strides 1 and 2) and the "same-shape replaces
    # previous output" branch (layers 1 and 2 both produce 8x8x128).
    N, Cin, H, W = 2, 3, 16, 16
    config = [64, 128, 128, 128]
    x = jax.random.normal(key, (N, Cin, H, W), jnp.float32)
    params = init_params(Cin, config)

    fwd = jax.jit(basic_conv_encoder)
    outs = jax.block_until_ready(fwd(x, params))

    refs = _reference_encoder(x, params)
    assert len(outs) == len(refs), (len(outs), len(refs))
    for o, r in zip(outs, refs):
        assert o.shape == r.shape, (o.shape, r.shape)
        err = float(jnp.max(jnp.abs(o - r)))
        scale = float(jnp.max(jnp.abs(r))) + 1e-6
        assert err / scale < 5e-2, (err, scale)   # bf16 activations/weights, f32 accum

    print("KERNEL_OK")
</pallas_src>

<mosaic_0001>
module attributes {stable_mosaic.version = 11 : i64} {
  func.func @kernel(%arg0: i32, %arg1: memref<1x1x16x16x27xbf16, #tpu.memory_space<vmem>>, %arg2: memref<27x128xbf16, #tpu.memory_space<vmem>>, %arg3: memref<1x128xf32, #tpu.memory_space<vmem>>, %arg4: memref<1x256x128xbf16, #tpu.memory_space<vmem>>) attributes {dimension_semantics = [#tpu.dimension_semantics<parallel>], iteration_bounds = array<i64: 2>, scalar_prefetch = 0 : i64, scratch_operands = 0 : i64, tpu.core_type = #tpu.core_type<tc>, window_params = [{transform_indices = @transform_0, window_bounds = array<i64: 1, 1, 16, 16, 27>}, {pipeline_mode = #tpu.pipeline_mode<synchronous>, transform_indices = @transform_1, window_bounds = array<i64: 27, 128>}, {pipeline_mode = #tpu.pipeline_mode<synchronous>, transform_indices = @transform_2, window_bounds = array<i64: 1, 128>}, {transform_indices = @transform_3, window_bounds = array<i64: 1, 256, 128>}]} {
    %c0 = arith.constant 0 : index
    %c0_0 = arith.constant 0 : index
    %c0_1 = arith.constant 0 : index
    %c0_2 = arith.constant 0 : index
    %c0_3 = arith.constant 0 : index
    %0 = vector.load %arg1[%c0, %c0_0, %c0_1, %c0_2, %c0_3] : memref<1x1x16x16x27xbf16, #tpu.memory_space<vmem>>, vector<1x1x16x16x27xbf16>
    %1 = vector.shape_cast %0 : vector<1x1x16x16x27xbf16> to vector<16x16x27xbf16>
    %2 = vector.shape_cast %1 : vector<16x16x27xbf16> to vector<256x27xbf16>
    %c0_4 = arith.constant 0 : index
    %c0_5 = arith.constant 0 : index
    %3 = vector.load %arg2[%c0_4, %c0_5] : memref<27x128xbf16, #tpu.memory_space<vmem>>, vector<27x128xbf16>
    %cst = arith.constant dense<0.000000e+00> : vector<256x128xf32>
    %4 = tpu.matmul %2, %3, %cst {dimension_numbers = #tpu.dot_dimension_numbers<[1], [0], [0], [1], [0, 0, 1, 1], [], []>} : vector<256x27xbf16>, vector<27x128xbf16>, vector<256x128xf32> -> vector<256x128xf32>
    %c0_6 = arith.constant 0 : index
    %c0_7 = arith.constant 0 : index
    %5 = vector.load %arg3[%c0_6, %c0_7] : memref<1x128xf32, #tpu.memory_space<vmem>>, vector<1x128xf32>
    %6 = vector.broadcast %5 : vector<1x128xf32> to vector<256x128xf32>
    %7 = arith.addf %4, %6 : vector<256x128xf32>
    %cst_8 = arith.constant 1.000000e-01 : f32
    %8 = vector.broadcast %cst_8 : f32 to vector<256x128xf32>
    %9 = arith.mulf %8, %7 : vector<256x128xf32>
    %10 = arith.maximumf %7, %9 : vector<256x128xf32>
    %11 = arith.truncf %10 : vector<256x128xf32> to vector<256x128xbf16>
    %c0_9 = arith.constant 0 : index
    %c0_10 = arith.constant 0 : index
    %c0_11 = arith.constant 0 : index
    %12 = vector.load %arg4[%c0_9, %c0_10, %c0_11] : memref<1x256x128xbf16, #tpu.memory_space<vmem>>, vector<1x256x128xbf16>
    %13 = vector.shape_cast %12 : vector<1x256x128xbf16> to vector<256x128xbf16>
    %14 = vector.shape_cast %11 : vector<256x128xbf16> to vector<1x256x128xbf16>
    tpu.vector_store %arg4[%c0_9, %c0_10, %c0_11], %14 {strides = array<i32>} : memref<1x256x128xbf16, #tpu.memory_space<vmem>>, vector<1x256x128xbf16>,
    return
  }
  func.func @transform_0(%arg0: i32) -> (i32, i32, i32, i32, i32) {
    %c0_i32 = arith.constant 0 : i32
    %c0_i32_0 = arith.constant 0 : i32
    %c0_i32_1 = arith.constant 0 : i32
    %c0_i32_2 = arith.constant 0 : i32
    %c0_i32_3 = arith.constant 0 : i32
    return %arg0, %c0_i32, %c0_i32_0, %c0_i32_1, %c0_i32_2 : i32, i32, i32, i32, i32
  }
  func.func @transform_1(%arg0: i32) -> (i32, i32) {
    %c0_i32 = arith.constant 0 : i32
    %c0_i32_0 = arith.constant 0 : i32
    %c0_i32_1 = arith.constant 0 : i32
    return %c0_i32, %c0_i32_0 : i32, i32
  }
  func.func @transform_2(%arg0: i32) -> (i32, i32) {
    %c0_i32 = arith.constant 0 : i32
    %c0_i32_0 = arith.constant 0 : i32
    %c0_i32_1 = arith.constant 0 : i32
    return %c0_i32, %c0_i32_0 : i32, i32
  }
  func.func @transform_3(%arg0: i32) -> (i32, i32, i32) {
    %c0_i32 = arith.constant 0 : i32
    %c0_i32_0 = arith.constant 0 : i32
    %c0_i32_1 = arith.constant 0 : i32
    return %arg0, %c0_i32, %c0_i32_0 : i32, i32, i32
  }
}

module attributes {stable_mosaic.version = 11 : i64} {
  func.func @kernel(%arg0: i32, %arg1: memref<1x4x9x9x64xbf16, #tpu.memory_space<vmem>>, %arg2: memref<9x64x128xbf16, #tpu.memory_space<vmem>>, %arg3: memref<1x128xf32, #tpu.memory_space<vmem>>, %arg4: memref<1x64x128xbf16, #tpu.memory_space<vmem>>, %arg5: memref<64x128xf32, #tpu.memory_space<vmem>>) attributes {dimension_semantics = [#tpu.dimension_semantics<parallel>], iteration_bounds = array<i64: 2>, scalar_prefetch = 0 : i64, scratch_operands = 1 : i64, tpu.core_type = #tpu.core_type<tc>, window_params = [{transform_indices = @transform_0, window_bounds = array<i64: 1, 4, 9, 9, 64>}, {pipeline_mode = #tpu.pipeline_mode<synchronous>, transform_indices = @transform_1, window_bounds = array<i64: 9, 64, 128>}, {pipeline_mode = #tpu.pipeline_mode<synchronous>, transform_indices = @transform_2, window_bounds = array<i64: 1, 128>}, {transform_indices = @transform_3, window_bounds = array<i64: 1, 64, 128>}]} {
    %c0 = arith.constant 0 : index
    %c0_0 = arith.constant 0 : index
    %c0_1 = arith.constant 0 : index
    %c0_2 = arith.constant 0 : index
    %c0_3 = arith.constant 0 : index
    %0 = vector.load %arg1[%c0, %c0_0, %c0_1, %c0_2, %c0_3] : memref<1x4x9x9x64xbf16, #tpu.memory_space<vmem>>, vector<1x1x8x8x64xbf16>
    %1 = vector.shape_cast %0 : vector<1x1x8x8x64xbf16> to vector<8x8x64xbf16>
    %2 = vector.shape_cast %1 : vector<8x8x64xbf16> to vector<64x64xbf16>
    %c0_4 = arith.constant 0 : index
    %c0_5 = arith.constant 0 : index
    %c0_6 = arith.constant 0 : index
    %3 = vector.load %arg2[%c0_4, %c0_5, %c0_6] : memref<9x64x128xbf16, #tpu.memory_space<vmem>>, vector<1x64x128xbf16>
    %4 = vector.shape_cast %3 : vector<1x64x128xbf16> to vector<64x128xbf16>
    %cst = arith.constant dense<0.000000e+00> : vector<64x128xf32>
    %5 = tpu.matmul %2, %4, %cst {dimension_numbers = #tpu.dot_dimension_numbers<[1], [0], [0], [1], [0, 0, 1, 1], [], []>} : vector<64x64xbf16>, vector<64x128xbf16>, vector<64x128xf32> -> vector<64x128xf32>
    %c0_7 = arith.constant 0 : index
    %c0_8 = arith.constant 0 : index
    %6 = vector.load %arg5[%c0_7, %c0_8] : memref<64x128xf32, #tpu.memory_space<vmem>>, vector<64x128xf32>
    tpu.vector_store %arg5[%c0_7, %c0_8], %5 {strides = array<i32>} : memref<64x128xf32, #tpu.memory_space<vmem>>, vector<64x128xf32>,
    %c0_9 = arith.constant 0 : index
    %c1 = arith.constant 1 : index
    %c0_10 = arith.constant 0 : index
    %c0_11 = arith.constant 0 : index
    %c0_12 = arith.constant 0 : index
    %7 = vector.load %arg1[%c0_9, %c1, %c0_10, %c0_11, %c0_12] : memref<1x4x9x9x64xbf16, #tpu.memory_space<vmem>>, vector<1x1x8x8x64xbf16>
    %8 = vector.shape_cast %7 : vector<1x1x8x8x64xbf16> to vector<8x8x64xbf16>
    %9 = vector.shape_cast %8 : vector<8x8x64xbf16> to vector<64x64xbf16>
    %c1_13 = arith.constant 1 : index
    %c0_14 = arith.constant 0 : index
    %c0_15 = arith.constant 0 : index
    %10 = vector.load %arg2[%c1_13, %c0_14, %c0_15] : memref<9x64x128xbf16, #tpu.memory_space<vmem>>, vector<1x64x128xbf16>
    %11 = vector.shape_cast %10 : vector<1x64x128xbf16> to vector<64x128xbf16>
    %cst_16 = arith.constant dense<0.000000e+00> : vector<64x128xf32>
    %12 = tpu.matmul %9, %11, %cst_16 {dimension_numbers = #tpu.dot_dimension_numbers<[1], [0], [0], [1], [0, 0, 1, 1], [], []>} : vector<64x64xbf16>, vector<64x128xbf16>, vector<64x128xf32> -> vector<64x128xf32>
    %c0_17 = arith.constant 0 : index
    %c0_18 = arith.constant 0 : index
    %13 = vector.load %arg5[%c0_17, %c0_18] : memref<64x128xf32, #tpu.memory_space<vmem>>, vector<64x128xf32>
    %14 = arith.addf %13, %12 : vector<64x128xf32>
    %c0_19 = arith.constant 0 : index
    %c0_20 = arith.constant 0 : index
    %15 = vector.load %arg5[%c0_19, %c0_20] : memref<64x128xf32, #tpu.memory_space<vmem>>, vector<64x128xf32>
    tpu.vector_store %arg5[%c0_19, %c0_20], %14 {strides = array<i32>} : memref<64x128xf32, #tpu.memory_space<vmem>>, vector<64x128xf32>,
    %c0_21 = arith.constant 0 : index
    %c0_22 = arith.constant 0 : index
    %c0_23 = arith.constant 0 : index
    %c1_24 = arith.constant 1 : index
    %c0_25 = arith.constant 0 : index
    %16 = vector.load %arg1[%c0_21, %c0_22, %c0_23, %c1_24, %c0_25] : memref<1x4x9x9x64xbf16, #tpu.memory_space<vmem>>, vector<1x1x8x8x64xbf16>
    %17 = vector.shape_cast %16 : vector<1x1x8x8x64xbf16> to vector<8x8x64xbf16>
    %18 = vector.shape_cast %17 : vector<8x8x64xbf16> to vector<64x64xbf16>
    %c2 = arith.constant 2 : index
    %c0_26 = arith.constant 0 : index
    %c0_27 = arith.constant 0 : index
    %19 = vector.load %arg2[%c2, %c0_26, %c0_27] : memref<9x64x128xbf16, #tpu.memory_space<vmem>>, vector<1x64x128xbf16>
    %20 = vector.shape_cast %19 : vector<1x64x128xbf16> to vector<64x128xbf16>
    %cst_28 = arith.constant dense<0.000000e+00> : vector<64x128xf32>
    %21 = tpu.matmul %18, %20, %cst_28 {dimension_numbers = #tpu.dot_dimension_numbers<[1], [0], [0], [1], [0, 0, 1, 1], [], []>} : vector<64x64xbf16>, vector<64x128xbf16>, vector<64x128xf32> -> vector<64x128xf32>
    %c0_29 = arith.constant 0 : index
    %c0_30 = arith.constant 0 : index
    %22 = vector.load %arg5[%c0_29, %c0_30] : memref<64x128xf32, #tpu.memory_space<vmem>>, vector<64x128xf32>
    %23 = arith.addf %22, %21 : vector<64x128xf32>
    %c0_31 = arith.constant 0 : index
    %c0_32 = arith.constant 0 : index
    %24 = vector.load %arg5[%c0_31, %c0_32] : memref<64x128xf32, #tpu.memory_space<vmem>>, vector<64x128xf32>
    tpu.vector_store %arg5[%c0_31, %c0_32], %23 {strides = array<i32>} : memref<64x128xf32, #tpu.memory_space<vmem>>, vector<64x128xf32>,
    %c0_33 = arith.constant 0 : index
    %c2_34 = arith.constant 2 : index
    %c0_35 = arith.constant 0 : index
    %c0_36 = arith.constant 0 : index
    %c0_37 = arith.constant 0 : index
    %25 = vector.load %arg1[%c0_33, %c2_34, %c0_35, %c0_36, %c0_37] : memref<1x4x9x9x64xbf16, #tpu.memory_space<vmem>>, vector<1x1x8x8x64xbf16>
    %26 = vector.shape_cast %25 : vector<1x1x8x8x64xbf16> to vector<8x8x64xbf16>
    %27 = vector.shape_cast %26 : vector<8x8x64xbf16> to vector<64x64xbf16>
    %c3 = arith.constant 3 : index
    %c0_38 = arith.constant 0 : index
    %c0_39 = arith.constant 0 : index
    %28 = vector.load %arg2[%c3, %c0_38, %c0_39] : memref<9x64x128xbf16, #tpu.memory_space<vmem>>, vector<1x64x128xbf16>
    %29 = vector.shape_cast %28 : vector<1x64x128xbf16> to vector<64x128xbf16>
    %cst_40 = arith.constant dense<0.000000e+00> : vector<64x128xf32>
    %30 = tpu.matmul %27, %29, %cst_40 {dimension_numbers = #tpu.dot_dimension_numbers<[1], [0], [0], [1], [0, 0, 1, 1], [], []>} : vector<64x64xbf16>, vector<64x128xbf16>, vector<64x128xf32> -> vector<64x128xf32>
    %c0_41 = arith.constant 0 : index
    %c0_42 = arith.constant 0 : index
    %31 = vector.load %arg5[%c0_41, %c0_42] : memref<64x128xf32, #tpu.memory_space<vmem>>, vector<64x128xf32>
    %32 = arith.addf %31, %30 : vector<64x128xf32>
    %c0_43 = arith.constant 0 : index
    %c0_44 = arith.constant 0 : index
    %33 = vector.load %arg5[%c0_43, %c0_44] : memref<64x128xf32, #tpu.memory_space<vmem>>, vector<64x128xf32>
    tpu.vector_store %arg5[%c0_43, %c0_44], %32 {strides = array<i32>} : memref<64x128xf32, #tpu.memory_space<vmem>>, vector<64x128xf32>,
    %c0_45 = arith.constant 0 : index
    %c3_46 = arith.constant 3 : index
    %c0_47 = arith.constant 0 : index
    %c0_48 = arith.constant 0 : index
    %c0_49 = arith.constant 0 : index
    %34 = vector.load %arg1[%c0_45, %c3_46, %c0_47, %c0_48, %c0_49] : memref<1x4x9x9x64xbf16, #tpu.memory_space<vmem>>, vector<1x1x8x8x64xbf16>
    %35 = vector.shape_cast %34 : vector<1x1x8x8x64xbf16> to vector<8x8x64xbf16>
    %36 = vector.shape_cast %35 : vector<8x8x64xbf16> to vector<64x64xbf16>
    %c4 = arith.constant 4 : index
    %c0_50 = arith.constant 0 : index
    %c0_51 = arith.constant 0 : index
    %37 = vector.load %arg2[%c4, %c0_50, %c0_51] : memref<9x64x128xbf16, #tpu.memory_space<vmem>>, vector<1x64x128xbf16>
    %38 = vector.shape_cast %37 : vector<1x64x128xbf16> to vector<64x128xbf16>
    %cst_52 = arith.constant dense<0.000000e+00> : vector<64x128xf32>
    %39 = tpu.matmul %36, %38, %cst_52 {dimension_numbers = #tpu.dot_dimension_numbers<[1], [0], [0], [1], [0, 0, 1, 1], [], []>} : vector<64x64xbf16>, vector<64x128xbf16>, vector<64x128xf32> -> vector<64x128xf32>
    %c0_53 = arith.constant 0 : index
    %c0_54 = arith.constant 0 : index
    %40 = vector.load %arg5[%c0_53, %c0_54] : memref<64x128xf32, #tpu.memory_space<vmem>>, vector<64x128xf32>
    %41 = arith.addf %40, %39 : vector<64x128xf32>
    %c0_55 = arith.constant 0 : index
    %c0_56 = arith.constant 0 : index
    %42 = vector.load %arg5[%c0_55, %c0_56] : memref<64x128xf32, #tpu.memory_space<vmem>>, vector<64x128xf32>
    tpu.vector_store %arg5[%c0_55, %c0_56], %41 {strides = array<i32>} : memref<64x128xf32, #tpu.memory_space<vmem>>, vector<64x128xf32>,
    %c0_57 = arith.constant 0 : index
    %c2_58 = arith.constant 2 : index
    %c0_59 = arith.constant 0 : index
    %c1_60 = arith.constant 1 : index
    %c0_61 = arith.constant 0 : index
    %43 = vector.load %arg1[%c0_57, %c2_58, %c0_59, %c1_60, %c0_61] : memref<1x4x9x9x64xbf16, #tpu.memory_space<vmem>>, vector<1x1x8x8x64xbf16>
    %44 = vector.shape_cast %43 : vector<1x1x8x8x64xbf16> to vector<8x8x64xbf16>
    %45 = vector.shape_cast %44 : vector<8x8x64xbf16> to vector<64x64xbf16>
    %c5 = arith.constant 5 : index
    %c0_62 = arith.constant 0 : index
    %c0_63 = arith.constant 0 : index
    %46 = vector.load %arg2[%c5, %c0_62, %c0_63] : memref<9x64x128xbf16, #tpu.memory_space<vmem>>, vector<1x64x128xbf16>
    %47 = vector.shape_cast %46 : vector<1x64x128xbf16> to vector<64x128xbf16>
    %cst_64 = arith.constant dense<0.000000e+00> : vector<64x128xf32>
    %48 = tpu.matmul %45, %47, %cst_64 {dimension_numbers = #tpu.dot_dimension_numbers<[1], [0], [0], [1], [0, 0, 1, 1], [], []>} : vector<64x64xbf16>, vector<64x128xbf16>, vector<64x128xf32> -> vector<64x128xf32>
    %c0_65 = arith.constant 0 : index
    %c0_66 = arith.constant 0 : index
    %49 = vector.load %arg5[%c0_65, %c0_66] : memref<64x128xf32, #tpu.memory_space<vmem>>, vector<64x128xf32>
    %50 = arith.addf %49, %48 : vector<64x128xf32>
    %c0_67 = arith.constant 0 : index
    %c0_68 = arith.constant 0 : index
    %51 = vector.load %arg5[%c0_67, %c0_68] : memref<64x128xf32, #tpu.memory_space<vmem>>, vector<64x128xf32>
    tpu.vector_store %arg5[%c0_67, %c0_68], %50 {strides = array<i32>} : memref<64x128xf32, #tpu.memory_space<vmem>>, vector<64x128xf32>,
    %c0_69 = arith.constant 0 : index
    %c0_70 = arith.constant 0 : index
    %c1_71 = arith.constant 1 : index
    %c0_72 = arith.constant 0 : index
    %c0_73 = arith.constant 0 : index
    %52 = vector.load %arg1[%c0_69, %c0_70, %c1_71, %c0_72, %c0_73] : memref<1x4x9x9x64xbf16, #tpu.memory_space<vmem>>, vector<1x1x8x8x64xbf16>
    %53 = vector.shape_cast %52 : vector<1x1x8x8x64xbf16> to vector<8x8x64xbf16>
    %54 = vector.shape_cast %53 : vector<8x8x64xbf16> to vector<64x64xbf16>
    %c6 = arith.constant 6 : index
    %c0_74 = arith.constant 0 : index
    %c0_75 = arith.constant 0 : index
    %55 = vector.load %arg2[%c6, %c0_74, %c0_75] : memref<9x64x128xbf16, #tpu.memory_space<vmem>>, vector<1x64x128xbf16>
    %56 = vector.shape_cast %55 : vector<1x64x128xbf16> to vector<64x128xbf16>
    %cst_76 = arith.constant dense<0.000000e+00> : vector<64x128xf32>
    %57 = tpu.matmul %54, %56, %cst_76 {dimension_numbers = #tpu.dot_dimension_numbers<[1], [0], [0], [1], [0, 0, 1, 1], [], []>} : vector<64x64xbf16>, vector<64x128xbf16>, vector<64x128xf32> -> vector<64x128xf32>
    %c0_77 = arith.constant 0 : index
    %c0_78 = arith.constant 0 : index
    %58 = vector.load %arg5[%c0_77, %c0_78] : memref<64x128xf32, #tpu.memory_space<vmem>>, vector<64x128xf32>
    %59 = arith.addf %58, %57 : vector<64x128xf32>
    %c0_79 = arith.constant 0 : index
    %c0_80 = arith.constant 0 : index
    %60 = vector.load %arg5[%c0_79, %c0_80] : memref<64x128xf32, #tpu.memory_space<vmem>>, vector<64x128xf32>
    tpu.vector_store %arg5[%c0_79, %c0_80], %59 {strides = array<i32>} : memref<64x128xf32, #tpu.memory_space<vmem>>, vector<64x128xf32>,
    %c0_81 = arith.constant 0 : index
    %c1_82 = arith.constant 1 : index
    %c1_83 = arith.constant 1 : index
    %c0_84 = arith.constant 0 : index
    %c0_85 = arith.constant 0 : index
    %61 = vector.load %arg1[%c0_81, %c1_82, %c1_83, %c0_84, %c0_85] : memref<1x4x9x9x64xbf16, #tpu.memory_space<vmem>>, vector<1x1x8x8x64xbf16>
    %62 = vector.shape_cast %61 : vector<1x1x8x8x64xbf16> to vector<8x8x64xbf16>
    %63 = vector.shape_cast %62 : vector<8x8x64xbf16> to vector<64x64xbf16>
    %c7 = arith.constant 7 : index
    %c0_86 = arith.constant 0 : index
    %c0_87 = arith.constant 0 : index
    %64 = vector.load %arg2[%c7, %c0_86, %c0_87] : memref<9x64x128xbf16, #tpu.memory_space<vmem>>, vector<1x64x128xbf16>
    %65 = vector.shape_cast %64 : vector<1x64x128xbf16> to vector<64x128xbf16>
    %cst_88 = arith.constant dense<0.000000e+00> : vector<64x128xf32>
    %66 = tpu.matmul %63, %65, %cst_88 {dimension_numbers = #tpu.dot_dimension_numbers<[1], [0], [0], [1], [0, 0, 1, 1], [], []>} : vector<64x64xbf16>, vector<64x128xbf16>, vector<64x128xf32> -> vector<64x128xf32>
    %c0_89 = arith.constant 0 : index
    %c0_90 = arith.constant 0 : index
    %67 = vector.load %arg5[%c0_89, %c0_90] : memref<64x128xf32, #tpu.memory_space<vmem>>, vector<64x128xf32>
    %68 = arith.addf %67, %66 : vector<64x128xf32>
    %c0_91 = arith.constant 0 : index
    %c0_92 = arith.constant 0 : index
    %69 = vector.load %arg5[%c0_91, %c0_92] : memref<64x128xf32, #tpu.memory_space<vmem>>, vector<64x128xf32>
    tpu.vector_store %arg5[%c0_91, %c0_92], %68 {strides = array<i32>} : memref<64x128xf32, #tpu.memory_space<vmem>>, vector<64x128xf32>,
    %c0_93 = arith.constant 0 : index
    %c0_94 = arith.constant 0 : index
    %c1_95 = arith.constant 1 : index
    %c1_96 = arith.constant 1 : index
    %c0_97 = arith.constant 0 : index
    %70 = vector.load %arg1[%c0_93, %c0_94, %c1_95, %c1_96, %c0_97] : memref<1x4x9x9x64xbf16, #tpu.memory_space<vmem>>, vector<1x1x8x8x64xbf16>
    %71 = vector.shape_cast %70 : vector<1x1x8x8x64xbf16> to vector<8x8x64xbf16>
    %72 = vector.shape_cast %71 : vector<8x8x64xbf16> to vector<64x64xbf16>
    %c8 = arith.constant 8 : index
    %c0_98 = arith.constant 0 : index
    %c0_99 = arith.constant 0 : index
    %73 = vector.load %arg2[%c8, %c0_98, %c0_99] : memref<9x64x128xbf16, #tpu.memory_space<vmem>>, vector<1x64x128xbf16>
    %74 = vector.shape_cast %73 : vector<1x64x128xbf16> to vector<64x128xbf16>
    %cst_100 = arith.constant dense<0.000000e+00> : vector<64x128xf32>
    %75 = tpu.matmul %72, %74, %cst_100 {dimension_numbers = #tpu.dot_dimension_numbers<[1], [0], [0], [1], [0, 0, 1, 1], [], []>} : vector<64x64xbf16>, vector<64x128xbf16>, vector<64x128xf32> -> vector<64x128xf32>
    %c0_101 = arith.constant 0 : index
    %c0_102 = arith.constant 0 : index
    %76 = vector.load %arg5[%c0_101, %c0_102] : memref<64x128xf32, #tpu.memory_space<vmem>>, vector<64x128xf32>
    %77 = arith.addf %76, %75 : vector<64x128xf32>
    %c0_103 = arith.constant 0 : index
    %c0_104 = arith.constant 0 : index
    %78 = vector.load %arg5[%c0_103, %c0_104] : memref<64x128xf32, #tpu.memory_space<vmem>>, vector<64x128xf32>
    tpu.vector_store %arg5[%c0_103, %c0_104], %77 {strides = array<i32>} : memref<64x128xf32, #tpu.memory_space<vmem>>, vector<64x128xf32>,
    %c0_105 = arith.constant 0 : index
    %c0_106 = arith.constant 0 : index
    %79 = vector.load %arg5[%c0_105, %c0_106] : memref<64x128xf32, #tpu.memory_space<vmem>>, vector<64x128xf32>
    %c0_107 = arith.constant 0 : index
    %c0_108 = arith.constant 0 : index
    %80 = vector.load %arg3[%c0_107, %c0_108] : memref<1x128xf32, #tpu.memory_space<vmem>>, vector<1x128xf32>
    %81 = vector.broadcast %80 : vector<1x128xf32> to vector<64x128xf32>
    %82 = arith.addf %79, %81 : vector<64x128xf32>
    %cst_109 = arith.constant 1.000000e-01 : f32
    %83 = vector.broadcast %cst_109 : f32 to vector<64x128xf32>
    %84 = arith.mulf %83, %82 : vector<64x128xf32>
    %85 = arith.maximumf %82, %84 : vector<64x128xf32>
    %86 = arith.truncf %85 : vector<64x128xf32> to vector<64x128xbf16>
    %c0_110 = arith.constant 0 : index
    %c0_111 = arith.constant 0 : index
    %c0_112 = arith.constant 0 : index
    %87 = vector.load %arg4[%c0_110, %c0_111, %c0_112] : memref<1x64x128xbf16, #tpu.memory_space<vmem>>, vector<1x64x128xbf16>
    %88 = vector.shape_cast %87 : vector<1x64x128xbf16> to vector<64x128xbf16>
    %89 = vector.shape_cast %86 : vector<64x128xbf16> to vector<1x64x128xbf16>
    tpu.vector_store %arg4[%c0_110, %c0_111, %c0_112], %89 {strides = array<i32>} : memref<1x64x128xbf16, #tpu.memory_space<vmem>>, vector<1x64x128xbf16>,
    return
  }
  func.func @transform_0(%arg0: i32) -> (i32, i32, i32, i32, i32) {
    %c0_i32 = arith.constant 0 : i32
    %c0_i32_0 = arith.constant 0 : i32
    %c0_i32_1 = arith.constant 0 : i32
    %c0_i32_2 = arith.constant 0 : i32
    %c0_i32_3 = arith.constant 0 : i32
    return %arg0, %c0_i32, %c0_i32_0, %c0_i32_1, %c0_i32_2 : i32, i32, i32, i32, i32
  }
  func.func @transform_1(%arg0: i32) -> (i32, i32, i32) {
    %c0_i32 = arith.constant 0 : i32
    %c0_i32_0 = arith.constant 0 : i32
    %c0_i32_1 = arith.constant 0 : i32
    %c0_i32_2 = arith.constant 0 : i32
    return %c0_i32, %c0_i32_0, %c0_i32_1 : i32, i32, i32
  }
  func.func @transform_2(%arg0: i32) -> (i32, i32) {
    %c0_i32 = arith.constant 0 : i32
    %c0_i32_0 = arith.constant 0 : i32
    %c0_i32_1 = arith.constant 0 : i32
    return %c0_i32, %c0_i32_0 : i32, i32
  }
  func.func @transform_3(%arg0: i32) -> (i32, i32, i32) {
    %c0_i32 = arith.constant 0 : i32
    %c0_i32_0 = arith.constant 0 : i32
    %c0_i32_1 = arith.constant 0 : i32
    return %arg0, %c0_i32, %c0_i32_0 : i32, i32, i32
  }
}

module attributes {stable_mosaic.version = 11 : i64} {
  func.func @kernel(%arg0: i32, %arg1: memref<1x1x10x10x128xbf16, #tpu.memory_space<vmem>>, %arg2: memref<1152x128xbf16, #tpu.memory_space<vmem>>, %arg3: memref<1x128xf32, #tpu.memory_space<vmem>>, %arg4: memref<1x64x128xbf16, #tpu.memory_space<vmem>>) attributes {dimension_semantics = [#tpu.dimension_semantics<parallel>], iteration_bounds = array<i64: 2>, scalar_prefetch = 0 : i64, scratch_operands = 0 : i64, tpu.core_type = #tpu.core_type<tc>, window_params = [{transform_indices = @transform_0, window_bounds = array<i64: 1, 1, 10, 10, 128>}, {pipeline_mode = #tpu.pipeline_mode<synchronous>, transform_indices = @transform_1, window_bounds = array<i64: 1152, 128>}, {pipeline_mode = #tpu.pipeline_mode<synchronous>, transform_indices = @transform_2, window_bounds = array<i64: 1, 128>}, {transform_indices = @transform_3, window_bounds = array<i64: 1, 64, 128>}]} {
    %c0 = arith.constant 0 : index
    %c0_0 = arith.constant 0 : index
    %c0_1 = arith.constant 0 : index
    %c0_2 = arith.constant 0 : index
    %c0_3 = arith.constant 0 : index
    %0 = vector.load %arg1[%c0, %c0_0, %c0_1, %c0_2, %c0_3] : memref<1x1x10x10x128xbf16, #tpu.memory_space<vmem>>, vector<1x1x8x8x128xbf16>
    %1 = vector.shape_cast %0 : vector<1x1x8x8x128xbf16> to vector<8x8x128xbf16>
    %2 = vector.shape_cast %1 : vector<8x8x128xbf16> to vector<64x128xbf16>
    %c0_4 = arith.constant 0 : index
    %c0_5 = arith.constant 0 : index
    %c0_6 = arith.constant 0 : index
    %c1 = arith.constant 1 : index
    %c0_7 = arith.constant 0 : index
    %3 = vector.load %arg1[%c0_4, %c0_5, %c0_6, %c1, %c0_7] : memref<1x1x10x10x128xbf16, #tpu.memory_space<vmem>>, vector<1x1x8x8x128xbf16>
    %4 = vector.shape_cast %3 : vector<1x1x8x8x128xbf16> to vector<8x8x128xbf16>
    %5 = vector.shape_cast %4 : vector<8x8x128xbf16> to vector<64x128xbf16>
    %c0_8 = arith.constant 0 : index
    %c0_9 = arith.constant 0 : index
    %c0_10 = arith.constant 0 : index
    %c2 = arith.constant 2 : index
    %c0_11 = arith.constant 0 : index
    %6 = vector.load %arg1[%c0_8, %c0_9, %c0_10, %c2, %c0_11] : memref<1x1x10x10x128xbf16, #tpu.memory_space<vmem>>, vector<1x1x8x8x128xbf16>
    %7 = vector.shape_cast %6 : vector<1x1x8x8x128xbf16> to vector<8x8x128xbf16>
    %8 = vector.shape_cast %7 : vector<8x8x128xbf16> to vector<64x128xbf16>
    %c0_12 = arith.constant 0 : index
    %c0_13 = arith.constant 0 : index
    %c1_14 = arith.constant 1 : index
    %c0_15 = arith.constant 0 : index
    %c0_16 = arith.constant 0 : index
    %9 = vector.load %arg1[%c0_12, %c0_13, %c1_14, %c0_15, %c0_16] : memref<1x1x10x10x128xbf16, #tpu.memory_space<vmem>>, vector<1x1x8x8x128xbf16>
    %10 = vector.shape_cast %9 : vector<1x1x8x8x128xbf16> to vector<8x8x128xbf16>
    %11 = vector.shape_cast %10 : vector<8x8x128xbf16> to vector<64x128xbf16>
    %c0_17 = arith.constant 0 : index
    %c0_18 = arith.constant 0 : index
    %c1_19 = arith.constant 1 : index
    %c1_20 = arith.constant 1 : index
    %c0_21 = arith.constant 0 : index
    %12 = vector.load %arg1[%c0_17, %c0_18, %c1_19, %c1_20, %c0_21] : memref<1x1x10x10x128xbf16, #tpu.memory_space<vmem>>, vector<1x1x8x8x128xbf16>
    %13 = vector.shape_cast %12 : vector<1x1x8x8x128xbf16> to vector<8x8x128xbf16>
    %14 = vector.shape_cast %13 : vector<8x8x128xbf16> to vector<64x128xbf16>
    %c0_22 = arith.constant 0 : index
    %c0_23 = arith.constant 0 : index
    %c1_24 = arith.constant 1 : index
    %c2_25 = arith.constant 2 : index
    %c0_26 = arith.constant 0 : index
    %15 = vector.load %arg1[%c0_22, %c0_23, %c1_24, %c2_25, %c0_26] : memref<1x1x10x10x128xbf16, #tpu.memory_space<vmem>>, vector<1x1x8x8x128xbf16>
    %16 = vector.shape_cast %15 : vector<1x1x8x8x128xbf16> to vector<8x8x128xbf16>
    %17 = vector.shape_cast %16 : vector<8x8x128xbf16> to vector<64x128xbf16>
    %c0_27 = arith.constant 0 : index
    %c0_28 = arith.constant 0 : index
    %c2_29 = arith.constant 2 : index
    %c0_30 = arith.constant 0 : index
    %c0_31 = arith.constant 0 : index
    %18 = vector.load %arg1[%c0_27, %c0_28, %c2_29, %c0_30, %c0_31] : memref<1x1x10x10x128xbf16, #tpu.memory_space<vmem>>, vector<1x1x8x8x128xbf16>
    %19 = vector.shape_cast %18 : vector<1x1x8x8x128xbf16> to vector<8x8x128xbf16>
    %20 = vector.shape_cast %19 : vector<8x8x128xbf16> to vector<64x128xbf16>
    %c0_32 = arith.constant 0 : index
    %c0_33 = arith.constant 0 : index
    %c2_34 = arith.constant 2 : index
    %c1_35 = arith.constant 1 : index
    %c0_36 = arith.constant 0 : index
    %21 = vector.load %arg1[%c0_32, %c0_33, %c2_34, %c1_35, %c0_36] : memref<1x1x10x10x128xbf16, #tpu.memory_space<vmem>>, vector<1x1x8x8x128xbf16>
    %22 = vector.shape_cast %21 : vector<1x1x8x8x128xbf16> to vector<8x8x128xbf16>
    %23 = vector.shape_cast %22 : vector<8x8x128xbf16> to vector<64x128xbf16>
    %c0_37 = arith.constant 0 : index
    %c0_38 = arith.constant 0 : index
    %c2_39 = arith.constant 2 : index
    %c2_40 = arith.constant 2 : index
    %c0_41 = arith.constant 0 : index
    %24 = vector.load %arg1[%c0_37, %c0_38, %c2_39, %c2_40, %c0_41] : memref<1x1x10x10x128xbf16, #tpu.memory_space<vmem>>, vector<1x1x8x8x128xbf16>
    %25 = vector.shape_cast %24 : vector<1x1x8x8x128xbf16> to vector<8x8x128xbf16>
    %26 = vector.shape_cast %25 : vector<8x8x128xbf16> to vector<64x128xbf16>
    %27 = tpu.concatenate %2, %5, %8, %11, %14, %17, %20, %23, %26 in 1 : vector<64x128xbf16>, vector<64x128xbf16>, vector<64x128xbf16>, vector<64x128xbf16>, vector<64x128xbf16>, vector<64x128xbf16>, vector<64x128xbf16>, vector<64x128xbf16>, vector<64x128xbf16> -> vector<64x1152xbf16>
    %c0_42 = arith.constant 0 : index
    %c0_43 = arith.constant 0 : index
    %28 = vector.load %arg2[%c0_42, %c0_43] : memref<1152x128xbf16, #tpu.memory_space<vmem>>, vector<1152x128xbf16>
    %cst = arith.constant dense<0.000000e+00> : vector<64x128xf32>
    %29 = tpu.matmul %27, %28, %cst {dimension_numbers = #tpu.dot_dimension_numbers<[1], [0], [0], [1], [0, 0, 1, 1], [], []>} : vector<64x1152xbf16>, vector<1152x128xbf16>, vector<64x128xf32> -> vector<64x128xf32>
    %c0_44 = arith.constant 0 : index
    %c0_45 = arith.constant 0 : index
    %30 = vector.load %arg3[%c0_44, %c0_45] : memref<1x128xf32, #tpu.memory_space<vmem>>, vector<1x128xf32>
    %31 = vector.broadcast %30 : vector<1x128xf32> to vector<64x128xf32>
    %32 = arith.addf %29, %31 : vector<64x128xf32>
    %cst_46 = arith.constant 1.000000e-01 : f32
    %33 = vector.broadcast %cst_46 : f32 to vector<64x128xf32>
    %34 = arith.mulf %33, %32 : vector<64x128xf32>
    %35 = arith.maximumf %32, %34 : vector<64x128xf32>
    %36 = arith.truncf %35 : vector<64x128xf32> to vector<64x128xbf16>
    %c0_47 = arith.constant 0 : index
    %c0_48 = arith.constant 0 : index
    %c0_49 = arith.constant 0 : index
    %37 = vector.load %arg4[%c0_47, %c0_48, %c0_49] : memref<1x64x128xbf16, #tpu.memory_space<vmem>>, vector<1x64x128xbf16>
    %38 = vector.shape_cast %37 : vector<1x64x128xbf16> to vector<64x128xbf16>
    %39 = vector.shape_cast %36 : vector<64x128xbf16> to vector<1x64x128xbf16>
    tpu.vector_store %arg4[%c0_47, %c0_48, %c0_49], %39 {strides = array<i32>} : memref<1x64x128xbf16, #tpu.memory_space<vmem>>, vector<1x64x128xbf16>,
    return
  }
  func.func @transform_0(%arg0: i32) -> (i32, i32, i32, i32, i32) {
    %c0_i32 = arith.constant 0 : i32
    %c0_i32_0 = arith.constant 0 : i32
    %c0_i32_1 = arith.constant 0 : i32
    %c0_i32_2 = arith.constant 0 : i32
    %c0_i32_3 = arith.constant 0 : i32
    return %arg0, %c0_i32, %c0_i32_0, %c0_i32_1, %c0_i32_2 : i32, i32, i32, i32, i32
  }
  func.func @transform_1(%arg0: i32) -> (i32, i32) {
    %c0_i32 = arith.constant 0 : i32
    %c0_i32_0 = arith.constant 0 : i32
    %c0_i32_1 = arith.constant 0 : i32
    return %c0_i32, %c0_i32_0 : i32, i32
  }
  func.func @transform_2(%arg0: i32) -> (i32, i32) {
    %c0_i32 = arith.constant 0 : i32
    %c0_i32_0 = arith.constant 0 : i32
    %c0_i32_1 = arith.constant 0 : i32
    return %c0_i32, %c0_i32_0 : i32, i32
  }
  func.func @transform_3(%arg0: i32) -> (i32, i32, i32) {
    %c0_i32 = arith.constant 0 : i32
    %c0_i32_0 = arith.constant 0 : i32
    %c0_i32_1 = arith.constant 0 : i32
    return %arg0, %c0_i32, %c0_i32_0 : i32, i32, i32
  }
}

module attributes {stable_mosaic.version = 11 : i64} {
  func.func @kernel(%arg0: i32, %arg1: memref<1x4x5x9x128xbf16, #tpu.memory_space<vmem>>, %arg2: memref<1152x128xbf16, #tpu.memory_space<vmem>>, %arg3: memref<1x128xf32, #tpu.memory_space<vmem>>, %arg4: memref<1x32x128xbf16, #tpu.memory_space<vmem>>) attributes {dimension_semantics = [#tpu.dimension_semantics<parallel>], iteration_bounds = array<i64: 2>, scalar_prefetch = 0 : i64, scratch_operands = 0 : i64, tpu.core_type = #tpu.core_type<tc>, window_params = [{transform_indices = @transform_0, window_bounds = array<i64: 1, 4, 5, 9, 128>}, {pipeline_mode = #tpu.pipeline_mode<synchronous>, transform_indices = @transform_1, window_bounds = array<i64: 1152, 128>}, {pipeline_mode = #tpu.pipeline_mode<synchronous>, transform_indices = @transform_2, window_bounds = array<i64: 1, 128>}, {transform_indices = @transform_3, window_bounds = array<i64: 1, 32, 128>}]} {
    %c0 = arith.constant 0 : index
    %c0_0 = arith.constant 0 : index
    %c0_1 = arith.constant 0 : index
    %c0_2 = arith.constant 0 : index
    %c0_3 = arith.constant 0 : index
    %0 = vector.load %arg1[%c0, %c0_0, %c0_1, %c0_2, %c0_3] : memref<1x4x5x9x128xbf16, #tpu.memory_space<vmem>>, vector<1x1x4x8x128xbf16>
    %1 = vector.shape_cast %0 : vector<1x1x4x8x128xbf16> to vector<4x8x128xbf16>
    %2 = vector.shape_cast %1 : vector<4x8x128xbf16> to vector<32x128xbf16>
    %c0_4 = arith.constant 0 : index
    %c1 = arith.constant 1 : index
    %c0_5 = arith.constant 0 : index
    %c0_6 = arith.constant 0 : index
    %c0_7 = arith.constant 0 : index
    %3 = vector.load %arg1[%c0_4, %c1, %c0_5, %c0_6, %c0_7] : memref<1x4x5x9x128xbf16, #tpu.memory_space<vmem>>, vector<1x1x4x8x128xbf16>
    %4 = vector.shape_cast %3 : vector<1x1x4x8x128xbf16> to vector<4x8x128xbf16>
    %5 = vector.shape_cast %4 : vector<4x8x128xbf16> to vector<32x128xbf16>
    %c0_8 = arith.constant 0 : index
    %c0_9 = arith.constant 0 : index
    %c0_10 = arith.constant 0 : index
    %c1_11 = arith.constant 1 : index
    %c0_12 = arith.constant 0 : index
    %6 = vector.load %arg1[%c0_8, %c0_9, %c0_10, %c1_11, %c0_12] : memref<1x4x5x9x128xbf16, #tpu.memory_space<vmem>>, vector<1x1x4x8x128xbf16>
    %7 = vector.shape_cast %6 : vector<1x1x4x8x128xbf16> to vector<4x8x128xbf16>
    %8 = vector.shape_cast %7 : vector<4x8x128xbf16> to vector<32x128xbf16>
    %c0_13 = arith.constant 0 : index
    %c2 = arith.constant 2 : index
    %c0_14 = arith.constant 0 : index
    %c0_15 = arith.constant 0 : index
    %c0_16 = arith.constant 0 : index
    %9 = vector.load %arg1[%c0_13, %c2, %c0_14, %c0_15, %c0_16] : memref<1x4x5x9x128xbf16, #tpu.memory_space<vmem>>, vector<1x1x4x8x128xbf16>
    %10 = vector.shape_cast %9 : vector<1x1x4x8x128xbf16> to vector<4x8x128xbf16>
    %11 = vector.shape_cast %10 : vector<4x8x128xbf16> to vector<32x128xbf16>
    %c0_17 = arith.constant 0 : index
    %c3 = arith.constant 3 : index
    %c0_18 = arith.constant 0 : index
    %c0_19 = arith.constant 0 : index
    %c0_20 = arith.constant 0 : index
    %12 = vector.load %arg1[%c0_17, %c3, %c0_18, %c0_19, %c0_20] : memref<1x4x5x9x128xbf16, #tpu.memory_space<vmem>>, vector<1x1x4x8x128xbf16>
    %13 = vector.shape_cast %12 : vector<1x1x4x8x128xbf16> to vector<4x8x128xbf16>
    %14 = vector.shape_cast %13 : vector<4x8x128xbf16> to vector<32x128xbf16>
    %c0_21 = arith.constant 0 : index
    %c2_22 = arith.constant 2 : index
    %c0_23 = arith.constant 0 : index
    %c1_24 = arith.constant 1 : index
    %c0_25 = arith.constant 0 : index
    %15 = vector.load %arg1[%c0_21, %c2_22, %c0_23, %c1_24, %c0_25] : memref<1x4x5x9x128xbf16, #tpu.memory_space<vmem>>, vector<1x1x4x8x128xbf16>
    %16 = vector.shape_cast %15 : vector<1x1x4x8x128xbf16> to vector<4x8x128xbf16>
    %17 = vector.shape_cast %16 : vector<4x8x128xbf16> to vector<32x128xbf16>
    %c0_26 = arith.constant 0 : index
    %c0_27 = arith.constant 0 : index
    %c1_28 = arith.constant 1 : index
    %c0_29 = arith.constant 0 : index
    %c0_30 = arith.constant 0 : index
    %18 = vector.load %arg1[%c0_26, %c0_27, %c1_28, %c0_29, %c0_30] : memref<1x4x5x9x128xbf16, #tpu.memory_space<vmem>>, vector<1x1x4x8x128xbf16>
    %19 = vector.shape_cast %18 : vector<1x1x4x8x128xbf16> to vector<4x8x128xbf16>
    %20 = vector.shape_cast %19 : vector<4x8x128xbf16> to vector<32x128xbf16>
    %c0_31 = arith.constant 0 : index
    %c1_32 = arith.constant 1 : index
    %c1_33 = arith.constant 1 : index
    %c0_34 = arith.constant 0 : index
    %c0_35 = arith.constant 0 : index
    %21 = vector.load %arg1[%c0_31, %c1_32, %c1_33, %c0_34, %c0_35] : memref<1x4x5x9x128xbf16, #tpu.memory_space<vmem>>, vector<1x1x4x8x128xbf16>
    %22 = vector.shape_cast %21 : vector<1x1x4x8x128xbf16> to vector<4x8x128xbf16>
    %23 = vector.shape_cast %22 : vector<4x8x128xbf16> to vector<32x128xbf16>
    %c0_36 = arith.constant 0 : index
    %c0_37 = arith.constant 0 : index
    %c1_38 = arith.constant 1 : index
    %c1_39 = arith.constant 1 : index
    %c0_40 = arith.constant 0 : index
    %24 = vector.load %arg1[%c0_36, %c0_37, %c1_38, %c1_39, %c0_40] : memref<1x4x5x9x128xbf16, #tpu.memory_space<vmem>>, vector<1x1x4x8x128xbf16>
    %25 = vector.shape_cast %24 : vector<1x1x4x8x128xbf16> to vector<4x8x128xbf16>
    %26 = vector.shape_cast %25 : vector<4x8x128xbf16> to vector<32x128xbf16>
    %27 = tpu.concatenate %2, %5, %8, %11, %14, %17, %20, %23, %26 in 1 : vector<32x128xbf16>, vector<32x128xbf16>, vector<32x128xbf16>, vector<32x128xbf16>, vector<32x128xbf16>, vector<32x128xbf16>, vector<32x128xbf16>, vector<32x128xbf16>, vector<32x128xbf16> -> vector<32x1152xbf16>
    %c0_41 = arith.constant 0 : index
    %c0_42 = arith.constant 0 : index
    %28 = vector.load %arg2[%c0_41, %c0_42] : memref<1152x128xbf16, #tpu.memory_space<vmem>>, vector<1152x128xbf16>
    %cst = arith.constant dense<0.000000e+00> : vector<32x128xf32>
    %29 = tpu.matmul %27, %28, %cst {dimension_numbers = #tpu.dot_dimension_numbers<[1], [0], [0], [1], [0, 0, 1, 1], [], []>} : vector<32x1152xbf16>, vector<1152x128xbf16>, vector<32x128xf32> -> vector<32x128xf32>
    %c0_43 = arith.constant 0 : index
    %c0_44 = arith.constant 0 : index
    %30 = vector.load %arg3[%c0_43, %c0_44] : memref<1x128xf32, #tpu.memory_space<vmem>>, vector<1x128xf32>
    %31 = vector.broadcast %30 : vector<1x128xf32> to vector<32x128xf32>
    %32 = arith.addf %29, %31 : vector<32x128xf32>
    %cst_45 = arith.constant 1.000000e-01 : f32
    %33 = vector.broadcast %cst_45 : f32 to vector<32x128xf32>
    %34 = arith.mulf %33, %32 : vector<32x128xf32>
    %35 = arith.maximumf %32, %34 : vector<32x128xf32>
    %36 = arith.truncf %35 : vector<32x128xf32> to vector<32x128xbf16>
    %c0_46 = arith.constant 0 : index
    %c0_47 = arith.constant 0 : index
    %c0_48 = arith.constant 0 : index
    %37 = vector.load %arg4[%c0_46, %c0_47, %c0_48] : memref<1x32x128xbf16, #tpu.memory_space<vmem>>, vector<1x32x128xbf16>
    %38 = vector.shape_cast %37 : vector<1x32x128xbf16> to vector<32x128xbf16>
    %39 = vector.shape_cast %36 : vector<32x128xbf16> to vector<1x32x128xbf16>
    tpu.vector_store %arg4[%c0_46, %c0_47, %c0_48], %39 {strides = array<i32>} : memref<1x32x128xbf16, #tpu.memory_space<vmem>>, vector<1x32x128xbf16>,
    return
  }
  func.func @transform_0(%arg0: i32) -> (i32, i32, i32, i32, i32) {
    %c0_i32 = arith.constant 0 : i32
    %c0_i32_0 = arith.constant 0 : i32
    %c0_i32_1 = arith.constant 0 : i32
    %c0_i32_2 = arith.constant 0 : i32
    %c0_i32_3 = arith.constant 0 : i32
    return %arg0, %c0_i32, %c0_i32_0, %c0_i32_1, %c0_i32_2 : i32, i32, i32, i32, i32
  }
  func.func @transform_1(%arg0: i32) -> (i32, i32) {
    %c0_i32 = arith.constant 0 : i32
    %c0_i32_0 = arith.constant 0 : i32
    %c0_i32_1 = arith.constant 0 : i32
    return %c0_i32, %c0_i32_0 : i32, i32
  }
  func.func @transform_2(%arg0: i32) -> (i32, i32) {
    %c0_i32 = arith.constant 0 : i32
    %c0_i32_0 = arith.constant 0 : i32
    %c0_i32_1 = arith.constant 0 : i32
    return %c0_i32, %c0_i32_0 : i32, i32
  }
  func.func @transform_3(%arg0: i32) -> (i32, i32, i32) {
    %c0_i32 = arith.constant 0 : i32
    %c0_i32_0 = arith.constant 0 : i32
    %c0_i32_1 = arith.constant 0 : i32
    return %arg0, %c0_i32, %c0_i32_0 : i32, i32, i32
  }
}

</mosaic_0001>

<bundles_post_ra>
// kernel: basic_conv_encoder.4
= control target key start
LH: loop header
LB: loop body
LE: loop exit
PB: predicated region body
PF: predicated region fallthrough
CT: control target
= control target key end

     0   :  { %s1123_s12 = smov 0   ;;  %s1242_s0 = inlined_call_operand.vmem [shape: bf16[2,1,16,16,27], index: 0, kind: input, shape index: {}]   ;;  %s1243_s1 = inlined_call_operand.vmem [shape: bf16[27,128], index: 1, kind: input, shape index: {}]   ;;  %s1244_s2 = inlined_call_operand.vmem [shape: f32[1,128], index: 2, kind: input, shape index: {}]   ;;  %s1245_s3 = inlined_call_operand.vmem [shape: bf16[2,256,128], index: 3, kind: output, shape index: {}]  }
   0x1 LB: > { %s802_s13 = sadd.s32 4294967295, %s1100_s12   ;;  %p806_p0 = scmp.ge.s32.totalorder %s1100_s12, 1  ;;  %s1100_s12 = sphi %s1123_s12, %s13_s12  }
   0x2   : > { %p137_p1 = scmp.lt.s32.totalorder %s1100_s12, 3 }
   0x4   : > { %p138_p2 = pnand %p806_p0, %p137_p1 }
   0x5   : > { %v1076_v0 = vld [vmem:[%s1243_s1] sm:$0xff] (!%p138_p2)   ;;  %vm355_vm0 = vcmask (!%p138_p2), 1044480   ;;  %v1077_v1 = vld [vmem:[%s1243_s1 + $0x8] sm:$0x3f] (!%p138_p2)   ;;  %vm356_vm1 = vcmask (!%p138_p2), 1045504   ;;  %p161_p3 = scmp.lt.s32.totalorder (!%p138_p2), %s802_s13, 1 }
   0x6   : > { %141 = sbr.rel (%p138_p2) target bundleno = 267 (0x10b), region = 32  ;;  %1027 = vmatprep.subr.bf16.mxu0 (!%p138_p2), %v1076_v0  ;;  %1063 = vmatprep.subr.bf16.mxu1 (!%p138_p2), %v1076_v0  ;;  %v1102_v2 = vmov (!%p138_p2), 65535   ;;  %vm306_vm2 = vcmask (!%p138_p2), 220160   ;;  %v1182_v22 = vld [vmem:[%s1244_s2] ss:$0 sm:$0xff] (!%p138_p2) }
   0x7   : > { %1028 = vmatpush3.bf16.msra.mxu0 (!%p138_p2), %v1076_v0  ;;  %1065 = vmatpush3.bf16.msra.mxu1 (!%p138_p2), %v1076_v0  ;;  %v357_v3 = vsel (!%p138_p2), %vm355_vm0, 4294967295, %v1102_v2 }
   0x8   : > { %v358_v4 = vsel (!%p138_p2), %vm356_vm1, %v357_v3, 0 }
   0x9   : > { %v360_v5 = vand.u32 (!%p138_p2), %v1077_v1, %v358_v4 }
   0xb   : > { %1029 = vmatprep.subr.bf16.mxu0 (!%p138_p2), %v360_v5  ;;  %1064 = vmatprep.subr.bf16.mxu1 (!%p138_p2), %v360_v5 }
   0xc   : > { %1030 = vmatpush3.bf16.msra.mxu0 (!%p138_p2), %v360_v5  ;;  %1066 = vmatpush3.bf16.msra.mxu1 (!%p138_p2), %v360_v5 }
   0xd   : > { %s1247_s13 = smov (!%p161_p3, %s802_s13), 1 }
   0xe   : > { %s880_s18 = sshll.u32 %s1247_s13, 7 }
   0xf   : > { %s1145_s21 = scalar_lea.vmem %s1242_s0, %s880_s18  ;;  %s1197_s26 = scalar_lea.vmem %s1245_s3, %s880_s18 }
  0x10   : > { %v1078_v6 = vld [vmem:[%s1145_s21] sm:$0xff]   ;;  %v1080_v8 = vld [vmem:[%s1145_s21 + $0x8] sm:$0xff]   ;;  %v1082_v10 = vld [vmem:[%s1145_s21 + $0x10] sm:$0xff]  }
  0x11   : > { %v1079_v7 = vld [vmem:[%s1145_s21 + $0x40] sm:$0xff]   ;;  %1031 = vmatprep.mubr.msk.bf16.mxu0 %vm306_vm2, %v1078_v6  ;;  %v1081_v9 = vld [vmem:[%s1145_s21 + $0x48] sm:$0xff]   ;;  %v1083_v11 = vld [vmem:[%s1145_s21 + $0x50] sm:$0xff]  }
  0x12   : > { %1047 = vmatprep.mubr.msk.bf16.mxu1 %vm306_vm2, %v1079_v7  ;;  %1032 = vmatmul.mubr.msk.bf16.vlgmr.msra.gmra.mrb[0].mxu0 %vm306_vm2, %v1080_v8  ;;  %v1084_v12 = vld [vmem:[%s1145_s21 + $0x18] sm:$0xff]   ;;  %v1086_v14 = vld [vmem:[%s1145_s21 + $0x20] sm:$0xff]   ;;  %v1088_v16 = vld [vmem:[%s1145_s21 + $0x28] sm:$0xff]  }
  0x13   : > { %1048 = vmatmul.mubr.msk.bf16.vlgmr.msra.gmra.mrb[0].mxu1 %vm306_vm2, %v1081_v9  ;;  %1035 = vmatprep.mubr.msk.bf16.mxu0 %vm306_vm2, %v1082_v10  ;;  %v1085_v13 = vld [vmem:[%s1145_s21 + $0x58] sm:$0xff]   ;;  %v1087_v15 = vld [vmem:[%s1145_s21 + $0x60] sm:$0xff]   ;;  %v1089_v17 = vld [vmem:[%s1145_s21 + $0x68] sm:$0xff]  }
  0x14   : > { %1051 = vmatprep.mubr.msk.bf16.mxu1 %vm306_vm2, %v1083_v11  ;;  %v1090_v18 = vld [vmem:[%s1145_s21 + $0x30] sm:$0xff]   ;;  %v1092_v20 = vld [vmem:[%s1145_s21 + $0x38] sm:$0xff]  }
  0x15   : > { %v1091_v19 = vld [vmem:[%s1145_s21 + $0x70] sm:$0xff]   ;;  %v1093_v21 = vld [vmem:[%s1145_s21 + $0x78] sm:$0xff]  }
  0x1a   : > { %1036 = vmatmul.mubr.msk.bf16.gmra.mrb[4].mxu0 %vm306_vm2, %v1084_v12 }
  0x1b   : > { %1052 = vmatmul.mubr.msk.bf16.gmra.mrb[4].mxu1 %vm306_vm2, %v1085_v13  ;;  %1039 = vmatprep.mubr.msk.bf16.mxu0 %vm306_vm2, %v1086_v14 }
  0x1c   : > { %1055 = vmatprep.mubr.msk.bf16.mxu1 %vm306_vm2, %v1087_v15 }
  0x22   : > { %1040 = vmatmul.mubr.msk.bf16.gmra.mrb[8].mxu0 %vm306_vm2, %v1088_v16 }
  0x23   : > { %1056 = vmatmul.mubr.msk.bf16.gmra.mrb[8].mxu1 %vm306_vm2, %v1089_v17  ;;  %1043 = vmatprep.mubr.msk.bf16.mxu0 %vm306_vm2, %v1090_v18 }
  0x24   : > { %1059 = vmatprep.mubr.msk.bf16.mxu1 %vm306_vm2, %v1091_v19 }
  0x2a   : > { %1044 = vmatmul.mubr.msk.bf16.gmra.mrb[12].mxu0 %vm306_vm2, %v1092_v20 }
  0x2b   : > { %1060 = vmatmul.mubr.msk.bf16.gmra.mrb[12].mxu1 %vm306_vm2, %v1093_v21 }
  0xe5   : > { %v1033_v23 = vpop.f32.mrb[0].mxu0 }
  0xe6   : > { %v405_v24 = vadd.f32 %v1033_v23, %v1182_v22  ;;  %v1049_v25 = vpop.f32.mrb[0].mxu1  ;;  %v396_v26 = vpop.f32.mrb[1].mxu0 }
  0xe7   : > { %v469_v27 = vadd.f32 %v1049_v25, %v1182_v22  ;;  %v397_v28 = vadd.f32 %v1182_v22, %v396_v26  ;;  %v460_v29 = vpop.f32.mrb[1].mxu1  ;;  %v1034_v30 = vpop.f32.mrb[2].mxu0 }
  0xe8   : > { %v525_v31 = vmul.f32 0.1, %v405_v24  ;;  %v461_v32 = vadd.f32 %v1182_v22, %v460_v29  ;;  %v408_v33 = vadd.f32 %v1034_v30, %v1182_v22  ;;  %v1050_v34 = vpop.f32.mrb[2].mxu1  ;;  %v399_v35 = vpop.f32.mrb[3].mxu0 }
  0xe9   : > { %v541_v36 = vmul.f32 0.1, %v469_v27  ;;  %v523_v37 = vmul.f32 0.1, %v397_v28  ;;  %v472_v38 = vadd.f32 %v1050_v34, %v1182_v22  ;;  %v400_v39 = vadd.f32 %v1182_v22, %v399_v35  ;;  %v463_v40 = vpop.f32.mrb[3].mxu1 }
  0xea   : > { %v539_v41 = vmul.f32 0.1, %v461_v32  ;;  %v526_v42 = vmul.f32 0.1, %v408_v33  ;;  %v464_v43 = vadd.f32 %v1182_v22, %v463_v40  ;;  %v557_v46 = vmax.f32 %v405_v24, %v525_v31 }
  0xeb   : > { %v542_v44 = vmul.f32 0.1, %v472_v38  ;;  %v524_v45 = vmul.f32 0.1, %v400_v39  ;;  %v573_v49 = vmax.f32 %v469_v27, %v541_v36  ;;  %v555_v50 = vmax.f32 %v397_v28, %v523_v37 }
  0xec   : > { %v558_v47 = vmax.f32 %v408_v33, %v526_v42  ;;  %v540_v48 = vmul.f32 0.1, %v464_v43  ;;  %v571_v54 = vmax.f32 %v461_v32, %v539_v41 }
  0xed   : > { %v574_v51 = vmax.f32 %v472_v38, %v542_v44  ;;  %v556_v52 = vmax.f32 %v400_v39, %v524_v45  ;;  %v1037_v53 = vpop.f32.mrb[4].mxu0 }
  0xee   : > { %v922_v55 = vpack.c.bf16 %v558_v47, %v557_v46  ;;  %v572_v56 = vmax.f32 %v464_v43, %v540_v48  ;;  %v421_v57 = vadd.f32 %v1037_v53, %v1182_v22  ;;  %v1053_v58 = vpop.f32.mrb[4].mxu1  ;;  %v412_v59 = vpop.f32.mrb[5].mxu0 }
  0xef   : > { %v962_v60 = vpack.c.bf16 %v574_v51, %v573_v49  ;;  %v917_v61 = vpack.c.bf16 %v556_v52, %v555_v50  ;;  %v485_v62 = vadd.f32 %v1053_v58, %v1182_v22  ;;  %v413_v63 = vadd.f32 %v1182_v22, %v412_v59  ;;  %v476_v0 = vpop.f32.mrb[5].mxu1  ;;  %v1038_v1 = vpop.f32.mrb[6].mxu0 }
  0xf0   : > { %994 = vst [vmem:[%s1197_s26 + $0x8] sm:$0xff] %v922_v55   ;;  %v957_v2 = vpack.c.bf16 %v572_v56, %v571_v54  ;;  %v529_v3 = vmul.f32 0.1, %v421_v57  ;;  %v477_v4 = vadd.f32 %v1182_v22, %v476_v0  ;;  %v424_v5 = vadd.f32 %v1038_v1, %v1182_v22  ;;  %v1054_v6 = vpop.f32.mrb[6].mxu1  ;;  %v415_v7 = vpop.f32.mrb[7].mxu0 }
  0xf1   : > { %1002 = vst [vmem:[%s1197_s26 + $0x48] sm:$0xff] %v962_v60   ;;  %918 = vst [vmem:[%s1197_s26] sm:$0xff] %v917_v61   ;;  %v545_v8 = vmul.f32 0.1, %v485_v62  ;;  %v527_v9 = vmul.f32 0.1, %v413_v63  ;;  %v488_v10 = vadd.f32 %v1054_v6, %v1182_v22  ;;  %v416_v11 = vadd.f32 %v1182_v22, %v415_v7  ;;  %v479_v12 = vpop.f32.mrb[7].mxu1 }
  0xf2   : > { %1001 = vst [vmem:[%s1197_s26 + $0x40] sm:$0xff] %v957_v2   ;;  %v543_v13 = vmul.f32 0.1, %v477_v4  ;;  %v530_v14 = vmul.f32 0.1, %v424_v5  ;;  %v480_v15 = vadd.f32 %v1182_v22, %v479_v12  ;;  %v561_v18 = vmax.f32 %v421_v57, %v529_v3 }
  0xf3   : > { %v546_v16 = vmul.f32 0.1, %v488_v10  ;;  %v528_v17 = vmul.f32 0.1, %v416_v11  ;;  %v577_v21 = vmax.f32 %v485_v62, %v545_v8  ;;  %v559_v23 = vmax.f32 %v413_v63, %v527_v9 }
  0xf4   : > { %v562_v19 = vmax.f32 %v424_v5, %v530_v14  ;;  %v544_v20 = vmul.f32 0.1, %v480_v15  ;;  %v575_v27 = vmax.f32 %v477_v4, %v543_v13 }
  0xf5   : > { %v578_v24 = vmax.f32 %v488_v10, %v546_v16  ;;  %v560_v25 = vmax.f32 %v416_v11, %v528_v17  ;;  %v1041_v26 = vpop.f32.mrb[8].mxu0 }
  0xf6   : > { %v932_v28 = vpack.c.bf16 %v562_v19, %v561_v18  ;;  %v576_v29 = vmax.f32 %v480_v15, %v544_v20  ;;  %v437_v30 = vadd.f32 %v1041_v26, %v1182_v22  ;;  %v1057_v31 = vpop.f32.mrb[8].mxu1  ;;  %v428_v32 = vpop.f32.mrb[9].mxu0 }
  0xf7   : > { %v972_v33 = vpack.c.bf16 %v578_v24, %v577_v21  ;;  %v927_v34 = vpack.c.bf16 %v560_v25, %v559_v23  ;;  %v501_v35 = vadd.f32 %v1057_v31, %v1182_v22  ;;  %v429_v36 = vadd.f32 %v1182_v22, %v428_v32  ;;  %v492_v37 = vpop.f32.mrb[9].mxu1  ;;  %v1042_v38 = vpop.f32.mrb[10].mxu0 }
  0xf8   : > { %996 = vst [vmem:[%s1197_s26 + $0x18] sm:$0xff] %v932_v28   ;;  %v967_v39 = vpack.c.bf16 %v576_v29, %v575_v27  ;;  %v533_v40 = vmul.f32 0.1, %v437_v30  ;;  %v493_v41 = vadd.f32 %v1182_v22, %v492_v37  ;;  %v440_v42 = vadd.f32 %v1042_v38, %v1182_v22  ;;  %v1058_v43 = vpop.f32.mrb[10].mxu1  ;;  %v431_v44 = vpop.f32.mrb[11].mxu0 }
  0xf9   : > { %1004 = vst [vmem:[%s1197_s26 + $0x58] sm:$0xff] %v972_v33   ;;  %995 = vst [vmem:[%s1197_s26 + $0x10] sm:$0xff] %v927_v34   ;;  %v549_v45 = vmul.f32 0.1, %v501_v35  ;;  %v531_v46 = vmul.f32 0.1, %v429_v36  ;;  %v504_v47 = vadd.f32 %v1058_v43, %v1182_v22  ;;  %v432_v48 = vadd.f32 %v1182_v22, %v431_v44 }
  0xfa   : > { %v495_v49 = vpop.f32.mrb[11].mxu1  ;;  %1003 = vst [vmem:[%s1197_s26 + $0x50] sm:$0xff] %v967_v39   ;;  %v547_v50 = vmul.f32 0.1, %v493_v41  ;;  %v534_v51 = vmul.f32 0.1, %v440_v42  ;;  %v565_v55 = vmax.f32 %v437_v30, %v533_v40 }
  0xfb   : > { %v496_v52 = vadd.f32 %v1182_v22, %v495_v49  ;;  %v550_v53 = vmul.f32 0.1, %v504_v47  ;;  %v532_v54 = vmul.f32 0.1, %v432_v48  ;;  %v581_v58 = vmax.f32 %v501_v35, %v549_v45 }
  0xfc   : > { %v566_v56 = vmax.f32 %v440_v42, %v534_v51  ;;  %v563_v59 = vmax.f32 %v429_v36, %v531_v46  ;;  %v579_v63 = vmax.f32 %v493_v41, %v547_v50 }
  0xfd   : > { %v548_v57 = vmul.f32 0.1, %v496_v52  ;;  %v582_v60 = vmax.f32 %v504_v47, %v550_v53  ;;  %v564_v61 = vmax.f32 %v432_v48, %v532_v54  ;;  %v1045_v62 = vpop.f32.mrb[12].mxu0 }
  0xfe   : > { %v942_v0 = vpack.c.bf16 %v566_v56, %v565_v55  ;;  %v453_v2 = vadd.f32 %v1045_v62, %v1182_v22  ;;  %v1061_v3 = vpop.f32.mrb[12].mxu1  ;;  %v444_v4 = vpop.f32.mrb[13].mxu0 }
  0xff   : > { %v580_v1 = vmax.f32 %v496_v52, %v548_v57  ;;  %v982_v5 = vpack.c.bf16 %v582_v60, %v581_v58  ;;  %v937_v6 = vpack.c.bf16 %v564_v61, %v563_v59  ;;  %v517_v7 = vadd.f32 %v1061_v3, %v1182_v22  ;;  %v508_v9 = vpop.f32.mrb[13].mxu1  ;;  %v1046_v10 = vpop.f32.mrb[14].mxu0 }
 0x100   : > { %v445_v8 = vadd.f32 %v1182_v22, %v444_v4  ;;  %998 = vst [vmem:[%s1197_s26 + $0x28] sm:$0xff] %v942_v0   ;;  %v537_v12 = vmul.f32 0.1, %v453_v2  ;;  %v509_v13 = vadd.f32 %v1182_v22, %v508_v9  ;;  %v456_v14 = vadd.f32 %v1046_v10, %v1182_v22  ;;  %v1062_v15 = vpop.f32.mrb[14].mxu1  ;;  %v447_v16 = vpop.f32.mrb[15].mxu0 }
 0x101   : > { %v977_v11 = vpack.c.bf16 %v580_v1, %v579_v63  ;;  %1006 = vst [vmem:[%s1197_s26 + $0x68] sm:$0xff] %v982_v5   ;;  %997 = vst [vmem:[%s1197_s26 + $0x20] sm:$0xff] %v937_v6   ;;  %v553_v17 = vmul.f32 0.1, %v517_v7  ;;  %v520_v19 = vadd.f32 %v1062_v15, %v1182_v22  ;;  %v448_v20 = vadd.f32 %v1182_v22, %v447_v16  ;;  %v511_v21 = vpop.f32.mrb[15].mxu1 }
 0x102   : > { %v535_v18 = vmul.f32 0.1, %v445_v8  ;;  %v551_v23 = vmul.f32 0.1, %v509_v13  ;;  %v538_v24 = vmul.f32 0.1, %v456_v14  ;;  %v512_v25 = vadd.f32 %v1182_v22, %v511_v21 }
 0x103   : > { %1005 = vst [vmem:[%s1197_s26 + $0x60] sm:$0xff] %v977_v11   ;;  %v554_v26 = vmul.f32 0.1, %v520_v19  ;;  %v536_v27 = vmul.f32 0.1, %v448_v20  ;;  %v569_v28 = vmax.f32 %v453_v2, %v537_v12  ;;  %v585_v31 = vmax.f32 %v517_v7, %v553_v17 }
 0x104   : > { %v570_v29 = vmax.f32 %v456_v14, %v538_v24  ;;  %v552_v30 = vmul.f32 0.1, %v512_v25  ;;  %v567_v32 = vmax.f32 %v445_v8, %v535_v18  ;;  %v583_v35 = vmax.f32 %v509_v13, %v551_v23 }
 0x105   : > { %v586_v33 = vmax.f32 %v520_v19, %v554_v26  ;;  %v568_v34 = vmax.f32 %v448_v20, %v536_v27 }
 0x106   : > { %v952_v36 = vpack.c.bf16 %v570_v29, %v569_v28  ;;  %v584_v37 = vmax.f32 %v512_v25, %v552_v30 }
 0x107   : > { %v992_v38 = vpack.c.bf16 %v586_v33, %v585_v31  ;;  %v947_v39 = vpack.c.bf16 %v568_v34, %v567_v32 }
 0x108   : > { %1000 = vst [vmem:[%s1197_s26 + $0x38] sm:$0xff] %v952_v36   ;;  %v987_v40 = vpack.c.bf16 %v584_v37, %v583_v35 }
 0x109   : > { %1008 = vst [vmem:[%s1197_s26 + $0x78] sm:$0xff] %v992_v38   ;;  %999 = vst [vmem:[%s1197_s26 + $0x30] sm:$0xff] %v947_v39  }
 0x10a   : > { %1007 = vst [vmem:[%s1197_s26 + $0x70] sm:$0xff] %v987_v40  }
 0x10b PF: > { %s13_s12 = sadd.s32 1, %s1100_s12  }
 0x10c   : > { %p10_p4 = scmp.ge.s32.totalorder %s13_s12, 4  }
 0x10e   :  { %12 = sbr.rel (!%p10_p4) target bundleno = 1 (0x1), region = 62 }

// kernel: basic_conv_encoder.5
= control target key start
LH: loop header
LB: loop body
LE: loop exit
PB: predicated region body
PF: predicated region fallthrough
CT: control target
= control target key end

     0   :  { %s2772_s12 = smov 0   ;;  %s3088_s0 = inlined_call_operand.vmem [shape: bf16[2,4,9,9,64], index: 0, kind: input, shape index: {}]   ;;  %s3089_s1 = inlined_call_operand.vmem [shape: bf16[9,64,128], index: 1, kind: input, shape index: {}]   ;;  %s3090_s2 = inlined_call_operand.vmem [shape: f32[1,128], index: 2, kind: input, shape index: {}]   ;;  %s3091_s3 = inlined_call_operand.vmem [shape: bf16[2,64,128], index: 3, kind: output, shape index: {}]  }
   0x1 LB: > { %s2092_s13 = sadd.s32 4294967295, %s2750_s12   ;;  %p2096_p0 = scmp.ge.s32.totalorder %s2750_s12, 1  ;;  %s2750_s12 = sphi %s2772_s12, %s13_s12  }
   0x2   : > { %p137_p1 = scmp.lt.s32.totalorder %s2750_s12, 3 }
   0x4   : > { %p138_p2 = pnand %p2096_p0, %p137_p1 }
   0x5   : > { %v2684_v0 = vld [vmem:[%s3089_s1] sm:$0xff] (!%p138_p2)   ;;  %p161_p3 = scmp.lt.s32.totalorder (!%p138_p2), %s2092_s13, 1  ;;  %v2686_v2 = vld [vmem:[%s3089_s1 + $0x8] sm:$0xff] (!%p138_p2)   ;;  %v2688_v4 = vld [vmem:[%s3089_s1 + $0x10] sm:$0xff] (!%p138_p2)   ;;  %vm232_vm0 = vcmask (!%p138_p2), 523264  }
   0x6   : > { %141 = sbr.rel (%p138_p2) target bundleno = 325 (0x145), region = 32  ;;  %v2685_v1 = vld [vmem:[%s3089_s1 + $0x80] sm:$0xff] (!%p138_p2)   ;;  %2459 = vmatprep.subr.bf16.mxu1 (!%p138_p2), %v2684_v0  ;;  %v2687_v3 = vld [vmem:[%s3089_s1 + $0x88] sm:$0xff] (!%p138_p2)   ;;  %v2689_v5 = vld [vmem:[%s3089_s1 + $0x90] sm:$0xff] (!%p138_p2)   ;;  %vm497_vm1 = vsmask.f32 (!%p138_p2), 3328 }
   0x7   : > { %2523 = vmatprep.subr.bf16.mxu0 (!%p138_p2), %v2685_v1  ;;  %2460 = vmatpush3.bf16.msra.mxu1 (!%p138_p2), %v2684_v0  ;;  %v2690_v6 = vld [vmem:[%s3089_s1 + $0x18] sm:$0xff] (!%p138_p2)   ;;  %v2695_v11 = vld [vmem:[%s3089_s1 + $0x20] sm:$0xff] (!%p138_p2)   ;;  %v2698_v14 = vld [vmem:[%s3089_s1 + $0x28] sm:$0xff] (!%p138_p2)   ;;  %vm498_vm2 = vsmask.f32 (!%p138_p2), 7440 }
   0x8   : > { %2524 = vmatpush3.bf16.msra.mxu0 (!%p138_p2), %v2685_v1  ;;  %2461 = vmatprep.subr.bf16.mxu1 (!%p138_p2), %v2686_v2  ;;  %v2691_v7 = vld [vmem:[%s3089_s1 + $0x98] sm:$0xff] (!%p138_p2)   ;;  %v2697_v12 = vld [vmem:[%s3089_s1 + $0xa0] sm:$0xff] (!%p138_p2)   ;;  %v2699_v15 = vld [vmem:[%s3089_s1 + $0xa8] sm:$0xff] (!%p138_p2)  }
   0x9   : > { %2525 = vmatprep.subr.bf16.mxu0 (!%p138_p2), %v2687_v3  ;;  %v2703_v19 = vld [vmem:[%s3089_s1 + $0x30] sm:$0xff] (!%p138_p2)   ;;  %v2706_v22 = vld [vmem:[%s3089_s1 + $0x38] sm:$0xff] (!%p138_p2)   ;;  %v2710_v37 = vld [vmem:[%s3089_s1 + $0x40] sm:$0xff] (!%p138_p2)  }
   0xa   : > { %v2705_v21 = vld [vmem:[%s3089_s1 + $0xb0] sm:$0xff] (!%p138_p2)   ;;  %v2707_v23 = vld [vmem:[%s3089_s1 + $0xb8] sm:$0xff] (!%p138_p2)   ;;  %vm2863_vm3 = vmor (!%p138_p2), %vm497_vm1, %vm498_vm2 }
   0xb   : > { %2462 = vmatpush3.bf16.msra.mxu1 (!%p138_p2), %v2686_v2  ;;  %v2870_v42 = vld [vmem:[%s3089_s1 + $0xc0] sm:$0xff] (!%p138_p2)   ;;  %v2712_v46 = vld [vmem:[%s3089_s1 + $0x48] sm:$0xff] (!%p138_p2)   ;;  %v2716_v2 = vld [vmem:[%s3089_s1 + $0x50] sm:$0xff] (!%p138_p2)  }
   0xc   : > { %2526 = vmatpush3.bf16.msra.mxu0 (!%p138_p2), %v2687_v3  ;;  %2463 = vmatprep.subr.bf16.mxu1 (!%p138_p2), %v2688_v4 }
   0xd   : > { %s3095_s13 = smov (!%p161_p3, %s2092_s13), 1  ;;  %2527 = vmatprep.subr.bf16.mxu0 %v2689_v5 }
   0xe   : > { %s2675_s24 = smul.u32 288, %s3095_s13  ;;  %s2355_s18 = sshll.u32 %s3095_s13, 5 }
   0xf   : > { %2464 = vmatpush3.bf16.msra.mxu1 %v2688_v4  ;;  %s170_s21 = scalar_lea.vmem %s3091_s3, %s2355_s18 }
  0x10   : > { %s2807_s4 = scalar_lea.vmem %s3088_s0, %s2675_s24  ;;  %2528 = vmatpush3.bf16.msra.mxu0 %v2689_v5  ;;  %2465 = vmatprep.subr.bf16.mxu1 %v2690_v6 }
  0x11   : > { %v2692_v8 = vld [vmem:[%s2807_s4] ss:$8 sps:$4 sm:$0xff]   ;;  %v2694_v10 = vld [vmem:[%s2807_s4 + $0x10] ss:$8 sps:$4 sm:$0xff]   ;;  %2529 = vmatprep.subr.bf16.mxu0 %v2691_v7  ;;  %v2217_v26 = vld [vmem:[%s2807_s4 + $0x94] sm:$0x1] }
  0x12   : > { %v2693_v9 = vld [vmem:[%s2807_s4 + $0xd8] ss:$8 sps:$4 sm:$0xff]   ;;  %2467 = vmatprep.mubr.msk.bf16.mxu1 %vm232_vm0, %v2692_v8  ;;  %v2696_v13 = vld [vmem:[%s2807_s4 + $0xe8] ss:$8 sps:$4 sm:$0xff]   ;;  %v2219_v30 = vld [vmem:[%s2807_s4 + $0x9c] sm:$0x1] }
  0x13   : > { %2531 = vmatprep.mubr.msk.bf16.mxu0 %vm232_vm0, %v2693_v9  ;;  %2466 = vmatpush3.bf16.msra.mxu1 %v2690_v6  ;;  %v2700_v16 = vld [vmem:[%s2807_s4 + $0x20] ss:$8 sps:$4 sm:$0xff]   ;;  %v2702_v18 = vld [vmem:[%s2807_s4 + $0x30] ss:$8 sps:$4 sm:$0xff]   ;;  %v1110_v31 = vshll.u32 %v2217_v26, 16  ;;  %v1124_v36 = vshll.u32 %v2219_v30, 16 }
  0x14   : > { %2530 = vmatpush3.bf16.msra.mxu0 %v2691_v7  ;;  %2475 = vmatprep.subr.bf16.mxu1 %v2695_v11  ;;  %v2701_v17 = vld [vmem:[%s2807_s4 + $0xf8] ss:$8 sps:$4 sm:$0xff]   ;;  %v2704_v20 = vld [vmem:[%s2807_s4 + $0x108] ss:$8 sps:$4 sm:$0xff]   ;;  %v2221_v49 = vld [vmem:[%s2807_s4 + $0xa4] sm:$0x1] }
  0x15   : > { %2539 = vmatprep.subr.bf16.mxu0 %v2697_v12  ;;  %v2708_v24 = vld [vmem:[%s2807_s4 + $0x48] ss:$8 sps:$4 sm:$0xff]   ;;  %v2218_v27 = vld [vmem:[%s2807_s4 + $0x98] sm:$0xf]  ;;  %v1112_v39 = vrot.slane %v1110_v31, 5  ;;  %v1126_v44 = vrot.slane %v1124_v36, 5 }
  0x16   : > { %2468 = vmatmul.mubr.msk.bf16.vlgmr.msra.gmra.mrb[0].mxu1 %vm232_vm0, %v2694_v10  ;;  %v2216_v25 = vld [vmem:[%s2807_s4 + $0x90] sm:$0xf]  ;;  %v1115_v32 = vshrl.u32 %v2218_v27, 16  ;;  %v1118_v33 = vshll.u32 %v2218_v27, 16  ;;  %v2709_v45 = vld [vmem:[%s2807_s4 + $0x58] ss:$8 sps:$4 sm:$0xff]  }
  0x17   : > { %2532 = vmatmul.mubr.msk.bf16.vlgmr.msra.gmra.mrb[0].mxu0 %vm232_vm0, %v2696_v13  ;;  %2476 = vmatpush3.bf16.msra.mxu1 %v2695_v11  ;;  %v1101_v28 = vshrl.u32 %v2216_v25, 16  ;;  %v1104_v29 = vshll.u32 %v2216_v25, 16  ;;  %v2220_v48 = vld [vmem:[%s2807_s4 + $0xa0] sm:$0xf]  ;;  %v2222_v51 = vld [vmem:[%s2807_s4 + $0xa8] sm:$0xf] }
  0x18   : > { %2540 = vmatpush3.bf16.msra.mxu0 %v2697_v12  ;;  %2477 = vmatprep.subr.bf16.mxu1 %v2698_v14  ;;  %v1117_v40 = vrot.slane %v1115_v32, 4  ;;  %v1120_v41 = vrot.slane %v1118_v33, 5  ;;  %v2223_v52 = vld [vmem:[%s2807_s4 + $0xac] sm:$0x1]  ;;  %v1129_v53 = vshrl.u32 %v2220_v48, 16  ;;  %v1132_v55 = vshll.u32 %v2220_v48, 16 }
  0x19   : > { %2541 = vmatprep.subr.bf16.mxu0 %v2699_v15  ;;  %2471 = vmatprep.mubr.msk.bf16.mxu1 %vm232_vm0, %v2700_v16  ;;  %v1103_v34 = vrot.slane %v1101_v28, 4  ;;  %v1106_v35 = vrot.slane %v1104_v29, 5  ;;  %v1138_v56 = vshll.u32 %v2221_v49, 16  ;;  %v1143_v57 = vshrl.u32 %v2222_v51, 16  ;;  %v2714_v8 = vld [vmem:[%s2807_s4 + $0x68] ss:$8 sps:$4 sm:$0xff]  }
  0x1a   : > { %2535 = vmatprep.mubr.msk.bf16.mxu0 %vm232_vm0, %v2701_v17  ;;  %v1121_v47 = vor.u32 %v1120_v41, %v1117_v40  ;;  %v1131_v59 = vrot.slane %v1129_v53, 4  ;;  %v1146_v60 = vshll.u32 %v2222_v51, 16  ;;  %v1152_v61 = vshll.u32 %v2223_v52, 16  ;;  %v2224_v9 = vld [vmem:[%s2807_s4 + $0xb0] sm:$0xf]  ;;  %v2713_v25 = vld [vmem:[%s3089_s1 + $0xc8] sm:$0xff]  }
  0x1b   : > { %2478 = vmatpush3.bf16.msra.mxu1 %v2698_v14  ;;  %v1107_v43 = vor.u32 %v1106_v35, %v1103_v34  ;;  %v1134_v63 = vrot.slane %v1132_v55, 5  ;;  %v1140_v0 = vrot.slane %v1138_v56, 5  ;;  %v1145_v1 = vrot.slane %v1143_v57, 4  ;;  %v2225_v10 = vld [vmem:[%s2807_s4 + $0xb4] sm:$0x1] }
  0x1c   : > { %2542 = vmatpush3.bf16.msra.mxu0 %v2699_v15  ;;  %2479 = vmatprep.subr.bf16.mxu1 %v2703_v19  ;;  %v1122_v54 = vrot.slane %v1121_v47, 4  ;;  %v1148_v4 = vrot.slane %v1146_v60, 5  ;;  %v1154_v5 = vrot.slane %v1152_v61, 5  ;;  %v2226_v12 = vld [vmem:[%s2807_s4 + $0xb8] sm:$0xf]  ;;  %v1157_v14 = vshrl.u32 %v2224_v9, 16 }
  0x1d   : > { %2543 = vmatprep.subr.bf16.mxu0 %v2705_v21  ;;  %v1108_v50 = vrot.slane %v1107_v43, 4  ;;  %v1135_v6 = vor.u32 %v1134_v63, %v1131_v59  ;;  %v2227_v13 = vld [vmem:[%s2807_s4 + $0xbc] sm:$0x1]  ;;  %v1160_v16 = vshll.u32 %v2224_v9, 16  ;;  %v1166_v17 = vshll.u32 %v2225_v10, 16 }
  0x1e   : > { %2472 = vmatmul.mubr.msk.bf16.gmra.mrb[4].mxu1 %vm232_vm0, %v2702_v18  ;;  %v1127_v62 = vsel %vm2863_vm3, %v1122_v54, %v1126_v44  ;;  %v1149_v7 = vor.u32 %v1148_v4, %v1145_v1  ;;  %v1171_v18 = vshrl.u32 %v2226_v12, 16  ;;  %v2715_v29 = vld [vmem:[%s2807_s4 + $0x78] ss:$8 sps:$4 sm:$0xff]   ;;  %v2229_v35 = vld [vmem:[%s2807_s4 + $0xc4] sm:$0x1]  ;;  %v2717_v44 = vld [vmem:[%s3089_s1 + $0xd0] sm:$0xff]  }
  0x1f   : > { %2536 = vmatmul.mubr.msk.bf16.gmra.mrb[4].mxu0 %vm232_vm0, %v2704_v20  ;;  %2480 = vmatpush3.bf16.msra.mxu1 %v2703_v19  ;;  %v1113_v58 = vsel %vm2863_vm3, %v1108_v50, %v1112_v39  ;;  %v1136_v11 = vrot.slane %v1135_v6, 4  ;;  %v1159_v20 = vrot.slane %v1157_v14, 4  ;;  %v1162_v26 = vrot.slane %v1160_v16, 5  ;;  %v2228_v34 = vld [vmem:[%s2807_s4 + $0xc0] sm:$0xf]  ;;  %v2719_v59 = vld [vmem:[%s3089_s1 + $0xd8] sm:$0xff]  }
  0x20   : > { %2544 = vmatpush3.bf16.msra.mxu0 %v2705_v21  ;;  %2481 = vmatprep.subr.bf16.mxu1 %v2706_v22  ;;  %v2240_v3 = vcombine.low %v1113_v58, %v1127_v62  ;;  %v1150_v15 = vrot.slane %v1149_v7, 4  ;;  %v1174_v21 = vshll.u32 %v2226_v12, 16  ;;  %v1168_v27 = vrot.slane %v1166_v17, 5  ;;  %v2230_v36 = vld [vmem:[%s2807_s4 + $0xc8] sm:$0xf] }
  0x21   : > { %2545 = vmatprep.subr.bf16.mxu0 %v2707_v23  ;;  %2483 = vmatprep.mubr.msk.bf16.mxu1 %vm232_vm0, %v2708_v24  ;;  %v1141_v19 = vsel %vm2863_vm3, %v1136_v11, %v1140_v0  ;;  %v1173_v28 = vrot.slane %v1171_v18, 4  ;;  %v1163_v33 = vor.u32 %v1162_v26, %v1159_v20  ;;  %v2231_v39 = vld [vmem:[%s2807_s4 + $0xcc] sm:$0x1]  ;;  %v1185_v40 = vshrl.u32 %v2228_v34, 16  ;;  %v481_v62 = vld [vmem:[%s2807_s4] sm:$0xf] }
  0x22   : > { %2547 = vmatprep.mubr.msk.bf16.mxu0 %vm232_vm0, %v2240_v3  ;;  %v1155_v24 = vsel %vm2863_vm3, %v1150_v15, %v1154_v5  ;;  %v1176_v31 = vrot.slane %v1174_v21, 5  ;;  %v1188_v41 = vshll.u32 %v2228_v34, 16  ;;  %v1194_v43 = vshll.u32 %v2229_v35, 16  ;;  %v482_v63 = vld [vmem:[%s2807_s4 + $0x4] sm:$0x1] }
  0x23   : > { %2482 = vmatpush3.bf16.msra.mxu1 %v2706_v22  ;;  %v1180_v22 = vshll.u32 %v2227_v13, 16  ;;  %v2241_v30 = vcombine.low %v1141_v19, %v1155_v24  ;;  %v1199_v47 = vshrl.u32 %v2230_v36, 16  ;;  %v1202_v48 = vshll.u32 %v2230_v36, 16  ;;  %v483_v0 = vld [vmem:[%s2807_s4 + $0x8] sm:$0xf]  ;;  %v2723_v19 = vld [vmem:[%s3089_s1 + $0xe0] sm:$0xff]  }
  0x24   : > { %2546 = vmatpush3.bf16.msra.mxu0 %v2707_v23  ;;  %2491 = vmatprep.subr.bf16.mxu1 %v2710_v37  ;;  %v2718_v23 = vld [vmem:[%s3089_s1 + $0x58] sm:$0xff]   ;;  %v1208_v49 = vshll.u32 %v2231_v39, 16  ;;  %v1187_v51 = vrot.slane %v1185_v40, 4  ;;  %v1190_v52 = vrot.slane %v1188_v41, 5  ;;  %v1196_v53 = vrot.slane %v1194_v43, 5 }
  0x25   : > { %2555 = vmatprep.subr.bf16.mxu0 %v2870_v42  ;;  %v1182_v32 = vrot.slane %v1180_v22, 5  ;;  %v1201_v55 = vrot.slane %v1199_v47, 4  ;;  %v1204_v56 = vrot.slane %v1202_v48, 5  ;;  %v501_v3 = vshrl.u32 %v481_v62, 16  ;;  %v2720_v18 = vld [vmem:[%s2807_s4 + $0x8] ss:$8 sps:$4 sm:$0xff]  }
  0x26   : > { %2484 = vmatmul.mubr.msk.bf16.vlgmr.msra.gmra.mrb[0].mxu1 %vm232_vm0, %v2709_v45  ;;  %v2919_v45 = vld [vmem:[%s3089_s1 + $0x60] sm:$0xff]   ;;  %v1191_v58 = vor.u32 %v1190_v52, %v1187_v51  ;;  %v504_v4 = vshll.u32 %v481_v62, 16  ;;  %v510_v5 = vshll.u32 %v482_v63, 16  ;;  %v515_v7 = vshrl.u32 %v483_v0, 16  ;;  %v485_v22 = vld [vmem:[%s2807_s4 + $0x10] sm:$0xf] }
  0x27   : > { %2492 = vmatpush3.bf16.msra.mxu1 %v2710_v37  ;;  %2487 = vmatprep.mubr.msk.bf16.mxu1 %vm232_vm0, %v2714_v8  ;;  %v1177_v37 = vor.u32 %v1176_v31, %v1173_v28  ;;  %v1205_v61 = vor.u32 %v1204_v56, %v1201_v55  ;;  %v518_v8 = vshll.u32 %v483_v0, 16  ;;  %v503_v11 = vrot.slane %v501_v3, 4  ;;  %v487_v24 = vld [vmem:[%s2807_s4 + $0x18] sm:$0xf]  ;;  %v488_v26 = vld [vmem:[%s2807_s4 + $0x1c] sm:$0x1] }
  0x28   : > { %2493 = vmatprep.subr.bf16.mxu1 %v2712_v46  ;;  %2548 = vmatmul.mubr.msk.bf16.vlgmr.msra.gmra.mrb[0].mxu0 %vm232_vm0, %v2241_v30  ;;  %v1192_v1 = vrot.slane %v1191_v58, 4  ;;  %v506_v12 = vrot.slane %v504_v4, 5  ;;  %v512_v13 = vrot.slane %v510_v5, 5  ;;  %v517_v15 = vrot.slane %v515_v7, 4  ;;  %v2722_v47 = vld [vmem:[%s2807_s4 + $0x18] ss:$8 sps:$4 sm:$0xff]  }
  0x29   : > { %2556 = vmatpush3.bf16.msra.mxu0 %v2870_v42  ;;  %v1178_v50 = vrot.slane %v1177_v37, 4  ;;  %v1210_v42 = vrot.slane %v1208_v49, 5  ;;  %v1206_v6 = vrot.slane %v1205_v61, 4  ;;  %v520_v16 = vrot.slane %v518_v8, 5  ;;  %v2725_v52 = vld [vmem:[%s3089_s1 + $0xe8] sm:$0xff]   ;;  %v2729_v7 = vld [vmem:[%s3089_s1 + $0xf0] sm:$0xff]  }
  0x2a   : > { %2557 = vmatprep.subr.bf16.mxu0 %v2713_v25  ;;  %v1197_v10 = vsel %vm2863_vm3, %v1192_v1, %v1196_v53  ;;  %v507_v21 = vor.u32 %v506_v12, %v503_v11  ;;  %v532_v28 = vshll.u32 %v485_v22, 16  ;;  %v543_v31 = vshrl.u32 %v487_v24, 16  ;;  %v489_v53 = vld [vmem:[%s2807_s4 + $0x20] sm:$0xf]  ;;  %v491_v56 = vld [vmem:[%s2807_s4 + $0x28] sm:$0xf] }
  0x2b   : > { %2494 = vmatpush3.bf16.msra.mxu1 %v2712_v46  ;;  %v1164_v46 = vrot.slane %v1163_v33, 4  ;;  %v1183_v57 = vsel %vm2863_vm3, %v1178_v50, %v1182_v32  ;;  %v1211_v14 = vsel %vm2863_vm3, %v1206_v6, %v1210_v42  ;;  %v546_v32 = vshll.u32 %v487_v24, 16  ;;  %v492_v42 = vld [vmem:[%s2807_s4 + $0x2c] sm:$0x1]  ;;  %v2726_v6 = vld [vmem:[%s2807_s4 + $0x28] ss:$8 sps:$4 sm:$0xff]  }
  0x2c   : > { %2495 = vmatprep.subr.bf16.mxu1 %v2716_v2  ;;  %v2243_v20 = vcombine.low %v1197_v10, %v1211_v14  ;;  %v508_v30 = vrot.slane %v507_v21, 4  ;;  %v552_v33 = vshll.u32 %v488_v26, 16  ;;  %v534_v36 = vrot.slane %v532_v28, 5  ;;  %v2724_v0 = vld [vmem:[%s3089_s1 + $0x68] sm:$0xff]   ;;  %v493_v11 = vld [vmem:[%s2807_s4 + $0x30] sm:$0xf] }
  0x2d   : > { %v1169_v54 = vsel %vm2863_vm3, %v1164_v46, %v1168_v27  ;;  %2558 = vmatpush3.bf16.msra.mxu0 %v2713_v25  ;;  %v521_v25 = vor.u32 %v520_v16, %v517_v15  ;;  %v529_v27 = vshrl.u32 %v485_v22, 16  ;;  %v545_v40 = vrot.slane %v543_v31, 4  ;;  %v494_v12 = vld [vmem:[%s2807_s4 + $0x34] sm:$0x1]  ;;  %v495_v15 = vld [vmem:[%s2807_s4 + $0x38] sm:$0xf] }
  0x2e   : > { %2488 = vmatmul.mubr.msk.bf16.gmra.mrb[4].mxu1 %vm232_vm0, %v2715_v29  ;;  %v2242_v60 = vcombine.low %v1169_v54, %v1183_v57  ;;  %2559 = vmatprep.subr.bf16.mxu0 %v2717_v44  ;;  %v513_v39 = vsel %vm2863_vm3, %v508_v30, %v512_v13  ;;  %v548_v41 = vrot.slane %v546_v32, 5  ;;  %v554_v43 = vrot.slane %v552_v33, 5  ;;  %v490_v54 = vld [vmem:[%s2807_s4 + $0x24] sm:$0x1]  ;;  %v2727_v13 = vld [vmem:[%s3089_s1 + $0x70] sm:$0xff]   ;;  %v2730_v30 = vld [vmem:[%s3089_s1 + $0x78] sm:$0xff]  }
  0x2f   : > { %2496 = vmatpush3.bf16.msra.mxu1 %v2716_v2  ;;  %v484_v2 = vld [vmem:[%s2807_s4 + $0xc] sm:$0x1]  ;;  %v522_v34 = vrot.slane %v521_v25, 4  ;;  %v531_v35 = vrot.slane %v529_v27, 4  ;;  %v557_v57 = vshrl.u32 %v489_v53, 16  ;;  %v560_v58 = vshll.u32 %v489_v53, 16 }
  0x30   : > { %2497 = vmatprep.subr.bf16.mxu1 %v2718_v23  ;;  %2551 = vmatprep.mubr.msk.bf16.mxu0 %vm232_vm0, %v2242_v60  ;;  %v524_v9 = vshll.u32 %v484_v2, 16  ;;  %v549_v49 = vor.u32 %v548_v41, %v545_v40  ;;  %v566_v60 = vshll.u32 %v490_v54, 16  ;;  %v571_v61 = vshrl.u32 %v491_v56, 16  ;;  %v496_v16 = vld [vmem:[%s2807_s4 + $0x3c] sm:$0x1]  ;;  %v2736_v40 = vld [vmem:[%s3089_s1 + $0x100] sm:$0xff]  }
  0x31   : > { %2560 = vmatpush3.bf16.msra.mxu0 %v2717_v44  ;;  %v535_v46 = vor.u32 %v534_v36, %v531_v35  ;;  %v574_v62 = vshll.u32 %v491_v56, 16  ;;  %v559_v1 = vrot.slane %v557_v57, 4  ;;  %v562_v2 = vrot.slane %v560_v58, 5  ;;  %v2728_v35 = vld [vmem:[%s2807_s4 + $0x38] ss:$8 sps:$4 sm:$0xff]   ;;  %v3019_v53 = vld [vmem:[%s3089_s1 + $0x110] sm:$0xff]  }
  0x32   : > { %v526_v17 = vrot.slane %v524_v9, 5  ;;  %2561 = vmatprep.subr.bf16.mxu0 %v2719_v59  ;;  %2552 = vmatmul.mubr.msk.bf16.gmra.mrb[4].mxu0 %vm232_vm0, %v2243_v20  ;;  %v550_v51 = vrot.slane %v549_v49, 4  ;;  %v580_v3 = vshll.u32 %v492_v42, 16  ;;  %v573_v4 = vrot.slane %v571_v61, 4  ;;  %v2737_v49 = vld [vmem:[%s3089_s1 + $0x108] sm:$0xff]   ;;  %v3027_v56 = vld [vmem:[%s3089_s1 + $0x118] sm:$0xff]  }
  0x33   : > { %2498 = vmatpush3.bf16.msra.mxu1 %v2718_v23  ;;  %v486_v23 = vld [vmem:[%s2807_s4 + $0x14] sm:$0x1]  ;;  %2563 = vmatprep.mubr.msk.bf16.mxu0 %vm232_vm0, %v2720_v18  ;;  %v536_v50 = vrot.slane %v535_v46, 4  ;;  %v576_v5 = vrot.slane %v574_v62, 5  ;;  %v563_v8 = vor.u32 %v562_v2, %v559_v1  ;;  %v568_v9 = vrot.slane %v566_v60, 5 }
  0x34   : > { %2507 = vmatprep.subr.bf16.mxu1 %v2919_v45  ;;  %v538_v29 = vshll.u32 %v486_v23, 16  ;;  %v527_v44 = vsel %vm2863_vm3, %v522_v34, %v526_v17  ;;  %v582_v10 = vrot.slane %v580_v3, 5  ;;  %v585_v17 = vshrl.u32 %v493_v11, 16  ;;  %v2738_v54 = vld [vmem:[%s2807_s4 + $0xb0] ss:$8 sps:$4 sm:$0xff]  }
  0x35   : > { %2562 = vmatpush3.bf16.msra.mxu0 %v2719_v59  ;;  %v2148_v48 = vcombine.low %v513_v39, %v527_v44  ;;  %v555_v59 = vsel %vm2863_vm3, %v550_v51, %v554_v43  ;;  %v577_v14 = vor.u32 %v576_v5, %v573_v4  ;;  %v588_v18 = vshll.u32 %v493_v11, 16  ;;  %v2732_v44 = vld [vmem:[%s2807_s4 + $0x90] ss:$8 sps:$4 sm:$0xff]   ;;  %v2734_v51 = vld [vmem:[%s2807_s4 + $0xa0] ss:$8 sps:$4 sm:$0xff]  }
  0x36   : > { %v540_v37 = vrot.slane %v538_v29, 5  ;;  %2571 = vmatprep.subr.bf16.mxu0 %v2723_v19  ;;  %v564_v20 = vrot.slane %v563_v8, 4  ;;  %v594_v21 = vshll.u32 %v494_v12, 16  ;;  %v599_v22 = vshrl.u32 %v495_v15, 16  ;;  %v2308_v42 = vld [vmem:[%s2807_s4 + $0x8] sm:$0xf] }
  0x37   : > { %2499 = vmatprep.mubr.msk.bf16.mxu1 %vm232_vm0, %v2148_v48  ;;  %v602_v23 = vshll.u32 %v495_v15, 16  ;;  %v578_v24 = vrot.slane %v577_v14, 4  ;;  %v590_v25 = vrot.slane %v588_v18, 5  ;;  %v608_v26 = vshll.u32 %v496_v16, 16  ;;  %v2309_v57 = vld [vmem:[%s2807_s4 + $0xc] sm:$0x1] }
  0x38   : > { %v541_v55 = vsel %vm2863_vm3, %v536_v50, %v540_v37  ;;  %v569_v27 = vsel %vm2863_vm3, %v564_v20, %v568_v9  ;;  %v601_v28 = vrot.slane %v599_v22, 4  ;;  %v596_v33 = vrot.slane %v594_v21, 5  ;;  %v2735_v50 = vld [vmem:[%s2807_s4 + $0x60] ss:$8 sps:$4 sm:$0xff]   ;;  %v2310_v58 = vld [vmem:[%s2807_s4 + $0x10] sm:$0xf] }
  0x39   : > { %v2149_v63 = vcombine.low %v541_v55, %v555_v59  ;;  %v604_v29 = vrot.slane %v602_v23, 5  ;;  %v583_v31 = vsel %vm2863_vm3, %v578_v24, %v582_v10  ;;  %v610_v34 = vrot.slane %v608_v26, 5  ;;  %v2741_v55 = vld [vmem:[%s2807_s4 + $0x80] ss:$8 sps:$4 sm:$0xff]   ;;  %v2311_v59 = vld [vmem:[%s2807_s4 + $0x14] sm:$0x1] }
  0x3a   : > { %2564 = vmatmul.mubr.msk.bf16.vlgmr.msra.gmra.mrb[0].mxu0 %vm232_vm0, %v2722_v47  ;;  %v2150_v36 = vcombine.low %v569_v27, %v583_v31  ;;  %v2733_v47 = vld [vmem:[%s2807_s4 + $0x50] ss:$8 sps:$4 sm:$0xff]   ;;  %v1701_v60 = vshrl.u32 %v2308_v42, 16  ;;  %v1704_v61 = vshll.u32 %v2308_v42, 16  ;;  %v1710_v62 = vshll.u32 %v2309_v57, 16 }
  0x3b   : > { %2572 = vmatpush3.bf16.msra.mxu0 %v2723_v19  ;;  %2500 = vmatmul.mubr.msk.bf16.vlgmr.msra.gmra.mrb[0].mxu1 %vm232_vm0, %v2149_v63  ;;  %v2731_v19 = vld [vmem:[%s3089_s1 + $0xf8] sm:$0xff]   ;;  %v605_v37 = vor.u32 %v604_v29, %v601_v28  ;;  %v1715_v63 = vshrl.u32 %v2310_v58, 16  ;;  %v1724_v1 = vshll.u32 %v2311_v59, 16  ;;  %v2316_v2 = vld [vmem:[%s2807_s4 + $0x28] sm:$0xf] }
  0x3c   : > { %2573 = vmatprep.subr.bf16.mxu0 %v2725_v52  ;;  %2508 = vmatpush3.bf16.msra.mxu1 %v2919_v45  ;;  %v587_v45 = vrot.slane %v585_v17, 4  ;;  %v1703_v3 = vrot.slane %v1701_v60, 4  ;;  %v1706_v4 = vrot.slane %v1704_v61, 5  ;;  %v2317_v5 = vld [vmem:[%s2807_s4 + $0x2c] sm:$0x1]  ;;  %v1712_v8 = vrot.slane %v1710_v62, 5 }
  0x3d   : > { %2567 = vmatprep.mubr.msk.bf16.mxu0 %vm232_vm0, %v2726_v6  ;;  %2509 = vmatprep.subr.bf16.mxu1 %v2724_v0  ;;  %v606_v41 = vrot.slane %v605_v37, 4  ;;  %v2318_v6 = vld [vmem:[%s2807_s4 + $0x30] sm:$0xf]  ;;  %v1717_v9 = vrot.slane %v1715_v63, 4  ;;  %v1726_v11 = vrot.slane %v1724_v1, 5  ;;  %v1757_v14 = vshrl.u32 %v2316_v2, 16 }
  0x3e   : > { %v591_v32 = vor.u32 %v590_v25, %v587_v45  ;;  %2503 = vmatprep.mubr.msk.bf16.mxu1 %vm232_vm0, %v2150_v36  ;;  %v2319_v12 = vld [vmem:[%s2807_s4 + $0x34] sm:$0x1]  ;;  %v1760_v15 = vshll.u32 %v2316_v2, 16  ;;  %v1766_v16 = vshll.u32 %v2317_v5, 16  ;;  %v2312_v17 = vld [vmem:[%s2807_s4 + $0x18] sm:$0xf] }
  0x3f   : > { %2574 = vmatpush3.bf16.msra.mxu0 %v2725_v52  ;;  %v611_v46 = vsel %vm2863_vm3, %v606_v41, %v610_v34  ;;  %v2739_v52 = vld [vmem:[%s2807_s4 + $0x70] ss:$8 sps:$4 sm:$0xff]   ;;  %v1774_v20 = vshll.u32 %v2318_v6, 16  ;;  %v1780_v21 = vshll.u32 %v2319_v12, 16  ;;  %v2313_v22 = vld [vmem:[%s2807_s4 + $0x1c] sm:$0x1] }
  0x40   : > { %2575 = vmatprep.subr.bf16.mxu0 %v2729_v7  ;;  %2510 = vmatpush3.bf16.msra.mxu1 %v2724_v0  ;;  %v592_v39 = vrot.slane %v591_v32, 4  ;;  %v1718_v0 = vshll.u32 %v2310_v58, 16  ;;  %v1759_v24 = vrot.slane %v1757_v14, 4  ;;  %v1762_v45 = vrot.slane %v1760_v15, 5  ;;  %v2314_v26 = vld [vmem:[%s2807_s4 + $0x20] sm:$0xf] }
  0x41   : > { %2511 = vmatprep.subr.bf16.mxu1 %v2727_v13  ;;  %v1768_v25 = vrot.slane %v1766_v16, 5  ;;  %v1776_v29 = vrot.slane %v1774_v20, 5  ;;  %v1732_v34 = vshll.u32 %v2312_v17, 16  ;;  %v2315_v37 = vld [vmem:[%s2807_s4 + $0x24] sm:$0x1] }
  0x42   : > { %2568 = vmatmul.mubr.msk.bf16.gmra.mrb[4].mxu0 %vm232_vm0, %v2728_v35  ;;  %v597_v43 = vsel %vm2863_vm3, %v592_v39, %v596_v33  ;;  %v1720_v10 = vrot.slane %v1718_v0, 5  ;;  %v1763_v32 = vor.u32 %v1762_v45, %v1759_v24  ;;  %v1729_v33 = vshrl.u32 %v2312_v17, 16  ;;  %v2320_v41 = vld [vmem:[%s2807_s4 + $0x38] sm:$0xf]  ;;  %v2322_v42 = vld [vmem:[%s2807_s4 + $0x40] sm:$0xf] }
  0x43   : > { %2576 = vmatpush3.bf16.msra.mxu0 %v2729_v7  ;;  %v2151_v48 = vcombine.low %v597_v43, %v611_v46  ;;  %2579 = vmatprep.mubr.msk.bf16.mxu0 %vm232_vm0, %v2733_v47  ;;  %v2740_v7 = vld [vmem:[%s2807_s4 + $0xc0] ss:$8 sps:$4 sm:$0xff]   ;;  %v1738_v39 = vshll.u32 %v2313_v22, 16  ;;  %v1734_v47 = vrot.slane %v1732_v34, 5  ;;  %v2323_v60 = vld [vmem:[%s2807_s4 + $0x44] sm:$0x1] }
  0x44   : > { %2577 = vmatprep.subr.bf16.mxu0 %v2731_v19  ;;  %2512 = vmatpush3.bf16.msra.mxu1 %v2727_v13  ;;  %v1707_v13 = vor.u32 %v1706_v4, %v1703_v3  ;;  %v1721_v18 = vor.u32 %v1720_v10, %v1717_v9  ;;  %v1731_v46 = vrot.slane %v1729_v33, 4  ;;  %v1788_v61 = vshll.u32 %v2320_v41, 16 }
  0x45   : > { %2513 = vmatprep.subr.bf16.mxu1 %v2730_v30  ;;  %2504 = vmatmul.mubr.msk.bf16.gmra.mrb[4].mxu1 %vm232_vm0, %v2151_v48  ;;  %v1740_v58 = vrot.slane %v1738_v39, 5  ;;  %v1799_v5 = vshrl.u32 %v2322_v42, 16 }
  0x46   : > { %2515 = vmatprep.mubr.msk.bf16.mxu1 %vm232_vm0, %v2732_v44  ;;  %v1708_v23 = vrot.slane %v1707_v13, 4  ;;  %v1722_v27 = vrot.slane %v1721_v18, 4  ;;  %v1764_v44 = vrot.slane %v1763_v32, 4  ;;  %v1790_v4 = vrot.slane %v1788_v61, 5 }
  0x47   : > { %2578 = vmatpush3.bf16.msra.mxu0 %v2731_v19  ;;  %v1771_v19 = vshrl.u32 %v2318_v6, 16  ;;  %v1802_v6 = vshll.u32 %v2322_v42, 16 }
  0x48   : > { %2587 = vmatprep.subr.bf16.mxu0 %v2736_v40  ;;  %2514 = vmatpush3.bf16.msra.mxu1 %v2730_v30  ;;  %v1782_v30 = vrot.slane %v1780_v21, 5  ;;  %v1713_v31 = vsel %vm2863_vm3, %v1708_v23, %v1712_v8  ;;  %v1727_v35 = vsel %vm2863_vm3, %v1722_v27, %v1726_v11  ;;  %v1801_v11 = vrot.slane %v1799_v5, 4 }
  0x49   : > { %2603 = vmatprep.subr.bf16.mxu1 %v2736_v40  ;;  %v1773_v28 = vrot.slane %v1771_v19, 4  ;;  %v2332_v43 = vcombine.low %v1713_v31, %v1727_v35 }
  0x4a   : > { %2580 = vmatmul.mubr.msk.bf16.vlgmr.msra.gmra.mrb[0].mxu0 %vm232_vm0, %v2735_v50  ;;  %v1746_v50 = vshll.u32 %v2314_v26, 16 }
  0x4b   : > { %2588 = vmatpush3.bf16.msra.mxu0 %v2736_v40  ;;  %2583 = vmatprep.mubr.msk.bf16.mxu0 %vm232_vm0, %v2739_v52  ;;  %v1777_v36 = vor.u32 %v1776_v29, %v1773_v28  ;;  %v1769_v52 = vsel %vm2863_vm3, %v1764_v44, %v1768_v25 }
  0x4c   : > { %2589 = vmatprep.subr.bf16.mxu0 %v2737_v49  ;;  %v1748_v59 = vrot.slane %v1746_v50, 5 }
  0x4d   : > { %2516 = vmatmul.mubr.msk.bf16.vlgmr.msra.gmra.mrb[0].mxu1 %vm232_vm0, %v2734_v51  ;;  %v1778_v48 = vrot.slane %v1777_v36, 4  ;;  %v2321_v51 = vld [vmem:[%s2807_s4 + $0x3c] sm:$0x1] }
  0x4e   : > { %2607 = vmatpush3.bf16.msra.mxu1 %v2736_v40  ;;  %2519 = vmatprep.mubr.msk.bf16.mxu1 %vm232_vm0, %v2738_v54  ;;  %v1743_v40 = vshrl.u32 %v2314_v26, 16  ;;  %v1735_v54 = vor.u32 %v1734_v47, %v1731_v46  ;;  %v1794_v1 = vshll.u32 %v2321_v51, 16 }
  0x4f   : > { %2590 = vmatpush3.bf16.msra.mxu0 %v2737_v49  ;;  %2604 = vmatprep.subr.bf16.mxu1 %v2737_v49  ;;  %v1783_v57 = vsel %vm2863_vm3, %v1778_v48, %v1782_v30 }
  0x50   : > { %2591 = vmatprep.subr.bf16.mxu0 %v3019_v53  ;;  %v2334_v62 = vcombine.low %v1769_v52, %v1783_v57  ;;  %v1736_v63 = vrot.slane %v1735_v54, 4  ;;  %v1796_v12 = vrot.slane %v1794_v1, 5 }
  0x52   : > { %2584 = vmatmul.mubr.msk.bf16.gmra.mrb[4].mxu0 %vm232_vm0, %v2741_v55  ;;  %2608 = vmatpush3.bf16.msra.mxu1 %v2737_v49  ;;  %v1745_v49 = vrot.slane %v1743_v40, 4  ;;  %v1752_v55 = vshll.u32 %v2315_v37, 16  ;;  %v1741_v8 = vsel %vm2863_vm3, %v1736_v63, %v1740_v58  ;;  %v2344_v37 = vld [vmem:[%s3090_s2] ss:$0 sm:$0xff] }
  0x53   : > { %2592 = vmatpush3.bf16.msra.mxu0 %v3019_v53  ;;  %2605 = vmatprep.subr.bf16.mxu1 %v3019_v53 }
  0x54   : > { %2593 = vmatprep.subr.bf16.mxu0 %v3027_v56  ;;  %2595 = vmatprep.mubr.msk.bf16.mxu0 %vm232_vm0, %v2332_v43  ;;  %v1749_v2 = vor.u32 %v1748_v59, %v1745_v49  ;;  %v1754_v3 = vrot.slane %v1752_v55, 5 }
  0x55   : > { %2520 = vmatmul.mubr.msk.bf16.gmra.mrb[4].mxu1 %vm232_vm0, %v2740_v7  ;;  %v1808_v7 = vshll.u32 %v2323_v60, 16 }
  0x56   : > { %2609 = vmatpush3.bf16.msra.mxu1 %v3019_v53  ;;  %v1785_v53 = vshrl.u32 %v2320_v41, 16  ;;  %2599 = vmatprep.mubr.msk.bf16.mxu1 %vm232_vm0, %v2334_v62  ;;  %v1750_v9 = vrot.slane %v1749_v2, 4 }
  0x57   : > { %2594 = vmatpush3.bf16.msra.mxu0 %v3027_v56  ;;  %2606 = vmatprep.subr.bf16.mxu1 %v3027_v56  ;;  %v1810_v17 = vrot.slane %v1808_v7, 5 }
  0x58   : > { %v1787_v0 = vrot.slane %v1785_v53, 4  ;;  %v1755_v13 = vsel %vm2863_vm3, %v1750_v9, %v1754_v3 }
  0x59   : > { %v2333_v15 = vcombine.low %v1741_v8, %v1755_v13 }
  0x5a   : > { %2610 = vmatpush3.bf16.msra.mxu1 %v3027_v56  ;;  %v1791_v10 = vor.u32 %v1790_v4, %v1787_v0  ;;  %v1804_v56 = vrot.slane %v1802_v6, 5 }
  0x5b   : > { %2596 = vmatmul.mubr.msk.bf16.vlgmr.msra.gmra.mrb[0].mxu0 %vm232_vm0, %v2333_v15 }
  0x5c   : > { %v1792_v14 = vrot.slane %v1791_v10, 4  ;;  %v1805_v16 = vor.u32 %v1804_v56, %v1801_v11 }
  0x5e   : > { %v1797_v18 = vsel %vm2863_vm3, %v1792_v14, %v1796_v12  ;;  %v1806_v19 = vrot.slane %v1805_v16, 4 }
  0x60   : > { %v1811_v20 = vsel %vm2863_vm3, %v1806_v19, %v1810_v17 }
  0x61   : > { %v2335_v21 = vcombine.low %v1797_v18, %v1811_v20 }
  0x63   : > { %2600 = vmatmul.mubr.msk.bf16.vlgmr.msra.gmra.mrb[8].mxu1 %vm232_vm0, %v2335_v21 }
 0x120   : > { %v2517_v22 = vpop.f32.mrb[0].mxu1 }
 0x121   : > { %v866_v23 = vpop.f32.mrb[1].mxu1 }
 0x122   : > { %v2518_v24 = vpop.f32.mrb[2].mxu1 }
 0x123   : > { %v869_v25 = vpop.f32.mrb[3].mxu1 }
 0x125   : > { %v2585_v45 = vpop.f32.mrb[4].mxu0 }
 0x126   : > { %v1645_v26 = vpop.f32.mrb[5].mxu0 }
 0x127   : > { %v2586_v27 = vpop.f32.mrb[6].mxu0 }
 0x128   : > { %v1648_v28 = vpop.f32.mrb[7].mxu0  ;;  %v2521_v29 = vpop.f32.mrb[4].mxu1 }
 0x129   : > { %v2615_v30 = vadd.f32 %v2585_v45, %v2521_v29  ;;  %v882_v31 = vpop.f32.mrb[5].mxu1 }
 0x12a   : > { %v2617_v32 = vadd.f32 %v1645_v26, %v882_v31  ;;  %v2522_v33 = vpop.f32.mrb[6].mxu1 }
 0x12b   : > { %v2619_v34 = vadd.f32 %v2586_v27, %v2522_v33  ;;  %v885_v35 = vpop.f32.mrb[7].mxu1 }
 0x12c   : > { %v2621_v38 = vadd.f32 %v1648_v28, %v885_v35 }
 0x12e   : > { %v2597_v36 = vpop.f32.mrb[0].mxu0 }
 0x12f   : > { %v2611_v39 = vadd.f32 %v2597_v36, %v2517_v22  ;;  %v1903_v40 = vpop.f32.mrb[1].mxu0 }
 0x130   : > { %v2612_v41 = vadd.f32 %v1903_v40, %v866_v23  ;;  %v2598_v43 = vpop.f32.mrb[2].mxu0 }
 0x131   : > { %v1975_v44 = vadd.f32 %v2611_v39, %v2344_v37  ;;  %v2613_v46 = vadd.f32 %v2598_v43, %v2518_v24  ;;  %v1906_v47 = vpop.f32.mrb[3].mxu0 }
 0x132   : > { %v1973_v48 = vadd.f32 %v2612_v41, %v2344_v37  ;;  %v2614_v49 = vadd.f32 %v1906_v47, %v869_v25 }
 0x133   : > { %v1983_v50 = vmul.f32 0.1, %v1975_v44  ;;  %v1976_v52 = vadd.f32 %v2613_v46, %v2344_v37 }
 0x134   : > { %v1981_v55 = vmul.f32 0.1, %v1973_v48  ;;  %v1974_v53 = vadd.f32 %v2614_v49, %v2344_v37 }
 0x135   : > { %v1984_v58 = vmul.f32 0.1, %v1976_v52  ;;  %v1991_v0 = vmax.f32 %v1975_v44, %v1983_v50 }
 0x136   : > { %v2601_v51 = vpop.f32.mrb[8].mxu1  ;;  %v1982_v62 = vmul.f32 0.1, %v1974_v53  ;;  %v1989_v5 = vmax.f32 %v1973_v48, %v1981_v55 }
 0x137   : > { %v2616_v54 = vadd.f32 %v2615_v30, %v2601_v51  ;;  %v1919_v42 = vpop.f32.mrb[9].mxu1  ;;  %v1992_v2 = vmax.f32 %v1976_v52, %v1984_v58 }
 0x138   : > { %v2618_v57 = vadd.f32 %v2617_v32, %v1919_v42  ;;  %v2602_v59 = vpop.f32.mrb[10].mxu1  ;;  %v1990_v7 = vmax.f32 %v1974_v53, %v1982_v62 }
 0x139   : > { %v1979_v60 = vadd.f32 %v2616_v54, %v2344_v37  ;;  %v2620_v61 = vadd.f32 %v2619_v34, %v2602_v59  ;;  %v1922_v63 = vpop.f32.mrb[11].mxu1  ;;  %v2372_v9 = vpack.c.bf16 %v1992_v2, %v1991_v0 }
 0x13a   : > { %v1977_v1 = vadd.f32 %v2618_v57, %v2344_v37  ;;  %v2622_v3 = vadd.f32 %v2621_v38, %v1922_v63  ;;  %v2367_v12 = vpack.c.bf16 %v1990_v7, %v1989_v5 }
 0x13b   : > { %v1987_v4 = vmul.f32 0.1, %v1979_v60  ;;  %v1980_v6 = vadd.f32 %v2620_v61, %v2344_v37  ;;  %2384 = vst [vmem:[%s170_s21 + $0x8] sm:$0xff] %v2372_v9  }
 0x13c   : > { %v1985_v8 = vmul.f32 0.1, %v1977_v1  ;;  %v1978_v10 = vadd.f32 %v2622_v3, %v2344_v37  ;;  %2368 = vst [vmem:[%s170_s21] sm:$0xff] %v2367_v12  }
 0x13d   : > { %v1988_v11 = vmul.f32 0.1, %v1980_v6  ;;  %v1995_v13 = vmax.f32 %v1979_v60, %v1987_v4 }
 0x13e   : > { %v1986_v56 = vmul.f32 0.1, %v1978_v10  ;;  %v1993_v15 = vmax.f32 %v1977_v1, %v1985_v8 }
 0x13f   : > { %v1996_v14 = vmax.f32 %v1980_v6, %v1988_v11 }
 0x140   : > { %v1994_v16 = vmax.f32 %v1978_v10, %v1986_v56 }
 0x141   : > { %v2382_v17 = vpack.c.bf16 %v1996_v14, %v1995_v13 }
 0x142   : > { %v2377_v18 = vpack.c.bf16 %v1994_v16, %v1993_v15 }
 0x143   : > { %2386 = vst [vmem:[%s170_s21 + $0x18] sm:$0xff] %v2382_v17  }
 0x144   : > { %2385 = vst [vmem:[%s170_s21 + $0x10] sm:$0xff] %v2377_v18  }
 0x145 PF: > { %s13_s12 = sadd.s32 1, %s2750_s12  }
 0x146   : > { %p10_p4 = scmp.ge.s32.totalorder %s13_s12, 4  }
 0x148   :  { %12 = sbr.rel (!%p10_p4) target bundleno = 1 (0x1), region = 75 }

// kernel: basic_conv_encoder.6
= control target key start
LH: loop header
LB: loop body
LE: loop exit
PB: predicated region body
PF: predicated region fallthrough
CT: control target
= control target key end

     0   :  { %s2483_s12 = smov 0   ;;  %s3132_s0 = inlined_call_operand.vmem [shape: bf16[2,1,10,10,128], index: 0, kind: input, shape index: {}]   ;;  %s3133_s1 = inlined_call_operand.vmem [shape: bf16[1152,128], index: 1, kind: input, shape index: {}]   ;;  %s3134_s2 = inlined_call_operand.vmem [shape: f32[1,128], index: 2, kind: input, shape index: {}]   ;;  %s3135_s3 = inlined_call_operand.vmem [shape: bf16[2,64,128], index: 3, kind: output, shape index: {}]  }
   0x1 LB: > { %s1919_s13 = sadd.s32 4294967295, %s2461_s12   ;;  %p1923_p0 = scmp.ge.s32.totalorder %s2461_s12, 1  ;;  %s2461_s12 = sphi %s2483_s12, %s13_s12  }
   0x2   : > { %p137_p1 = scmp.lt.s32.totalorder %s2461_s12, 3 }
   0x4   : > { %p138_p2 = pnand %p1923_p0, %p137_p1 }
   0x5   : > { %v2371_v0 = vld [vmem:[%s3133_s1 + $0x40] sm:$0xff] (!%p138_p2)   ;;  %v2375_v4 = vld [vmem:[%s3133_s1 + $0x48] sm:$0xff] (!%p138_p2)   ;;  %v2379_v8 = vld [vmem:[%s3133_s1 + $0x50] sm:$0xff] (!%p138_p2)   ;;  %p161_p3 = scmp.lt.s32.totalorder (!%p138_p2), %s1919_s13, 1  ;;  %vm327_vm0 = vcmask (!%p138_p2), 1042432   ;;  %vm328_vm1 = vcmask (!%p138_p2), 1046532  }
   0x6   : > { %141 = sbr.rel (%p138_p2) target bundleno = 335 (0x14f), region = 32  ;;  %v2372_v1 = vld [vmem:[%s3133_s1 + $0xc0] sm:$0xff] (!%p138_p2)   ;;  %2150 = vmatprep.subr.bf16.mxu0 (!%p138_p2), %v2371_v0  ;;  %v2376_v5 = vld [vmem:[%s3133_s1 + $0xc8] sm:$0xff] (!%p138_p2)   ;;  %v2380_v9 = vld [vmem:[%s3133_s1 + $0xd0] sm:$0xff] (!%p138_p2)   ;;  %vm188_vm2 = vsmask.f32 (!%p138_p2), 3328 }
   0x7   : > { %v2373_v2 = vld [vmem:[%s3133_s1] sm:$0xff] (!%p138_p2)   ;;  %2190 = vmatprep.subr.bf16.mxu1 (!%p138_p2), %v2372_v1  ;;  %v2377_v6 = vld [vmem:[%s3133_s1 + $0x8] sm:$0xff] (!%p138_p2)   ;;  %v2381_v10 = vld [vmem:[%s3133_s1 + $0x10] sm:$0xff] (!%p138_p2)   ;;  %vm189_vm3 = vsmask.f32 (!%p138_p2), 7440 }
   0x8   : > { %v2374_v3 = vld [vmem:[%s3133_s1 + $0x80] sm:$0xff] (!%p138_p2)   ;;  %2151 = vmatpush3.bf16.msra.mxu0 (!%p138_p2), %v2373_v2  ;;  %v2378_v7 = vld [vmem:[%s3133_s1 + $0x88] sm:$0xff] (!%p138_p2)   ;;  %v2382_v11 = vld [vmem:[%s3133_s1 + $0x90] sm:$0xff] (!%p138_p2)  }
   0x9   : > { %2191 = vmatpush3.bf16.msra.mxu1 (!%p138_p2), %v2374_v3  ;;  %2152 = vmatprep.subr.bf16.mxu0 (!%p138_p2), %v2375_v4  ;;  %v2383_v12 = vld [vmem:[%s3133_s1 + $0x58] sm:$0xff] (!%p138_p2)   ;;  %v2387_v16 = vld [vmem:[%s3133_s1 + $0x60] sm:$0xff] (!%p138_p2)   ;;  %v2391_v20 = vld [vmem:[%s3133_s1 + $0x68] sm:$0xff] (!%p138_p2)  }
   0xa   : > { %2192 = vmatprep.subr.bf16.mxu1 (!%p138_p2), %v2376_v5  ;;  %v2384_v13 = vld [vmem:[%s3133_s1 + $0xd8] sm:$0xff] (!%p138_p2)   ;;  %v2388_v17 = vld [vmem:[%s3133_s1 + $0xe0] sm:$0xff] (!%p138_p2)   ;;  %v2392_v21 = vld [vmem:[%s3133_s1 + $0xe8] sm:$0xff] (!%p138_p2)  }
   0xb   : > { %v2385_v14 = vld [vmem:[%s3133_s1 + $0x18] sm:$0xff] (!%p138_p2)   ;;  %v2389_v18 = vld [vmem:[%s3133_s1 + $0x20] sm:$0xff] (!%p138_p2)   ;;  %v2393_v22 = vld [vmem:[%s3133_s1 + $0x28] sm:$0xff] (!%p138_p2)  }
   0xc   : > { %2153 = vmatpush3.bf16.msra.mxu0 (!%p138_p2), %v2377_v6  ;;  %v2386_v15 = vld [vmem:[%s3133_s1 + $0x98] sm:$0xff] (!%p138_p2)   ;;  %v2390_v19 = vld [vmem:[%s3133_s1 + $0xa0] sm:$0xff] (!%p138_p2)   ;;  %v2394_v23 = vld [vmem:[%s3133_s1 + $0xa8] sm:$0xff] (!%p138_p2)  }
   0xd   : > { %2193 = vmatpush3.bf16.msra.mxu1 %v2378_v7  ;;  %2154 = vmatprep.subr.bf16.mxu0 %v2379_v8  ;;  %s3141_s13 = smov (!%p161_p3, %s1919_s13), 1  ;;  %v2395_v24 = vld [vmem:[%s3133_s1 + $0x70] sm:$0xff]   ;;  %v2399_v28 = vld [vmem:[%s3133_s1 + $0x78] sm:$0xff]   ;;  %vm2612_vm4 = vmor %vm327_vm0, %vm328_vm1 }
   0xe   : > { %2194 = vmatprep.subr.bf16.mxu1 %v2380_v9  ;;  %v2396_v25 = vld [vmem:[%s3133_s1 + $0xf0] sm:$0xff]   ;;  %s2362_s16 = smul.u32 80, %s3141_s13  ;;  %v2400_v29 = vld [vmem:[%s3133_s1 + $0xf8] sm:$0xff]   ;;  %vm2618_vm5 = vmor %vm188_vm2, %vm189_vm3 }
   0xf   : > { %v2397_v26 = vld [vmem:[%s3133_s1 + $0x30] sm:$0xff]   ;;  %v2401_v30 = vld [vmem:[%s3133_s1 + $0x38] sm:$0xff]   ;;  %v2405_v60 = vld [vmem:[%s3133_s1 + $0x140] sm:$0xff]  }
  0x10   : > { %2155 = vmatpush3.bf16.msra.mxu0 %v2381_v10  ;;  %v2398_v27 = vld [vmem:[%s3133_s1 + $0xb0] sm:$0xff]   ;;  %s2591_s27 = scalar_lea.vmem %s3132_s0, %s2362_s16  ;;  %v2402_v31 = vld [vmem:[%s3133_s1 + $0xb8] sm:$0xff]   ;;  %v2406_v1 = vld [vmem:[%s3133_s1 + $0x1c0] sm:$0xff]   ;;  %s2118_s16 = sshll.u32 %s3141_s13, 5 }
  0x11   : > { %2195 = vmatpush3.bf16.msra.mxu1 %v2382_v11  ;;  %2156 = vmatprep.subr.bf16.mxu0 %v2383_v12  ;;  %v172_v32 = vld [vmem:[%s2591_s27] sm:$0xf]  ;;  %v173_v33 = vld [vmem:[%s2591_s27 + $0x8] sm:$0xf]  ;;  %v180_v34 = vld [vmem:[%s2591_s27 + $0x4] sm:$0x1]  ;;  %s170_s19 = scalar_lea.vmem %s3135_s3, %s2118_s16 }
  0x12   : > { %2196 = vmatprep.subr.bf16.mxu1 %v2384_v13  ;;  %v181_v35 = vld [vmem:[%s2591_s27 + $0xc] sm:$0x1]  ;;  %v192_v36 = vshrl.u32 %v172_v32, 16  ;;  %v195_v37 = vshll.u32 %v172_v32, 16  ;;  %v201_v38 = vshll.u32 %v180_v34, 16  ;;  %v206_v39 = vshrl.u32 %v173_v33, 16 }
  0x13   : > { %v209_v40 = vshll.u32 %v173_v33, 16  ;;  %v215_v41 = vshll.u32 %v181_v35, 16  ;;  %v1935_v42 = vld [vmem:[%s2591_s27 + $0x8] sm:$0xf]  ;;  %v2605_v43 = vld [vmem:[%s2591_s27 + $0x10] sm:$0xf]  ;;  %v1999_v8 = vcombine.low %v172_v32, %v173_v33 }
  0x14   : > { %2157 = vmatpush3.bf16.msra.mxu0 %v2385_v14  ;;  %v194_v44 = vrot.slane %v192_v36, 4  ;;  %v197_v45 = vrot.slane %v195_v37, 5  ;;  %v208_v46 = vrot.slane %v206_v39, 4  ;;  %v303_v47 = vld [vmem:[%s2591_s27] sm:$0xe]  ;;  %v332_v49 = vrot.slane %v180_v34, 5 }
  0x15   : > { %2197 = vmatpush3.bf16.msra.mxu1 %v2386_v15  ;;  %2158 = vmatprep.subr.bf16.mxu0 %v2387_v16  ;;  %v211_v48 = vrot.slane %v209_v40, 5  ;;  %v304_v50 = vld [vmem:[%s2591_s27 + $0x8] sm:$0xe]  ;;  %v203_v52 = vrot.slane %v201_v38, 5  ;;  %v336_v53 = vrot.slane %v181_v35, 5  ;;  %v2011_v54 = vcombine.low %v1935_v42, %v2605_v43  ;;  %v2407_v5 = vld [vmem:[%s3133_s1 + $0x100] sm:$0xff]  }
  0x16   : > { %2198 = vmatprep.subr.bf16.mxu1 %v2388_v17  ;;  %v198_v51 = vor.u32 %v197_v45, %v194_v44  ;;  %v217_v58 = vrot.slane %v215_v41, 5  ;;  %v1927_v59 = vrot.slane %v303_v47, 9  ;;  %v1928_v62 = vrot.slane %v304_v50, 9  ;;  %v2408_v10 = vld [vmem:[%s3133_s1 + $0x180] sm:$0xff]   ;;  %v2409_v12 = vld [vmem:[%s3133_s1 + $0x148] sm:$0xff]  }
  0x17   : > { %v212_v57 = vor.u32 %v211_v48, %v208_v46  ;;  %1580 = vmatprep.mubr.bf16.mxu1 %v2011_v54  ;;  %v380_v3 = vshrl.u32 %v1935_v42, 16  ;;  %v383_v7 = vshll.u32 %v1935_v42, 16  ;;  %v394_v13 = vshrl.u32 %v2605_v43, 16  ;;  %v2410_v14 = vld [vmem:[%s3133_s1 + $0x1c8] sm:$0xff]   ;;  %v2669_v32 = vld [vmem:[%s2591_s27 + $0x20] sm:$0xf] }
  0x18   : > { %2159 = vmatpush3.bf16.msra.mxu0 %v2389_v18  ;;  %v199_v61 = vrot.slane %v198_v51, 4  ;;  %v333_v0 = vsel %vm2612_vm4, %v1927_v59, %v332_v49  ;;  %v337_v4 = vsel %vm2612_vm4, %v1928_v62, %v336_v53  ;;  %v2411_v16 = vld [vmem:[%s3133_s1 + $0x108] sm:$0xff]   ;;  %v397_v33 = vshll.u32 %v2605_v43, 16  ;;  %v305_v36 = vld [vmem:[%s2591_s27 + $0x10] sm:$0xe] }
  0x19   : > { %2199 = vmatpush3.bf16.msra.mxu1 %v2390_v19  ;;  %2160 = vmatprep.subr.bf16.mxu0 %v2391_v20  ;;  %v213_v63 = vrot.slane %v212_v57, 4  ;;  %v2007_v9 = vcombine.low %v333_v0, %v337_v4  ;;  %v382_v15 = vrot.slane %v380_v3, 4  ;;  %v385_v17 = vrot.slane %v383_v7, 5  ;;  %v2412_v18 = vld [vmem:[%s3133_s1 + $0x188] sm:$0xff]   ;;  %v2656_v19 = vld [vmem:[%s2591_s27 + $0x10] sm:$0xf] }
  0x1a   : > { %2200 = vmatprep.subr.bf16.mxu1 %v2392_v21  ;;  %v204_v2 = vsel %vm2618_vm5, %v199_v61, %v203_v52  ;;  %v2659_v20 = vld [vmem:[%s2591_s27 + $0x18] sm:$0xf]  ;;  %v182_v21 = vld [vmem:[%s2591_s27 + $0x14] sm:$0x1]  ;;  %v2673_v38 = vrot.slane %v394_v13, 4  ;;  %v1929_v47 = vrot.slane %v305_v36, 9 }
  0x1b   : > { %v218_v6 = vsel %vm2618_vm5, %v213_v63, %v217_v58  ;;  %v386_v37 = vor.u32 %v385_v17, %v382_v15  ;;  %v306_v41 = vld [vmem:[%s2591_s27 + $0x18] sm:$0xe]  ;;  %v2415_v42 = vld [vmem:[%s3133_s1 + $0x150] sm:$0xff]   ;;  %v340_v49 = vrot.slane %v182_v21, 5  ;;  %v399_v57 = vrot.slane %v397_v33, 5 }
  0x1c   : > { %2161 = vmatpush3.bf16.msra.mxu0 %v2393_v22  ;;  %v2003_v11 = vcombine.low %v204_v2, %v218_v6  ;;  %v183_v22 = vld [vmem:[%s2591_s27 + $0x1c] sm:$0x1]  ;;  %v1930_v50 = vrot.slane %v306_v41, 9  ;;  %v2416_v54 = vld [vmem:[%s3133_s1 + $0x1d0] sm:$0xff]   ;;  %v2000_v63 = vcombine.low %v2656_v19, %v2659_v20  ;;  %v2717_v13 = vld [vmem:[%s2591_s27 + $0x20] sm:$0xf] }
  0x1d   : > { %2201 = vmatpush3.bf16.msra.mxu1 %v2394_v23  ;;  %2162 = vmatprep.subr.bf16.mxu0 %v2395_v24  ;;  %v220_v23 = vshrl.u32 %v2656_v19, 16  ;;  %v223_v24 = vshll.u32 %v2656_v19, 16  ;;  %v344_v53 = vrot.slane %v183_v22, 5  ;;  %v341_v59 = vsel %vm2612_vm4, %v1929_v47, %v340_v49  ;;  %v2420_v7 = vld [vmem:[%s3133_s1 + $0x1d8] sm:$0xff]   ;;  %v184_v15 = vld [vmem:[%s2591_s27 + $0x24] sm:$0x1] }
  0x1e   : > { %2202 = vmatprep.subr.bf16.mxu1 %v2396_v25  ;;  %1515 = vmatprep.mubr.bf16.mxu0 %v2003_v11  ;;  %v229_v25 = vshll.u32 %v182_v21, 16  ;;  %v2690_v61 = vrot.slane %v386_v37, 4  ;;  %v425_v11 = vshll.u32 %v2669_v32, 16  ;;  %v248_v17 = vshrl.u32 %v2717_v13, 16  ;;  %v308_v37 = vld [vmem:[%s2591_s27 + $0x28] sm:$0xe] }
  0x1f   : > { %v345_v0 = vsel %vm2612_vm4, %v1930_v50, %v344_v53  ;;  %v257_v19 = vshll.u32 %v184_v15, 16  ;;  %v2425_v41 = vld [vmem:[%s3133_s1 + $0x160] sm:$0xff]   ;;  %v348_v47 = vrot.slane %v184_v15, 5 }
  0x20   : > { %2163 = vmatpush3.bf16.msra.mxu0 %v2397_v26  ;;  %v234_v26 = vshrl.u32 %v2659_v20, 16  ;;  %v231_v40 = vrot.slane %v229_v25, 5  ;;  %v2008_v4 = vcombine.low %v341_v59, %v345_v0  ;;  %v2426_v50 = vld [vmem:[%s3133_s1 + $0x1e0] sm:$0xff]  }
  0x21   : > { %2203 = vmatpush3.bf16.msra.mxu1 %v2398_v27  ;;  %2164 = vmatprep.subr.bf16.mxu0 %v2399_v28  ;;  %v237_v27 = vshll.u32 %v2659_v20, 16  ;;  %v243_v28 = vshll.u32 %v183_v22, 16  ;;  %v259_v33 = vrot.slane %v257_v19, 5 }
  0x22   : > { %2204 = vmatprep.subr.bf16.mxu1 %v2400_v29  ;;  %v222_v29 = vrot.slane %v220_v23, 4  ;;  %v236_v34 = vrot.slane %v234_v26, 4  ;;  %v1939_v23 = vld [vmem:[%s2591_s27 + $0x28] sm:$0xf] }
  0x23   : > { %v239_v35 = vrot.slane %v237_v27, 5  ;;  %v245_v45 = vrot.slane %v243_v28, 5  ;;  %v250_v27 = vrot.slane %v248_v17, 4 }
  0x24   : > { %2165 = vmatpush3.bf16.msra.mxu0 %v2401_v30  ;;  %v225_v30 = vrot.slane %v223_v24, 5  ;;  %v1940_v24 = vld [vmem:[%s2591_s27 + $0x30] sm:$0xf] }
  0x25   : > { %2205 = vmatpush3.bf16.msra.mxu1 %v2402_v31  ;;  %2230 = vmatprep.subr.bf16.mxu0 %v2405_v60  ;;  %v1937_v31 = vld [vmem:[%s2591_s27 + $0x18] sm:$0xf]  ;;  %v240_v44 = vor.u32 %v239_v35, %v236_v34  ;;  %v2417_v60 = vld [vmem:[%s3133_s1 + $0x110] sm:$0xff]   ;;  %v2013_v36 = vcombine.low %v1939_v23, %v1940_v24 }
  0x26   : > { %2270 = vmatprep.subr.bf16.mxu1 %v2406_v1  ;;  %v226_v39 = vor.u32 %v225_v30, %v222_v29  ;;  %v2012_v46 = vcombine.low %v1937_v31, %v2669_v32  ;;  %v408_v48 = vshrl.u32 %v1937_v31, 16  ;;  %v411_v52 = vshll.u32 %v1937_v31, 16  ;;  %v2418_v1 = vld [vmem:[%s3133_s1 + $0x190] sm:$0xff]   ;;  %v307_v30 = vld [vmem:[%s2591_s27 + $0x20] sm:$0xe] }
  0x27   : > { %1516 = vmatmul.mubr.bf16.vlgmr.msra.gmra.mrb[0].mxu0 %v1999_v8  ;;  %v241_v51 = vrot.slane %v240_v44, 4  ;;  %v422_v8 = vshrl.u32 %v2669_v32, 16  ;;  %v2735_v32 = vrot.slane %v425_v11, 5  ;;  %v186_v11 = vld [vmem:[%s2591_s27 + $0x34] sm:$0x1] }
  0x28   : > { %1581 = vmatmul.mubr.bf16.vlgmr.msra.gmra.mrb[0].mxu1 %v2007_v9  ;;  %2231 = vmatpush3.bf16.msra.mxu0 %v2407_v5  ;;  %v227_v43 = vrot.slane %v226_v39, 4  ;;  %v410_v3 = vrot.slane %v408_v48, 4  ;;  %v2419_v5 = vld [vmem:[%s3133_s1 + $0x158] sm:$0xff]   ;;  %v413_v6 = vrot.slane %v411_v52, 5  ;;  %v1932_v48 = vrot.slane %v308_v37, 9 }
  0x29   : > { %2271 = vmatpush3.bf16.msra.mxu1 %v2408_v10  ;;  %2232 = vmatprep.subr.bf16.mxu0 %v2409_v12  ;;  %v246_v62 = vsel %vm2618_vm5, %v241_v51, %v245_v45  ;;  %v2421_v9 = vld [vmem:[%s3133_s1 + $0x118] sm:$0xff]   ;;  %v400_v10 = vor.u32 %v399_v57, %v2673_v38  ;;  %v2733_v31 = vrot.slane %v422_v8, 4  ;;  %v436_v45 = vshrl.u32 %v1939_v23, 16  ;;  %v2432_v8 = vld [vmem:[%s3133_s1 + $0x1a8] sm:$0xff]  }
  0x2a   : > { %2272 = vmatprep.subr.bf16.mxu1 %v2410_v14  ;;  %1588 = vmatprep.mubr.bf16.mxu1 %v2012_v46  ;;  %v232_v58 = vsel %vm2618_vm5, %v227_v43, %v231_v40  ;;  %v2422_v12 = vld [vmem:[%s3133_s1 + $0x198] sm:$0xff]   ;;  %v2720_v14 = vld [vmem:[%s2591_s27 + $0x28] sm:$0xf]  ;;  %v414_v25 = vor.u32 %v413_v6, %v410_v3  ;;  %v1931_v40 = vrot.slane %v307_v30, 9  ;;  %v439_v46 = vshll.u32 %v1939_v23, 16 }
  0x2b   : > { %v2004_v2 = vcombine.low %v232_v58, %v246_v62  ;;  %v262_v20 = vshrl.u32 %v2720_v14, 16  ;;  %v265_v21 = vshll.u32 %v2720_v14, 16  ;;  %v2730_v26 = vrot.slane %v400_v10, 4  ;;  %v2428_v62 = vld [vmem:[%s3133_s1 + $0x1a0] sm:$0xff]   ;;  %v2431_v6 = vld [vmem:[%s3133_s1 + $0x128] sm:$0xff]  }
  0x2c   : > { %2233 = vmatpush3.bf16.msra.mxu0 %v2411_v16  ;;  %v185_v16 = vld [vmem:[%s2591_s27 + $0x2c] sm:$0x1]  ;;  %v450_v52 = vshrl.u32 %v1940_v24, 16  ;;  %v349_v53 = vsel %vm2612_vm4, %v1931_v40, %v348_v47  ;;  %v453_v58 = vshll.u32 %v1940_v24, 16  ;;  %v2001_v59 = vcombine.low %v2717_v13, %v2720_v14  ;;  %v2782_v10 = vld [vmem:[%s2591_s27 + $0x38] sm:$0xf] }
  0x2d   : > { %2273 = vmatpush3.bf16.msra.mxu1 %v2412_v18  ;;  %2234 = vmatprep.subr.bf16.mxu0 %v2415_v42  ;;  %v251_v18 = vshll.u32 %v2717_v13, 16  ;;  %v271_v22 = vshll.u32 %v185_v16, 16  ;;  %v264_v29 = vrot.slane %v262_v20, 4  ;;  %v267_v34 = vrot.slane %v265_v21, 5  ;;  %v1942_v21 = vld [vmem:[%s2591_s27 + $0x40] sm:$0xf] }
  0x2e   : > { %2274 = vmatprep.subr.bf16.mxu1 %v2416_v54  ;;  %1523 = vmatprep.mubr.bf16.mxu0 %v2004_v2  ;;  %v2741_v42 = vrot.slane %v414_v25, 4  ;;  %v352_v49 = vrot.slane %v185_v16, 5  ;;  %v2427_v54 = vld [vmem:[%s3133_s1 + $0x120] sm:$0xff]   ;;  %v438_v0 = vrot.slane %v436_v45, 4  ;;  %v2429_v2 = vld [vmem:[%s3133_s1 + $0x168] sm:$0xff]   ;;  %v441_v3 = vrot.slane %v439_v46, 5 }
  0x2f   : > { %1524 = vmatmul.mubr.bf16.gmra.mrb[4].mxu0 %v2000_v63  ;;  %v253_v28 = vrot.slane %v251_v18, 5  ;;  %v268_v38 = vor.u32 %v267_v34, %v264_v29  ;;  %v273_v39 = vrot.slane %v271_v22, 5  ;;  %v428_v13 = vor.u32 %v2735_v32, %v2733_v31  ;;  %v1941_v18 = vld [vmem:[%s2591_s27 + $0x38] sm:$0xf]  ;;  %v2436_v45 = vld [vmem:[%s3133_s1 + $0x1f0] sm:$0xff]  }
  0x30   : > { %2235 = vmatpush3.bf16.msra.mxu0 %v2417_v60  ;;  %1589 = vmatmul.mubr.bf16.gmra.mrb[4].mxu1 %v2008_v4  ;;  %v353_v60 = vsel %vm2612_vm4, %v1932_v48, %v352_v49  ;;  %v2430_v4 = vld [vmem:[%s3133_s1 + $0x1e8] sm:$0xff]   ;;  %v285_v16 = vshll.u32 %v186_v11, 16  ;;  %v290_v17 = vshrl.u32 %v2782_v10, 16  ;;  %v293_v19 = vshll.u32 %v2782_v10, 16 }
  0x31   : > { %2275 = vmatpush3.bf16.msra.mxu1 %v2418_v1  ;;  %2236 = vmatprep.subr.bf16.mxu0 %v2419_v5  ;;  %v254_v35 = vor.u32 %v253_v28, %v250_v27  ;;  %v269_v43 = vrot.slane %v268_v38, 4  ;;  %v2009_v1 = vcombine.low %v349_v53, %v353_v60  ;;  %v2768_v5 = vrot.slane %v450_v52, 4  ;;  %v309_v28 = vld [vmem:[%s2591_s27 + $0x30] sm:$0xe] }
  0x32   : > { %2276 = vmatprep.subr.bf16.mxu1 %v2420_v7  ;;  %1596 = vmatprep.mubr.bf16.mxu1 %v2013_v36  ;;  %v2773_v7 = vrot.slane %v453_v58, 5  ;;  %v464_v22 = vshrl.u32 %v1941_v18, 16  ;;  %v467_v23 = vshll.u32 %v1941_v18, 16  ;;  %v292_v27 = vrot.slane %v290_v17, 4 }
  0x33   : > { %v255_v44 = vrot.slane %v254_v35, 4  ;;  %v274_v57 = vsel %vm2618_vm5, %v269_v43, %v273_v39  ;;  %v442_v29 = vor.u32 %v441_v3, %v438_v0  ;;  %v287_v30 = vrot.slane %v285_v16, 5 }
  0x34   : > { %2237 = vmatpush3.bf16.msra.mxu0 %v2421_v9  ;;  %v2779_v9 = vld [vmem:[%s2591_s27 + $0x30] sm:$0xf]  ;;  %v295_v31 = vrot.slane %v293_v19, 5  ;;  %v2796_v34 = vrot.slane %v428_v13, 4  ;;  %v466_v36 = vrot.slane %v464_v22, 4  ;;  %v469_v37 = vrot.slane %v467_v23, 5 }
  0x35   : > { %2277 = vmatpush3.bf16.msra.mxu1 %v2422_v12  ;;  %2238 = vmatprep.subr.bf16.mxu0 %v2425_v41  ;;  %v260_v51 = vsel %vm2618_vm5, %v255_v44, %v259_v33  ;;  %v187_v12 = vld [vmem:[%s2591_s27 + $0x3c] sm:$0x1]  ;;  %v276_v14 = vshrl.u32 %v2779_v9, 16  ;;  %v279_v15 = vshll.u32 %v2779_v9, 16  ;;  %v310_v33 = vld [vmem:[%s2591_s27 + $0x38] sm:$0xe]  ;;  %v2014_v38 = vcombine.low %v1941_v18, %v1942_v21 }
  0x36   : > { %2278 = vmatprep.subr.bf16.mxu1 %v2426_v50  ;;  %v2005_v63 = vcombine.low %v260_v51, %v274_v57  ;;  %v299_v20 = vshll.u32 %v187_v12, 16  ;;  %v296_v39 = vor.u32 %v295_v31, %v292_v27  ;;  %v1933_v40 = vrot.slane %v309_v28, 9  ;;  %v2435_v44 = vld [vmem:[%s3133_s1 + $0x170] sm:$0xff]   ;;  %v2848_v23 = vld [vmem:[%s2591_s27 + $0x18] sm:$0xf] }
  0x37   : > { %v278_v24 = vrot.slane %v276_v14, 4  ;;  %v281_v25 = vrot.slane %v279_v15, 5  ;;  %v356_v41 = vrot.slane %v186_v11, 5  ;;  %v456_v46 = vor.u32 %v2773_v7, %v2768_v5  ;;  %v2437_v57 = vld [vmem:[%s3133_s1 + $0x130] sm:$0xff]   ;;  %v2440_v5 = vld [vmem:[%s3133_s1 + $0x1f8] sm:$0xff]  }
  0x38   : > { %2239 = vmatpush3.bf16.msra.mxu0 %v2427_v54  ;;  %1531 = vmatprep.mubr.bf16.mxu0 %v2005_v63  ;;  %v301_v32 = vrot.slane %v299_v20, 5  ;;  %v478_v43 = vshrl.u32 %v1942_v21, 16  ;;  %v1934_v48 = vrot.slane %v310_v33, 9  ;;  %v2806_v49 = vrot.slane %v442_v29, 4  ;;  %v2441_v7 = vld [vmem:[%s3133_s1 + $0x138] sm:$0xff]  }
  0x39   : > { %2279 = vmatpush3.bf16.msra.mxu1 %v2428_v62  ;;  %1532 = vmatmul.mubr.bf16.gmra.mrb[8].mxu0 %v2001_v59  ;;  %v282_v35 = vor.u32 %v281_v25, %v278_v24  ;;  %v297_v50 = vrot.slane %v296_v39, 4  ;;  %v357_v51 = vsel %vm2612_vm4, %v1933_v40, %v356_v41  ;;  %v360_v52 = vrot.slane %v187_v12, 5  ;;  %v2438_v62 = vld [vmem:[%s3133_s1 + $0x1b0] sm:$0xff]   ;;  %v1951_v14 = vld [vmem:[%s2591_s27 + $0x8] sm:$0xe] }
  0x3a   : > { %1597 = vmatmul.mubr.bf16.gmra.mrb[8].mxu1 %v2009_v1  ;;  %2240 = vmatprep.subr.bf16.mxu0 %v2429_v2  ;;  %v481_v54 = vshll.u32 %v1942_v21, 16  ;;  %v2002_v59 = vcombine.low %v2779_v9, %v2782_v10  ;;  %v470_v63 = vor.u32 %v469_v37, %v466_v36  ;;  %v2439_v2 = vld [vmem:[%s3133_s1 + $0x178] sm:$0xff]   ;;  %v2827_v3 = vrot.slane %v456_v46, 4  ;;  %v1943_v9 = vld [vmem:[%s2591_s27 + $0xc] sm:$0x1]  ;;  %v2868_v37 = vld [vmem:[%s3133_s1 + $0x200] sm:$0xff]  }
  0x3b   : > { %2280 = vmatprep.subr.bf16.mxu1 %v2430_v4  ;;  %v283_v47 = vrot.slane %v282_v35, 4  ;;  %1604 = vmatprep.mubr.bf16.mxu1 %v2014_v38  ;;  %v302_v58 = vsel %vm2618_vm5, %v297_v50, %v301_v32  ;;  %v361_v60 = vsel %vm2612_vm4, %v1934_v48, %v360_v52  ;;  %v480_v4 = vrot.slane %v478_v43, 4  ;;  %v1944_v10 = vld [vmem:[%s2591_s27 + $0x14] sm:$0x1]  ;;  %v1952_v15 = vld [vmem:[%s2591_s27 + $0x10] sm:$0xe] }
  0x3c   : > { %2241 = vmatpush3.bf16.msra.mxu0 %v2431_v6  ;;  %v2010_v1 = vcombine.low %v357_v51, %v361_v60  ;;  %v483_v6 = vrot.slane %v481_v54, 5  ;;  %v2840_v11 = vrot.slane %v470_v63, 4  ;;  %v389_v12 = vshll.u32 %v1943_v9, 16  ;;  %v2845_v20 = vld [vmem:[%s2591_s27 + $0x10] sm:$0xf] }
  0x3d   : > { %2281 = vmatpush3.bf16.msra.mxu1 %v2432_v8  ;;  %2242 = vmatprep.subr.bf16.mxu0 %v2435_v44  ;;  %v288_v53 = vsel %vm2618_vm5, %v283_v47, %v287_v30  ;;  %v2442_v8 = vld [vmem:[%s3133_s1 + $0x1b8] sm:$0xff]   ;;  %v403_v13 = vshll.u32 %v1944_v10, 16  ;;  %v1959_v16 = vrot.slane %v1951_v14, 9  ;;  %v517_v17 = vrot.slane %v1943_v9, 5  ;;  %v2851_v24 = vld [vmem:[%s2591_s27 + $0x14] sm:$0x1] }
  0x3e   : > { %2282 = vmatprep.subr.bf16.mxu1 %v2436_v45  ;;  %v2006_v0 = vcombine.low %v288_v53, %v302_v58  ;;  %v1960_v18 = vrot.slane %v1952_v15, 9  ;;  %v521_v19 = vrot.slane %v1944_v10, 5  ;;  %v391_v21 = vrot.slane %v389_v12, 5  ;;  %v2858_v29 = vld [vmem:[%s2591_s27 + $0x1c] sm:$0x1]  ;;  %v2881_v47 = vld [vmem:[%s3133_s1 + $0x208] sm:$0xff]  }
  0x3f   : > { %v405_v22 = vrot.slane %v403_v13, 5  ;;  %v484_v25 = vor.u32 %v483_v6, %v480_v4  ;;  %v518_v27 = vsel %vm2612_vm4, %v1959_v16, %v517_v17  ;;  %v565_v30 = vshrl.u32 %v2845_v20, 16  ;;  %v1945_v52 = vld [vmem:[%s2591_s27 + $0x1c] sm:$0x1]  ;;  %v1946_v53 = vld [vmem:[%s2591_s27 + $0x24] sm:$0x1] }
  0x40   : > { %2243 = vmatpush3.bf16.msra.mxu0 %v2437_v57  ;;  %1539 = vmatprep.mubr.bf16.mxu0 %v2006_v0  ;;  %v522_v28 = vsel %vm2612_vm4, %v1960_v18, %v521_v19  ;;  %v568_v31 = vshll.u32 %v2845_v20, 16  ;;  %v574_v33 = vshll.u32 %v2851_v24, 16  ;;  %v579_v35 = vshrl.u32 %v2848_v23, 16  ;;  %v1953_v54 = vld [vmem:[%s2591_s27 + $0x18] sm:$0xe]  ;;  %v2917_v14 = vld [vmem:[%s3133_s1 + $0x210] sm:$0xff]  }
  0x41   : > { %2283 = vmatpush3.bf16.msra.mxu1 %v2438_v62  ;;  %1540 = vmatmul.mubr.bf16.gmra.mrb[12].mxu0 %v2002_v59  ;;  %v2019_v32 = vcombine.low %v518_v27, %v522_v28  ;;  %v582_v36 = vshll.u32 %v2848_v23, 16  ;;  %v567_v38 = vrot.slane %v565_v30, 4  ;;  %v588_v40 = vshll.u32 %v2858_v29, 16  ;;  %v1954_v57 = vld [vmem:[%s2591_s27 + $0x20] sm:$0xe] }
  0x42   : > { %1605 = vmatmul.mubr.bf16.gmra.mrb[12].mxu1 %v2010_v1  ;;  %2244 = vmatprep.subr.bf16.mxu0 %v2439_v2  ;;  %v570_v39 = vrot.slane %v568_v31, 5  ;;  %v392_v41 = vsel %vm2618_vm5, %v2690_v61, %v391_v21  ;;  %v581_v44 = vrot.slane %v579_v35, 4  ;;  %v406_v46 = vsel %vm2618_vm5, %v2730_v26, %v405_v22  ;;  %v2891_v0 = vld [vmem:[%s2591_s27 + $0x20] sm:$0xf]  ;;  %v2900_v6 = vld [vmem:[%s2591_s27 + $0x24] sm:$0x1] }
  0x43   : > { %2284 = vmatprep.subr.bf16.mxu1 %v2440_v5  ;;  %1645 = vmatprep.mubr.bf16.mxu0 %v2019_v32  ;;  %v584_v45 = vrot.slane %v582_v36, 5  ;;  %v2883_v43 = vrot.slane %v484_v25, 4  ;;  %v576_v61 = vrot.slane %v574_v33, 5  ;;  %v590_v50 = vrot.slane %v588_v40, 5  ;;  %v2897_v5 = vld [vmem:[%s2591_s27 + $0x28] sm:$0xf] }
  0x44   : > { %2245 = vmatpush3.bf16.msra.mxu0 %v2441_v7  ;;  %v571_v48 = vor.u32 %v570_v39, %v567_v38  ;;  %v2015_v51 = vcombine.low %v392_v41, %v406_v46  ;;  %v525_v58 = vrot.slane %v1945_v52, 5  ;;  %v529_v59 = vrot.slane %v1946_v53, 5  ;;  %v2911_v12 = vld [vmem:[%s2591_s27 + $0x2c] sm:$0x1]  ;;  %v2935_v36 = vld [vmem:[%s3133_s1 + $0x218] sm:$0xff]  }
  0x45   : > { %2285 = vmatpush3.bf16.msra.mxu1 %v2442_v8  ;;  %2322 = vmatprep.subr.bf16.mxu0 %v2868_v37  ;;  %v585_v26 = vor.u32 %v584_v45, %v581_v44  ;;  %v1961_v62 = vrot.slane %v1953_v54, 9  ;;  %v1962_v63 = vrot.slane %v1954_v57, 9  ;;  %v417_v1 = vshll.u32 %v1945_v52, 16  ;;  %v2929_v30 = vld [vmem:[%s2591_s27 + $0x2c] sm:$0x1] }
  0x46   : > { %2346 = vmatprep.subr.bf16.mxu1 %v2868_v37  ;;  %v572_v60 = vrot.slane %v571_v48, 4  ;;  %v2023_v4 = vcombine.low %v2845_v20, %v2848_v23  ;;  %v593_v7 = vshrl.u32 %v2891_v0, 16  ;;  %v596_v13 = vshll.u32 %v2891_v0, 16  ;;  %v2938_v38 = vld [vmem:[%s2591_s27 + $0x34] sm:$0x1] }
  0x47   : > { %v586_v2 = vrot.slane %v585_v26, 4  ;;  %v526_v9 = vsel %vm2612_vm4, %v1961_v62, %v525_v58  ;;  %v530_v10 = vsel %vm2612_vm4, %v1962_v63, %v529_v59  ;;  %v602_v18 = vshll.u32 %v2900_v6, 16  ;;  %v1955_v44 = vld [vmem:[%s2591_s27 + $0x28] sm:$0xe]  ;;  %v1956_v45 = vld [vmem:[%s2591_s27 + $0x30] sm:$0xe] }
  0x48   : > { %v577_v8 = vsel %vm2618_vm5, %v572_v60, %v576_v61  ;;  %v2020_v16 = vcombine.low %v526_v9, %v530_v10  ;;  %v595_v17 = vrot.slane %v593_v7, 4  ;;  %v598_v20 = vrot.slane %v596_v13, 5  ;;  %v2952_v52 = vld [vmem:[%s2591_s27 + $0x38] sm:$0xf]  ;;  %v2959_v57 = vld [vmem:[%s2591_s27 + $0x34] sm:$0x1] }
  0x49   : > { %1646 = vmatmul.mubr.bf16.vlgmr.msra.gmra.mrb[16].mxu0 %v2015_v51  ;;  %v591_v15 = vsel %vm2618_vm5, %v586_v2, %v590_v50  ;;  %v607_v21 = vshrl.u32 %v2897_v5, 16  ;;  %v610_v22 = vshll.u32 %v2897_v5, 16  ;;  %v604_v23 = vrot.slane %v602_v18, 5  ;;  %v2949_v51 = vld [vmem:[%s2591_s27 + $0x30] sm:$0xf]  ;;  %v2972_v63 = vld [vmem:[%s3133_s1 + $0x220] sm:$0xff]  }
  0x4a   : > { %2323 = vmatpush3.bf16.msra.mxu0 %v2868_v37  ;;  %v2027_v19 = vcombine.low %v577_v8, %v591_v15  ;;  %1653 = vmatprep.mubr.bf16.mxu0 %v2020_v16  ;;  %v616_v25 = vshll.u32 %v2911_v12, 16  ;;  %v710_v27 = vrot.slane %v2900_v6, 5  ;;  %v714_v28 = vrot.slane %v2911_v12, 5  ;;  %v2965_v59 = vld [vmem:[%s2591_s27 + $0x3c] sm:$0x1] }
  0x4b   : > { %2324 = vmatprep.subr.bf16.mxu0 %v2881_v47  ;;  %v599_v31 = vor.u32 %v598_v20, %v595_v17  ;;  %v609_v32 = vrot.slane %v607_v21, 4  ;;  %v612_v33 = vrot.slane %v610_v22, 5  ;;  %v419_v35 = vrot.slane %v417_v1, 5  ;;  %v2996_v16 = vld [vmem:[%s2591_s27 + $0x3c] sm:$0x1] }
  0x4c   : > { %1710 = vmatprep.mubr.bf16.mxu1 %v2027_v19  ;;  %v618_v39 = vrot.slane %v616_v25, 5  ;;  %v431_v40 = vshll.u32 %v1946_v53, 16  ;;  %v2024_v41 = vcombine.low %v2891_v0, %v2897_v5  ;;  %v1963_v50 = vrot.slane %v1955_v44, 9  ;;  %v3004_v21 = vld [vmem:[%s2591_s27 + $0x44] sm:$0x1] }
  0x4d   : > { %1711 = vmatmul.mubr.bf16.vlgmr.msra.gmra.mrb[16].mxu1 %v2023_v4  ;;  %v600_v46 = vrot.slane %v599_v31, 4  ;;  %v613_v48 = vor.u32 %v612_v33, %v609_v32  ;;  %v420_v61 = vsel %vm2618_vm5, %v2741_v42, %v419_v35  ;;  %v533_v26 = vrot.slane %v2929_v30, 5  ;;  %v1957_v31 = vld [vmem:[%s2591_s27 + $0x38] sm:$0xe]  ;;  %v1958_v32 = vld [vmem:[%s2591_s27 + $0x40] sm:$0xe] }
  0x4e   : > { %2325 = vmatpush3.bf16.msra.mxu0 %v2881_v47  ;;  %2354 = vmatpush3.bf16.msra.mxu1 %v2868_v37  ;;  %v433_v53 = vrot.slane %v431_v40, 5  ;;  %v1964_v37 = vrot.slane %v1956_v45, 9  ;;  %v537_v54 = vrot.slane %v2938_v38, 5  ;;  %v621_v60 = vshrl.u32 %v2949_v51, 16  ;;  %v3012_v40 = vld [vmem:[%s2591_s27 + $0x40] sm:$0xf] }
  0x4f   : > { %2326 = vmatprep.subr.bf16.mxu0 %v2917_v14  ;;  %2347 = vmatprep.subr.bf16.mxu1 %v2881_v47  ;;  %v605_v42 = vsel %vm2618_vm5, %v600_v46, %v604_v23  ;;  %v614_v58 = vrot.slane %v613_v48, 4  ;;  %v624_v62 = vshll.u32 %v2949_v51, 16  ;;  %v534_v1 = vsel %vm2612_vm4, %v1963_v50, %v533_v26  ;;  %v3032_v26 = vld [vmem:[%s2591_s27 + $0x4c] sm:$0x1] }
  0x50   : > { %v434_v0 = vsel %vm2618_vm5, %v2796_v34, %v433_v53  ;;  %v538_v2 = vsel %vm2612_vm4, %v1964_v37, %v537_v54  ;;  %v630_v4 = vshll.u32 %v2959_v57, 16  ;;  %v623_v9 = vrot.slane %v621_v60, 4  ;;  %v3029_v53 = vld [vmem:[%s2591_s27 + $0x44] sm:$0x1]  ;;  %v3038_v54 = vld [vmem:[%s3133_s1 + $0x230] sm:$0xff]  }
  0x51   : > { %v619_v5 = vsel %vm2618_vm5, %v614_v58, %v618_v39  ;;  %v2016_v7 = vcombine.low %v420_v61, %v434_v0  ;;  %v2021_v8 = vcombine.low %v534_v1, %v538_v2  ;;  %v626_v34 = vrot.slane %v624_v62, 5  ;;  %v3018_v61 = vld [vmem:[%s2591_s27 + $0x48] sm:$0xf] }
  0x52   : > { %2327 = vmatpush3.bf16.msra.mxu0 %v2917_v14  ;;  %2355 = vmatpush3.bf16.msra.mxu1 %v2881_v47  ;;  %v2028_v10 = vcombine.low %v605_v42, %v619_v5  ;;  %v2987_v13 = vrot.slane %v630_v4, 5  ;;  %v635_v15 = vshrl.u32 %v2952_v52, 16  ;;  %v2993_v47 = vld [vmem:[%s3133_s1 + $0x228] sm:$0xff]   ;;  %v638_v17 = vshll.u32 %v2952_v52, 16 }
  0x53   : > { %2328 = vmatprep.subr.bf16.mxu0 %v2935_v36  ;;  %2348 = vmatprep.subr.bf16.mxu1 %v2917_v14  ;;  %v644_v18 = vshll.u32 %v2965_v59, 16  ;;  %v445_v19 = vshll.u32 %v2929_v30, 16  ;;  %v459_v20 = vshll.u32 %v2938_v38, 16  ;;  %v627_v22 = vor.u32 %v626_v34, %v623_v9  ;;  %v1983_v34 = vld [vmem:[%s2591_s27 + $0x10] sm:$0xe] }
  0x54   : > { %1654 = vmatmul.mubr.bf16.gmra.mrb[20].mxu0 %v2016_v7  ;;  %1718 = vmatprep.mubr.bf16.mxu1 %v2028_v10  ;;  %v637_v23 = vrot.slane %v635_v15, 4  ;;  %v2025_v25 = vcombine.low %v2949_v51, %v2952_v52  ;;  %v541_v33 = vrot.slane %v2996_v16, 5  ;;  %v640_v30 = vrot.slane %v638_v17, 5  ;;  %v1986_v51 = vld [vmem:[%s2591_s27 + $0x28] sm:$0xe] }
  0x55   : > { %1661 = vmatprep.mubr.bf16.mxu0 %v2021_v8  ;;  %1719 = vmatmul.mubr.bf16.gmra.mrb[20].mxu1 %v2024_v41  ;;  %v646_v35 = vrot.slane %v644_v18, 5  ;;  %v447_v38 = vrot.slane %v445_v19, 5  ;;  %v461_v39 = vrot.slane %v459_v20, 5  ;;  %v628_v44 = vrot.slane %v627_v22, 4  ;;  %v1984_v19 = vld [vmem:[%s2591_s27 + $0x18] sm:$0xe] }
  0x56   : > { %2329 = vmatpush3.bf16.msra.mxu0 %v2935_v36  ;;  %2356 = vmatpush3.bf16.msra.mxu1 %v2917_v14  ;;  %v1965_v45 = vrot.slane %v1957_v31, 9  ;;  %v1966_v46 = vrot.slane %v1958_v32, 9  ;;  %v545_v48 = vrot.slane %v3004_v21, 5  ;;  %v641_v41 = vor.u32 %v640_v30, %v637_v23  ;;  %v2454_v32 = vld [vmem:[%s3133_s1 + $0x238] sm:$0xff]  }
  0x57   : > { %2330 = vmatprep.subr.bf16.mxu0 %v2972_v63  ;;  %2349 = vmatprep.subr.bf16.mxu1 %v2935_v36  ;;  %v448_v50 = vsel %vm2618_vm5, %v2806_v49, %v447_v38  ;;  %v462_v14 = vsel %vm2618_vm5, %v2827_v3, %v461_v39  ;;  %v649_v37 = vshrl.u32 %v3012_v40, 16  ;;  %v633_v49 = vsel %vm2618_vm5, %v628_v44, %v2987_v13 }
  0x58   : > { %v2017_v42 = vcombine.low %v448_v50, %v462_v14  ;;  %v542_v3 = vsel %vm2612_vm4, %v1965_v45, %v541_v33  ;;  %v546_v58 = vsel %vm2612_vm4, %v1966_v46, %v545_v48  ;;  %v642_v60 = vrot.slane %v641_v41, 4  ;;  %v1987_v33 = vld [vmem:[%s2591_s27 + $0x30] sm:$0xe]  ;;  %v1985_v46 = vld [vmem:[%s2591_s27 + $0x20] sm:$0xe] }
  0x59   : > { %v2022_v62 = vcombine.low %v542_v3, %v546_v58  ;;  %v651_v0 = vrot.slane %v649_v37, 4  ;;  %v652_v1 = vshll.u32 %v3012_v40, 16  ;;  %v658_v2 = vshll.u32 %v3029_v53, 16  ;;  %v1989_v14 = vld [vmem:[%s2591_s27 + $0x40] sm:$0xe] }
  0x5a   : > { %2331 = vmatpush3.bf16.msra.mxu0 %v2972_v63  ;;  %2357 = vmatpush3.bf16.msra.mxu1 %v2935_v36  ;;  %v663_v4 = vshrl.u32 %v3018_v61, 16  ;;  %v666_v5 = vshll.u32 %v3018_v61, 16  ;;  %v672_v7 = vshll.u32 %v3032_v26, 16  ;;  %v647_v8 = vsel %vm2618_vm5, %v642_v60, %v646_v35  ;;  %v1990_v37 = vld [vmem:[%s2591_s27 + $0x48] sm:$0xe] }
  0x5b   : > { %2332 = vmatprep.subr.bf16.mxu0 %v2993_v47  ;;  %2350 = vmatprep.subr.bf16.mxu1 %v2972_v63  ;;  %v654_v9 = vrot.slane %v652_v1, 5  ;;  %v726_v36 = vrot.slane %v3029_v53, 5  ;;  %v730_v10 = vrot.slane %v3032_v26, 5  ;;  %v2029_v13 = vcombine.low %v633_v49, %v647_v8  ;;  %v2035_v53 = vld [vmem:[%s3134_s2] ss:$0 sm:$0xff] }
  0x5c   : > { %1662 = vmatmul.mubr.bf16.gmra.mrb[24].mxu0 %v2017_v42  ;;  %v660_v15 = vrot.slane %v658_v2, 5  ;;  %v665_v17 = vrot.slane %v663_v4, 4  ;;  %v668_v18 = vrot.slane %v666_v5, 5  ;;  %v674_v22 = vrot.slane %v672_v7, 5 }
  0x5d   : > { %1669 = vmatprep.mubr.bf16.mxu0 %v2022_v62  ;;  %v655_v20 = vor.u32 %v654_v9, %v651_v0  ;;  %v473_v23 = vshll.u32 %v2996_v16, 16  ;;  %v487_v31 = vshll.u32 %v3004_v21, 16  ;;  %1726 = vmatprep.mubr.bf16.mxu1 %v2029_v13  ;;  %v2026_v35 = vcombine.low %v3012_v40, %v3018_v61  ;;  %v1988_v16 = vld [vmem:[%s2591_s27 + $0x38] sm:$0xe] }
  0x5e   : > { %2333 = vmatpush3.bf16.msra.mxu0 %v2993_v47  ;;  %2358 = vmatpush3.bf16.msra.mxu1 %v2972_v63  ;;  %v669_v30 = vor.u32 %v668_v18, %v665_v17  ;;  %v1991_v38 = vrot.slane %v1983_v34, 9  ;;  %v702_v39 = vrot.slane %v2851_v24, 5  ;;  %v1992_v45 = vrot.slane %v1984_v19, 9 }
  0x5f   : > { %2334 = vmatprep.subr.bf16.mxu0 %v3038_v54  ;;  %1727 = vmatmul.mubr.bf16.gmra.mrb[24].mxu1 %v2025_v25  ;;  %v656_v21 = vrot.slane %v655_v20, 4  ;;  %v475_v44 = vrot.slane %v473_v23, 5  ;;  %v489_v63 = vrot.slane %v487_v31, 5  ;;  %v706_v40 = vrot.slane %v2858_v29, 5 }
  0x60   : > { %2351 = vmatprep.subr.bf16.mxu1 %v2993_v47  ;;  %v670_v48 = vrot.slane %v669_v30, 4  ;;  %v703_v24 = vsel %vm2612_vm4, %v1991_v38, %v702_v39  ;;  %v1995_v61 = vrot.slane %v1987_v33, 9  ;;  %v718_v50 = vrot.slane %v2959_v57, 5 }
  0x61   : > { %v661_v52 = vsel %vm2618_vm5, %v656_v21, %v660_v15  ;;  %v476_v25 = vsel %vm2618_vm5, %v2840_v11, %v475_v44  ;;  %v490_v41 = vsel %vm2618_vm5, %v2883_v43, %v489_v63  ;;  %v707_v42 = vsel %vm2612_vm4, %v1992_v45, %v706_v40 }
  0x62   : > { %2335 = vmatpush3.bf16.msra.mxu0 %v3038_v54  ;;  %2359 = vmatpush3.bf16.msra.mxu1 %v2993_v47  ;;  %v675_v29 = vsel %vm2618_vm5, %v670_v48, %v674_v22  ;;  %v2018_v49 = vcombine.low %v476_v25, %v490_v41  ;;  %v1996_v3 = vrot.slane %v1988_v16, 9  ;;  %v2031_v58 = vcombine.low %v703_v24, %v707_v42 }
  0x63   : > { %2336 = vmatprep.subr.bf16.mxu0 %v2454_v32  ;;  %v2030_v11 = vcombine.low %v661_v52, %v675_v29  ;;  %2352 = vmatprep.subr.bf16.mxu1 %v3038_v54  ;;  %v719_v43 = vsel %vm2612_vm4, %v1995_v61, %v718_v50  ;;  %v722_v57 = vrot.slane %v2965_v59, 5  ;;  %v1993_v60 = vrot.slane %v1985_v46, 9 }
  0x64   : > { %1670 = vmatmul.mubr.bf16.gmra.mrb[28].mxu0 %v2018_v49  ;;  %v1994_v47 = vrot.slane %v1986_v51, 9  ;;  %v1997_v62 = vrot.slane %v1989_v14, 9  ;;  %v1998_v56 = vrot.slane %v1990_v37, 9 }
  0x65   : > { %1734 = vmatprep.mubr.bf16.mxu1 %v2030_v11  ;;  %v723_v0 = vsel %vm2612_vm4, %v1996_v3, %v722_v57  ;;  %2338 = vmatprep.mubr.bf16.mxu0 %v2031_v58  ;;  %v711_v2 = vsel %vm2612_vm4, %v1993_v60, %v710_v27 }
  0x66   : > { %2337 = vmatpush3.bf16.msra.mxu0 %v2454_v32  ;;  %2360 = vmatpush3.bf16.msra.mxu1 %v3038_v54  ;;  %v2033_v1 = vcombine.low %v719_v43, %v723_v0  ;;  %v715_v59 = vsel %vm2612_vm4, %v1994_v47, %v714_v28  ;;  %v727_v54 = vsel %vm2612_vm4, %v1997_v62, %v726_v36 }
  0x67   : > { %1735 = vmatmul.mubr.bf16.gmra.mrb[28].mxu1 %v2026_v35  ;;  %2353 = vmatprep.subr.bf16.mxu1 %v2454_v32  ;;  %v2032_v4 = vcombine.low %v711_v2, %v715_v59  ;;  %v731_v6 = vsel %vm2612_vm4, %v1998_v56, %v730_v10 }
  0x68   : > { %2342 = vmatprep.mubr.bf16.mxu1 %v2033_v1  ;;  %v2034_v27 = vcombine.low %v727_v54, %v731_v6 }
  0x6a   : > { %2361 = vmatpush3.bf16.msra.mxu1 %v2454_v32 }
  0x6c   : > { %2339 = vmatmul.mubr.bf16.vlgmr.msra.gmra.mrb[32].mxu0 %v2032_v4 }
  0x6f   : > { %2343 = vmatmul.mubr.bf16.vlgmr.msra.gmra.mrb[32].mxu1 %v2034_v27 }
  0xfa   : > { %v2166_v5 = vpop.f32.mrb[0].mxu0 }
  0xfb   : > { %v2206_v12 = vpop.f32.mrb[0].mxu1  ;;  %v2167_v9 = vpop.f32.mrb[1].mxu0 }
  0xfc   : > { %v2207_v28 = vpop.f32.mrb[1].mxu1  ;;  %v2168_v34 = vadd.f32 %v2167_v9, %v2166_v5  ;;  %v2169_v26 = vpop.f32.mrb[2].mxu0 }
  0xfd   : > { %v2208_v7 = vadd.f32 %v2207_v28, %v2206_v12  ;;  %v2209_v8 = vpop.f32.mrb[2].mxu1  ;;  %v2170_v55 = vpop.f32.mrb[3].mxu0 }
  0xfe   : > { %v2210_v36 = vpop.f32.mrb[3].mxu1  ;;  %v1518_v10 = vadd.f32 %v2168_v34, %v2035_v53  ;;  %v2171_v15 = vadd.f32 %v2170_v55, %v2169_v26 }
  0xff   : > { %v2211_v13 = vadd.f32 %v2210_v36, %v2209_v8 }
 0x100   : > { %v1583_v17 = vadd.f32 %v2208_v7, %v1518_v10  ;;  %v1521_v18 = vadd.f32 %v2171_v15, %v2035_v53 }
 0x102   : > { %v1586_v19 = vadd.f32 %v2211_v13, %v1521_v18  ;;  %v2172_v22 = vpop.f32.mrb[4].mxu0 }
 0x103   : > { %v2212_v20 = vpop.f32.mrb[4].mxu1  ;;  %v2173_v31 = vpop.f32.mrb[5].mxu0 }
 0x104   : > { %v2213_v23 = vpop.f32.mrb[5].mxu1  ;;  %v2174_v30 = vadd.f32 %v2173_v31, %v2172_v22  ;;  %v2175_v35 = vpop.f32.mrb[6].mxu0 }
 0x105   : > { %v2214_v32 = vadd.f32 %v2213_v23, %v2212_v20  ;;  %v2215_v33 = vpop.f32.mrb[6].mxu1  ;;  %v2176_v39 = vpop.f32.mrb[7].mxu0 }
 0x106   : > { %v2216_v38 = vpop.f32.mrb[7].mxu1  ;;  %v1526_v21 = vadd.f32 %v2174_v30, %v2035_v53  ;;  %v2177_v44 = vadd.f32 %v2176_v39, %v2175_v35 }
 0x107   : > { %v2217_v16 = vadd.f32 %v2216_v38, %v2215_v33 }
 0x108   : > { %v1591_v63 = vadd.f32 %v2214_v32, %v1526_v21  ;;  %v1529_v45 = vadd.f32 %v2177_v44, %v2035_v53 }
 0x10a   : > { %v1594_v46 = vadd.f32 %v2217_v16, %v1529_v45 }
 0x10c   : > { %v2178_v24 = vpop.f32.mrb[8].mxu0 }
 0x10d   : > { %v2218_v48 = vpop.f32.mrb[8].mxu1  ;;  %v2179_v61 = vpop.f32.mrb[9].mxu0 }
 0x10e   : > { %v2219_v40 = vpop.f32.mrb[9].mxu1  ;;  %v2180_v25 = vadd.f32 %v2179_v61, %v2178_v24  ;;  %v2181_v41 = vpop.f32.mrb[10].mxu0 }
 0x10f   : > { %v2220_v51 = vadd.f32 %v2219_v40, %v2218_v48  ;;  %v2221_v52 = vpop.f32.mrb[10].mxu1  ;;  %v2182_v14 = vpop.f32.mrb[11].mxu0 }
 0x110   : > { %v2222_v50 = vpop.f32.mrb[11].mxu1  ;;  %v1534_v29 = vadd.f32 %v2180_v25, %v2035_v53  ;;  %v2183_v49 = vadd.f32 %v2182_v14, %v2181_v41 }
 0x111   : > { %v2223_v37 = vadd.f32 %v2222_v50, %v2221_v52 }
 0x112   : > { %v1599_v42 = vadd.f32 %v2220_v51, %v1534_v29  ;;  %v1537_v3 = vadd.f32 %v2183_v49, %v2035_v53 }
 0x114   : > { %v1602_v11 = vadd.f32 %v2223_v37, %v1537_v3  ;;  %v2184_v43 = vpop.f32.mrb[12].mxu0 }
 0x115   : > { %v2224_v58 = vpop.f32.mrb[12].mxu1  ;;  %v2185_v60 = vpop.f32.mrb[13].mxu0 }
 0x116   : > { %v2225_v57 = vpop.f32.mrb[13].mxu1  ;;  %v2186_v56 = vadd.f32 %v2185_v60, %v2184_v43  ;;  %v2187_v0 = vpop.f32.mrb[14].mxu0 }
 0x117   : > { %v2226_v47 = vadd.f32 %v2225_v57, %v2224_v58  ;;  %v2227_v62 = vpop.f32.mrb[14].mxu1  ;;  %v2188_v2 = vpop.f32.mrb[15].mxu0 }
 0x118   : > { %v2228_v1 = vpop.f32.mrb[15].mxu1  ;;  %v1542_v4 = vadd.f32 %v2186_v56, %v2035_v53  ;;  %v2189_v54 = vadd.f32 %v2188_v2, %v2187_v0 }
 0x119   : > { %v2229_v59 = vadd.f32 %v2228_v1, %v2227_v62 }
 0x11a   : > { %v1607_v6 = vadd.f32 %v2226_v47, %v1542_v4  ;;  %v1545_v27 = vadd.f32 %v2189_v54, %v2035_v53 }
 0x11c   : > { %v1610_v12 = vadd.f32 %v2229_v59, %v1545_v27  ;;  %v2246_v28 = vpop.f32.mrb[16].mxu0 }
 0x11d   : > { %v2247_v5 = vpop.f32.mrb[17].mxu0 }
 0x11e   : > { %v2248_v7 = vadd.f32 %v2247_v5, %v2246_v28  ;;  %v2249_v8 = vpop.f32.mrb[18].mxu0 }
 0x11f   : > { %v2250_v9 = vpop.f32.mrb[19].mxu0 }
 0x120   : > { %v1648_v36 = vadd.f32 %v2248_v7, %v1583_v17  ;;  %v2251_v34 = vadd.f32 %v2250_v9, %v2249_v8  ;;  %v2286_v13 = vpop.f32.mrb[16].mxu1 }
 0x121   : > { %v2287_v55 = vpop.f32.mrb[17].mxu1 }
 0x122   : > { %v1651_v26 = vadd.f32 %v2251_v34, %v1586_v19  ;;  %v2288_v10 = vadd.f32 %v2287_v55, %v2286_v13  ;;  %v2289_v15 = vpop.f32.mrb[18].mxu1 }
 0x123   : > { %v2290_v18 = vpop.f32.mrb[19].mxu1 }
 0x124   : > { %v2291_v20 = vadd.f32 %v2290_v18, %v2289_v15  ;;  %v1713_v22 = vadd.f32 %v2288_v10, %v1648_v36 }
 0x126   : > { %v1716_v23 = vadd.f32 %v2291_v20, %v1651_v26 }
 0x127   : > { %v2252_v31 = vpop.f32.mrb[20].mxu0 }
 0x128   : > { %v2253_v32 = vpop.f32.mrb[21].mxu0  ;;  %v2292_v53 = vpop.f32.mrb[20].mxu1 }
 0x129   : > { %v2254_v33 = vadd.f32 %v2253_v32, %v2252_v31  ;;  %v2255_v30 = vpop.f32.mrb[22].mxu0  ;;  %v2293_v35 = vpop.f32.mrb[21].mxu1 }
 0x12a   : > { %v2256_v38 = vpop.f32.mrb[23].mxu0  ;;  %v2294_v16 = vadd.f32 %v2293_v35, %v2292_v53  ;;  %v2295_v17 = vpop.f32.mrb[22].mxu1 }
 0x12b   : > { %v1656_v39 = vadd.f32 %v2254_v33, %v1591_v63  ;;  %v2257_v21 = vadd.f32 %v2256_v38, %v2255_v30  ;;  %v2296_v19 = vpop.f32.mrb[23].mxu1 }
 0x12c   : > { %v2297_v45 = vadd.f32 %v2296_v19, %v2295_v17 }
 0x12d   : > { %v1659_v44 = vadd.f32 %v2257_v21, %v1594_v46  ;;  %v1721_v48 = vadd.f32 %v2294_v16, %v1656_v39 }
 0x12f   : > { %v2258_v24 = vpop.f32.mrb[24].mxu0  ;;  %v1724_v40 = vadd.f32 %v2297_v45, %v1659_v44 }
 0x130   : > { %v2259_v61 = vpop.f32.mrb[25].mxu0 }
 0x131   : > { %v2260_v51 = vadd.f32 %v2259_v61, %v2258_v24  ;;  %v2261_v52 = vpop.f32.mrb[26].mxu0 }
 0x132   : > { %v2262_v25 = vpop.f32.mrb[27].mxu0  ;;  %v2298_v41 = vpop.f32.mrb[24].mxu1 }
 0x133   : > { %v1664_v50 = vadd.f32 %v2260_v51, %v1599_v42  ;;  %v2263_v14 = vadd.f32 %v2262_v25, %v2261_v52  ;;  %v2299_v37 = vpop.f32.mrb[25].mxu1 }
 0x134   : > { %v2300_v29 = vadd.f32 %v2299_v37, %v2298_v41  ;;  %v2301_v49 = vpop.f32.mrb[26].mxu1 }
 0x135   : > { %v1667_v63 = vadd.f32 %v2263_v14, %v1602_v11  ;;  %v2302_v3 = vpop.f32.mrb[27].mxu1 }
 0x136   : > { %v2303_v58 = vadd.f32 %v2302_v3, %v2301_v49  ;;  %v1729_v43 = vadd.f32 %v2300_v29, %v1664_v50 }
 0x137   : > { %v2264_v57 = vpop.f32.mrb[28].mxu0 }
 0x138   : > { %v2265_v46 = vpop.f32.mrb[29].mxu0  ;;  %v1732_v60 = vadd.f32 %v2303_v58, %v1667_v63 }
 0x139   : > { %v2266_v47 = vadd.f32 %v2265_v46, %v2264_v57  ;;  %v2267_v62 = vpop.f32.mrb[30].mxu0 }
 0x13a   : > { %v2304_v56 = vpop.f32.mrb[28].mxu1  ;;  %v2268_v0 = vpop.f32.mrb[31].mxu0 }
 0x13b   : > { %v1672_v1 = vadd.f32 %v2266_v47, %v1607_v6  ;;  %v2305_v2 = vpop.f32.mrb[29].mxu1  ;;  %v2269_v59 = vadd.f32 %v2268_v0, %v2267_v62 }
 0x13c   : > { %v2306_v4 = vadd.f32 %v2305_v2, %v2304_v56  ;;  %v2307_v42 = vpop.f32.mrb[30].mxu1 }
 0x13d   : > { %v1675_v54 = vadd.f32 %v2269_v59, %v1610_v12  ;;  %v2308_v27 = vpop.f32.mrb[31].mxu1 }
 0x13e   : > { %v2309_v28 = vadd.f32 %v2308_v27, %v2307_v42  ;;  %v1737_v5 = vadd.f32 %v2306_v4, %v1672_v1 }
 0x13f   : > { %v2340_v11 = vpop.f32.mrb[32].mxu0 }
 0x140   : > { %v1786_v7 = vadd.f32 %v2340_v11, %v1721_v48  ;;  %v1777_v8 = vpop.f32.mrb[33].mxu0  ;;  %v1740_v9 = vadd.f32 %v2309_v28, %v1675_v54 }
 0x141   : > { %v1778_v36 = vadd.f32 %v1777_v8, %v1713_v22  ;;  %v2341_v34 = vpop.f32.mrb[34].mxu0 }
 0x142   : > { %v1810_v26 = vmul.f32 0.1, %v1786_v7  ;;  %v2344_v13 = vpop.f32.mrb[32].mxu1  ;;  %v1789_v55 = vadd.f32 %v2341_v34, %v1724_v40  ;;  %v1780_v10 = vpop.f32.mrb[35].mxu0 }
 0x143   : > { %v1802_v6 = vadd.f32 %v2344_v13, %v1737_v5  ;;  %v1808_v15 = vmul.f32 0.1, %v1778_v36  ;;  %v1793_v18 = vpop.f32.mrb[33].mxu1  ;;  %v1781_v20 = vadd.f32 %v1780_v10, %v1716_v23 }
 0x144   : > { %v1794_v31 = vadd.f32 %v1793_v18, %v1729_v43  ;;  %v1811_v12 = vmul.f32 0.1, %v1789_v55  ;;  %v2345_v32 = vpop.f32.mrb[34].mxu1  ;;  %v1818_v38 = vmax.f32 %v1786_v7, %v1810_v26 }
 0x145   : > { %v1814_v53 = vmul.f32 0.1, %v1802_v6  ;;  %v1805_v33 = vadd.f32 %v2345_v32, %v1740_v9  ;;  %v1809_v30 = vmul.f32 0.1, %v1781_v20  ;;  %v1796_v35 = vpop.f32.mrb[35].mxu1  ;;  %v1816_v17 = vmax.f32 %v1778_v36, %v1808_v15 }
 0x146   : > { %v1812_v39 = vmul.f32 0.1, %v1794_v31  ;;  %v1819_v22 = vmax.f32 %v1789_v55, %v1811_v12  ;;  %v1797_v16 = vadd.f32 %v1796_v35, %v1732_v60 }
 0x147   : > { %v1815_v21 = vmul.f32 0.1, %v1805_v33  ;;  %v1817_v19 = vmax.f32 %v1781_v20, %v1809_v30  ;;  %v1822_v45 = vmax.f32 %v1802_v6, %v1814_v53 }
 0x148   : > { %v2135_v23 = vpack.c.bf16 %v1819_v22, %v1818_v38  ;;  %v1813_v44 = vmul.f32 0.1, %v1797_v16  ;;  %v1820_v40 = vmax.f32 %v1794_v31, %v1812_v39 }
 0x149   : > { %v1823_v48 = vmax.f32 %v1805_v33, %v1815_v21  ;;  %v2130_v24 = vpack.c.bf16 %v1817_v19, %v1816_v17 }
 0x14a   : > { %2147 = vst [vmem:[%s170_s19 + $0x8] sm:$0xff] %v2135_v23   ;;  %v1821_v61 = vmax.f32 %v1797_v16, %v1813_v44 }
 0x14b   : > { %v2145_v51 = vpack.c.bf16 %v1823_v48, %v1822_v45  ;;  %2131 = vst [vmem:[%s170_s19] sm:$0xff] %v2130_v24  }
 0x14c   : > { %v2140_v52 = vpack.c.bf16 %v1821_v61, %v1820_v40 }
 0x14d   : > { %2149 = vst [vmem:[%s170_s19 + $0x18] sm:$0xff] %v2145_v51  }
 0x14e   : > { %2148 = vst [vmem:[%s170_s19 + $0x10] sm:$0xff] %v2140_v52  }
 0x14f PF: > { %s13_s12 = sadd.s32 1, %s2461_s12  }
 0x150   : > { %p10_p4 = scmp.ge.s32.totalorder %s13_s12, 4  }
 0x152   :  { %12 = sbr.rel (!%p10_p4) target bundleno = 1 (0x1), region = 64 }

// kernel: basic_conv_encoder.7
= control target key start
LH: loop header
LB: loop body
LE: loop exit
PB: predicated region body
PF: predicated region fallthrough
CT: control target
= control target key end

     0   :  { %s1803_s12 = smov 0   ;;  %s2117_s0 = inlined_call_operand.vmem [shape: bf16[2,4,5,9,128], index: 0, kind: input, shape index: {}]   ;;  %s2118_s1 = inlined_call_operand.vmem [shape: bf16[1152,128], index: 1, kind: input, shape index: {}]   ;;  %s2119_s2 = inlined_call_operand.vmem [shape: f32[1,128], index: 2, kind: input, shape index: {}]   ;;  %s2120_s3 = inlined_call_operand.vmem [shape: bf16[2,32,128], index: 3, kind: output, shape index: {}]  }
   0x1 LB: > { %s1391_s13 = sadd.s32 4294967295, %s1781_s12   ;;  %p1395_p0 = scmp.ge.s32.totalorder %s1781_s12, 1  ;;  %s1781_s12 = sphi %s1803_s12, %s13_s12  }
   0x2   : > { %p137_p1 = scmp.lt.s32.totalorder %s1781_s12, 3 }
   0x4   : > { %p138_p2 = pnand %p1395_p0, %p137_p1 }
   0x5   : > { %v1691_v0 = vld [vmem:[%s2118_s1 + $0x40] sm:$0xff] (!%p138_p2)   ;;  %v1695_v4 = vld [vmem:[%s2118_s1 + $0x48] sm:$0xff] (!%p138_p2)   ;;  %v1699_v8 = vld [vmem:[%s2118_s1 + $0x50] sm:$0xff] (!%p138_p2)   ;;  %p161_p3 = scmp.lt.s32.totalorder (!%p138_p2), %s1391_s13, 1  ;;  %vm185_vm0 = vsmask.f32 (!%p138_p2), 3328 }
   0x6   : > { %141 = sbr.rel (%p138_p2) target bundleno = 326 (0x146), region = 32  ;;  %v1692_v1 = vld [vmem:[%s2118_s1] sm:$0xff] (!%p138_p2)   ;;  %1540 = vmatprep.subr.bf16.mxu0 (!%p138_p2), %v1691_v0  ;;  %v1696_v5 = vld [vmem:[%s2118_s1 + $0x8] sm:$0xff] (!%p138_p2)   ;;  %v1700_v9 = vld [vmem:[%s2118_s1 + $0x10] sm:$0xff] (!%p138_p2)   ;;  %vm186_vm1 = vsmask.f32 (!%p138_p2), 7440 }
   0x7   : > { %v1693_v2 = vld [vmem:[%s2118_s1 + $0xc0] sm:$0xff] (!%p138_p2)   ;;  %1541 = vmatpush3.bf16.msra.mxu0 (!%p138_p2), %v1692_v1  ;;  %v1697_v6 = vld [vmem:[%s2118_s1 + $0xc8] sm:$0xff] (!%p138_p2)   ;;  %v1701_v10 = vld [vmem:[%s2118_s1 + $0xd0] sm:$0xff] (!%p138_p2)  }
   0x8   : > { %v1694_v3 = vld [vmem:[%s2118_s1 + $0x80] sm:$0xff] (!%p138_p2)   ;;  %1568 = vmatprep.subr.bf16.mxu1 (!%p138_p2), %v1693_v2  ;;  %1542 = vmatprep.subr.bf16.mxu0 (!%p138_p2), %v1695_v4  ;;  %v1698_v7 = vld [vmem:[%s2118_s1 + $0x88] sm:$0xff] (!%p138_p2)   ;;  %v1702_v11 = vld [vmem:[%s2118_s1 + $0x90] sm:$0xff] (!%p138_p2)  }
   0x9   : > { %1569 = vmatpush3.bf16.msra.mxu1 (!%p138_p2), %v1694_v3  ;;  %v1703_v12 = vld [vmem:[%s2118_s1 + $0x58] sm:$0xff] (!%p138_p2)   ;;  %v1707_v16 = vld [vmem:[%s2118_s1 + $0x60] sm:$0xff] (!%p138_p2)   ;;  %v1711_v20 = vld [vmem:[%s2118_s1 + $0x68] sm:$0xff] (!%p138_p2)  }
   0xa   : > { %1570 = vmatprep.subr.bf16.mxu1 (!%p138_p2), %v1697_v6  ;;  %v1704_v13 = vld [vmem:[%s2118_s1 + $0x18] sm:$0xff] (!%p138_p2)   ;;  %v1708_v17 = vld [vmem:[%s2118_s1 + $0x20] sm:$0xff] (!%p138_p2)   ;;  %v1712_v21 = vld [vmem:[%s2118_s1 + $0x28] sm:$0xff] (!%p138_p2)  }
   0xb   : > { %1543 = vmatpush3.bf16.msra.mxu0 (!%p138_p2), %v1696_v5  ;;  %v1705_v14 = vld [vmem:[%s2118_s1 + $0xd8] sm:$0xff] (!%p138_p2)   ;;  %v1709_v18 = vld [vmem:[%s2118_s1 + $0xe0] sm:$0xff] (!%p138_p2)   ;;  %v1713_v22 = vld [vmem:[%s2118_s1 + $0xe8] sm:$0xff] (!%p138_p2)  }
   0xc   : > { %1544 = vmatprep.subr.bf16.mxu0 (!%p138_p2), %v1699_v8  ;;  %v1706_v15 = vld [vmem:[%s2118_s1 + $0x98] sm:$0xff] (!%p138_p2)   ;;  %v1710_v19 = vld [vmem:[%s2118_s1 + $0xa0] sm:$0xff] (!%p138_p2)   ;;  %v1714_v23 = vld [vmem:[%s2118_s1 + $0xa8] sm:$0xff] (!%p138_p2)  }
   0xd   : > { %1571 = vmatpush3.bf16.msra.mxu1 %v1698_v7  ;;  %s2124_s13 = smov (!%p161_p3, %s1391_s13), 1  ;;  %v1715_v24 = vld [vmem:[%s2118_s1 + $0x70] sm:$0xff]   ;;  %v1719_v28 = vld [vmem:[%s2118_s1 + $0x78] sm:$0xff]   ;;  %v1725_v40 = vld [vmem:[%s2118_s1 + $0x140] sm:$0xff]  }
   0xe   : > { %1572 = vmatprep.subr.bf16.mxu1 %v1701_v10  ;;  %v1716_v25 = vld [vmem:[%s2118_s1 + $0x30] sm:$0xff]   ;;  %s1682_s18 = smul.u32 160, %s2124_s13  ;;  %v1720_v29 = vld [vmem:[%s2118_s1 + $0x38] sm:$0xff]   ;;  %v1727_v48 = vld [vmem:[%s2118_s1 + $0x100] sm:$0xff]   ;;  %s1524_s16 = sshll.u32 %s2124_s13, 4 }
   0xf   : > { %1545 = vmatpush3.bf16.msra.mxu0 %v1700_v9  ;;  %v1717_v26 = vld [vmem:[%s2118_s1 + $0xf0] sm:$0xff]   ;;  %v1721_v30 = vld [vmem:[%s2118_s1 + $0xf8] sm:$0xff]   ;;  %vm1938_vm2 = vmor %vm185_vm0, %vm186_vm1  ;;  %s170_s19 = scalar_lea.vmem %s2120_s3, %s1524_s16 }
  0x10   : > { %1546 = vmatprep.subr.bf16.mxu0 %v1703_v12  ;;  %v1718_v27 = vld [vmem:[%s2118_s1 + $0xb0] sm:$0xff]   ;;  %s1914_s29 = scalar_lea.vmem %s2117_s0, %s1682_s18  ;;  %v1723_v32 = vld [vmem:[%s2118_s1 + $0xb8] sm:$0xff]   ;;  %v1728_v58 = vld [vmem:[%s2118_s1 + $0x1c0] sm:$0xff]  }
  0x11   : > { %1573 = vmatpush3.bf16.msra.mxu1 %v1702_v11  ;;  %v1722_v31 = vld [vmem:[%s1914_s29 + $0x28] ss:$8 sps:$4 sm:$0xff]   ;;  %v172_v33 = vld [vmem:[%s1914_s29] sm:$0xf]  ;;  %v1929_v42 = vld [vmem:[%s1914_s29 + $0x58] sm:$0xf] }
  0x12   : > { %1574 = vmatprep.subr.bf16.mxu1 %v1705_v14  ;;  %1095 = vmatprep.mubr.bf16.mxu0 %v1722_v31  ;;  %v173_v34 = vld [vmem:[%s1914_s29 + $0x8] sm:$0xf]  ;;  %v189_v35 = vshrl.u32 %v172_v33, 16  ;;  %v192_v36 = vshll.u32 %v172_v33, 16  ;;  %v1926_v41 = vld [vmem:[%s1914_s29 + $0x50] sm:$0xf] }
  0x13   : > { %1547 = vmatpush3.bf16.msra.mxu0 %v1704_v13  ;;  %v203_v37 = vshrl.u32 %v173_v34, 16  ;;  %v206_v38 = vshll.u32 %v173_v34, 16  ;;  %v1427_v39 = vcombine.low %v172_v33, %v173_v34  ;;  %v1433_v47 = vcombine.low %v1926_v41, %v1929_v42  ;;  %v181_v49 = vld [vmem:[%s1914_s29 + $0x4] sm:$0x1]  ;;  %v182_v50 = vld [vmem:[%s1914_s29 + $0xc] sm:$0x1] }
  0x14   : > { %1548 = vmatprep.subr.bf16.mxu0 %v1707_v16  ;;  %v191_v43 = vrot.slane %v189_v35, 4  ;;  %v194_v44 = vrot.slane %v192_v36, 5  ;;  %v198_v54 = vshll.u32 %v181_v49, 16  ;;  %v212_v57 = vshll.u32 %v182_v50, 16  ;;  %v1729_v61 = vld [vmem:[%s2118_s1 + $0x180] sm:$0xff]   ;;  %v1730_v62 = vld [vmem:[%s2118_s1 + $0x148] sm:$0xff]  }
  0x15   : > { %1575 = vmatpush3.bf16.msra.mxu1 %v1706_v15  ;;  %v205_v45 = vrot.slane %v203_v37, 4  ;;  %v208_v46 = vrot.slane %v206_v38, 5  ;;  %1144 = vmatprep.mubr.bf16.mxu1 %v1433_v47  ;;  %v1731_v1 = vld [vmem:[%s2118_s1 + $0x108] sm:$0xff]   ;;  %v1734_v5 = vld [vmem:[%s2118_s1 + $0x150] sm:$0xff]   ;;  %v1738_v9 = vld [vmem:[%s2118_s1 + $0x158] sm:$0xff]   ;;  %v259_v14 = vshrl.u32 %v1926_v41, 16 }
  0x16   : > { %1576 = vmatprep.subr.bf16.mxu1 %v1709_v18  ;;  %v195_v51 = vor.u32 %v194_v44, %v191_v43  ;;  %v200_v59 = vrot.slane %v198_v54, 5  ;;  %v214_v60 = vrot.slane %v212_v57, 5  ;;  %v1732_v3 = vld [vmem:[%s2118_s1 + $0x1c8] sm:$0xff]   ;;  %v1735_v6 = vld [vmem:[%s2118_s1 + $0x110] sm:$0xff]   ;;  %v1739_v10 = vld [vmem:[%s2118_s1 + $0x118] sm:$0xff]   ;;  %v262_v16 = vshll.u32 %v1926_v41, 16 }
  0x17   : > { %1549 = vmatpush3.bf16.msra.mxu0 %v1708_v17  ;;  %v209_v52 = vor.u32 %v208_v46, %v205_v45  ;;  %v1733_v4 = vld [vmem:[%s2118_s1 + $0x188] sm:$0xff]   ;;  %v1736_v7 = vld [vmem:[%s2118_s1 + $0x1d0] sm:$0xff]   ;;  %v1740_v11 = vld [vmem:[%s2118_s1 + $0x1d8] sm:$0xff]   ;;  %v273_v18 = vshrl.u32 %v1929_v42, 16 }
  0x18   : > { %1550 = vmatprep.subr.bf16.mxu0 %v1711_v20  ;;  %v196_v53 = vrot.slane %v195_v51, 4  ;;  %v1737_v8 = vld [vmem:[%s2118_s1 + $0x190] sm:$0xff]   ;;  %v1741_v12 = vld [vmem:[%s2118_s1 + $0x198] sm:$0xff]   ;;  %v1742_v13 = vld [vmem:[%s2118_s1 + $0x160] sm:$0xff]   ;;  %v276_v20 = vshll.u32 %v1929_v42, 16  ;;  %v264_v31 = vrot.slane %v262_v16, 5 }
  0x19   : > { %1577 = vmatpush3.bf16.msra.mxu1 %v1710_v19  ;;  %v210_v56 = vrot.slane %v209_v52, 4  ;;  %v1743_v15 = vld [vmem:[%s2118_s1 + $0x120] sm:$0xff]   ;;  %v1750_v33 = vld [vmem:[%s2118_s1 + $0x1e8] sm:$0xff]   ;;  %v275_v44 = vrot.slane %v273_v18, 4  ;;  %v183_v47 = vld [vmem:[%s1914_s29 + $0x14] sm:$0x1] }
  0x1a   : > { %1578 = vmatprep.subr.bf16.mxu1 %v1713_v22  ;;  %v201_v63 = vsel %vm1938_vm2, %v196_v53, %v200_v59  ;;  %v1744_v17 = vld [vmem:[%s2118_s1 + $0x1e0] sm:$0xff]   ;;  %v1752_v46 = vld [vmem:[%s2118_s1 + $0x1a8] sm:$0xff]   ;;  %v278_v50 = vrot.slane %v276_v20, 5  ;;  %v184_v54 = vld [vmem:[%s1914_s29 + $0x1c] sm:$0x1]  ;;  %v226_v57 = vshll.u32 %v183_v47, 16 }
  0x1b   : > { %1551 = vmatpush3.bf16.msra.mxu0 %v1712_v21  ;;  %v215_v0 = vsel %vm1938_vm2, %v210_v56, %v214_v60  ;;  %v1745_v19 = vld [vmem:[%s2118_s1 + $0x1a0] sm:$0xff]   ;;  %v1746_v21 = vld [vmem:[%s2118_s1 + $0x168] sm:$0xff]   ;;  %v240_v59 = vshll.u32 %v184_v54, 16  ;;  %v1412_v16 = vld [vmem:[%s1914_s29 + $0x5c] sm:$0x1] }
  0x1c   : > { %1552 = vmatprep.subr.bf16.mxu0 %v1715_v24  ;;  %v1431_v2 = vcombine.low %v201_v63, %v215_v0  ;;  %v1747_v22 = vld [vmem:[%s1914_s29 + $0x38] ss:$8 sps:$4 sm:$0xff]   ;;  %v1748_v24 = vld [vmem:[%s2118_s1 + $0x128] sm:$0xff]   ;;  %v228_v63 = vrot.slane %v226_v57, 5 }
  0x1d   : > { %1579 = vmatpush3.bf16.msra.mxu1 %v1714_v23  ;;  %v261_v23 = vrot.slane %v259_v14, 4  ;;  %v1405_v34 = vld [vmem:[%s1914_s29 + $0x60] sm:$0xf]  ;;  %v242_v0 = vrot.slane %v240_v59, 5  ;;  %v1411_v14 = vld [vmem:[%s1914_s29 + $0x54] sm:$0x1] }
  0x1e   : > { %1580 = vmatprep.subr.bf16.mxu1 %v1717_v26  ;;  %v175_v26 = vld [vmem:[%s1914_s29 + $0x18] sm:$0xf]  ;;  %v290_v41 = vshll.u32 %v1405_v34, 16  ;;  %v1762_v20 = vld [vmem:[%s2118_s1 + $0x200] sm:$0xff]  }
  0x1f   : > { %1553 = vmatpush3.bf16.msra.mxu0 %v1716_v25  ;;  %v174_v25 = vld [vmem:[%s1914_s29 + $0x10] sm:$0xf]  ;;  %v1760_v18 = vld [vmem:[%s2118_s1 + $0x1b8] sm:$0xff]  }
  0x20   : > { %1554 = vmatprep.subr.bf16.mxu0 %v1719_v28  ;;  %v220_v28 = vshll.u32 %v174_v25, 16  ;;  %v292_v52 = vrot.slane %v290_v41, 5  ;;  %v1417_v41 = vld [vmem:[%s1914_s29 + $0x18] sm:$0xf] }
  0x21   : > { %1581 = vmatpush3.bf16.msra.mxu1 %v1718_v27  ;;  %v217_v27 = vshrl.u32 %v174_v25, 16 }
  0x22   : > { %1582 = vmatprep.subr.bf16.mxu1 %v1721_v30  ;;  %v234_v30 = vshll.u32 %v175_v26, 16  ;;  %v222_v36 = vrot.slane %v220_v28, 5 }
  0x23   : > { %1555 = vmatpush3.bf16.msra.mxu0 %v1720_v29  ;;  %v231_v29 = vshrl.u32 %v175_v26, 16  ;;  %v219_v35 = vrot.slane %v217_v27, 4  ;;  %v1763_v27 = vld [vmem:[%s1914_s29 + $0x30] ss:$8 sps:$4 sm:$0xff]  }
  0x24   : > { %1596 = vmatprep.subr.bf16.mxu0 %v1725_v40  ;;  %v236_v38 = vrot.slane %v234_v30, 5  ;;  %v287_v40 = vshrl.u32 %v1405_v34, 16  ;;  %v1416_v30 = vld [vmem:[%s1914_s29 + $0x10] sm:$0xf] }
  0x25   : > { %1583 = vmatpush3.bf16.msra.mxu1 %v1723_v32  ;;  %v1428_v32 = vcombine.low %v174_v25, %v175_v26  ;;  %v233_v37 = vrot.slane %v231_v29, 4  ;;  %v1415_v29 = vld [vmem:[%s1914_s29 + $0x8] sm:$0xf]  ;;  %v343_v59 = vshrl.u32 %v1416_v30, 16 }
  0x26   : > { %1096 = vmatmul.mubr.bf16.vlgmr.msra.gmra.mrb[0].mxu0 %v1427_v39  ;;  %1624 = vmatprep.subr.bf16.mxu1 %v1728_v58  ;;  %v1406_v39 = vld [vmem:[%s1914_s29 + $0x68] sm:$0xf]  ;;  %v289_v51 = vrot.slane %v287_v40, 4  ;;  %v332_v57 = vshll.u32 %v1415_v29, 16 }
  0x27   : > { %1597 = vmatpush3.bf16.msra.mxu0 %v1727_v48  ;;  %1103 = vmatprep.mubr.bf16.mxu0 %v1747_v22  ;;  %v301_v42 = vshrl.u32 %v1406_v39, 16  ;;  %v304_v43 = vshll.u32 %v1406_v39, 16  ;;  %v1434_v45 = vcombine.low %v1405_v34, %v1406_v39  ;;  %v223_v48 = vor.u32 %v222_v36, %v219_v35  ;;  %v1413_v34 = vld [vmem:[%s1914_s29 + $0x64] sm:$0x1]  ;;  %v1414_v35 = vld [vmem:[%s1914_s29 + $0x6c] sm:$0x1] }
  0x28   : > { %1598 = vmatprep.subr.bf16.mxu0 %v1730_v62  ;;  %1145 = vmatmul.mubr.bf16.vlgmr.msra.gmra.mrb[0].mxu1 %v1431_v2  ;;  %v237_v49 = vor.u32 %v236_v38, %v233_v37  ;;  %v265_v62 = vor.u32 %v264_v31, %v261_v23  ;;  %v1755_v2 = vld [vmem:[%s2118_s1 + $0x1f0] sm:$0xff]   ;;  %v1765_v31 = vld [vmem:[%s2118_s1 + $0x208] sm:$0xff]   ;;  %v296_v36 = vshll.u32 %v1413_v34, 16  ;;  %v310_v37 = vshll.u32 %v1414_v35, 16 }
  0x29   : > { %1625 = vmatpush3.bf16.msra.mxu1 %v1729_v61  ;;  %v303_v53 = vrot.slane %v301_v42, 4  ;;  %1152 = vmatprep.mubr.bf16.mxu1 %v1434_v45  ;;  %v224_v56 = vrot.slane %v223_v48, 4  ;;  %v306_v60 = vrot.slane %v304_v43, 5  ;;  %v1753_v61 = vld [vmem:[%s2118_s1 + $0x170] sm:$0xff]   ;;  %v1768_v40 = vld [vmem:[%s1914_s29 + $0x40] ss:$8 sps:$4 sm:$0xff]  }
  0x2a   : > { %1626 = vmatprep.subr.bf16.mxu1 %v1732_v3  ;;  %v238_v58 = vrot.slane %v237_v49, 4  ;;  %v279_v3 = vor.u32 %v278_v50, %v275_v44  ;;  %v298_v38 = vrot.slane %v296_v36, 5  ;;  %v312_v39 = vrot.slane %v310_v37, 5  ;;  %v1418_v42 = vld [vmem:[%s1914_s29 + $0x20] sm:$0xf]  ;;  %v1767_v45 = vld [vmem:[%s2118_s1 + $0x210] sm:$0xff]  }
  0x2b   : > { %1599 = vmatpush3.bf16.msra.mxu0 %v1731_v1  ;;  %v1754_v1 = vld [vmem:[%s2118_s1 + $0x130] sm:$0xff]   ;;  %v1440_v47 = vcombine.low %v1417_v41, %v1418_v42  ;;  %v357_v49 = vshrl.u32 %v1417_v41, 16  ;;  %v1770_v50 = vld [vmem:[%s2118_s1 + $0x218] sm:$0xff]   ;;  %v371_v54 = vshrl.u32 %v1418_v42, 16 }
  0x2c   : > { %1600 = vmatprep.subr.bf16.mxu0 %v1734_v5  ;;  %v243_v5 = vsel %vm1938_vm2, %v238_v58, %v242_v0  ;;  %v1766_v48 = vld [vmem:[%s1914_s29 + $0x88] ss:$8 sps:$4 sm:$0xff]   ;;  %v1771_v0 = vld [vmem:[%s2118_s1 + $0x220] sm:$0xff]  }
  0x2d   : > { %1627 = vmatpush3.bf16.msra.mxu1 %v1733_v4  ;;  %v229_v4 = vsel %vm1938_vm2, %v224_v56, %v228_v63  ;;  %v1424_v56 = vld [vmem:[%s1914_s29 + $0x14] sm:$0x1] }
  0x2e   : > { %1628 = vmatprep.subr.bf16.mxu1 %v1736_v7  ;;  %1104 = vmatmul.mubr.bf16.gmra.mrb[4].mxu0 %v1428_v32  ;;  %v1432_v7 = vcombine.low %v229_v4, %v243_v5  ;;  %v352_v63 = vshll.u32 %v1424_v56, 16  ;;  %v359_v4 = vrot.slane %v357_v49, 4 }
  0x2f   : > { %1601 = vmatpush3.bf16.msra.mxu0 %v1735_v6  ;;  %v1756_v6 = vld [vmem:[%s2118_s1 + $0x1b0] sm:$0xff]  }
  0x30   : > { %1602 = vmatprep.subr.bf16.mxu0 %v1738_v9  ;;  %v266_v9 = vrot.slane %v265_v62, 4  ;;  %1153 = vmatmul.mubr.bf16.gmra.mrb[4].mxu1 %v1432_v7  ;;  %v346_v62 = vshll.u32 %v1416_v30, 16 }
  0x31   : > { %1629 = vmatpush3.bf16.msra.mxu1 %v1737_v8  ;;  %v1757_v8 = vld [vmem:[%s2118_s1 + $0x178] sm:$0xff]   ;;  %1242 = vmatprep.mubr.bf16.mxu1 %v1763_v27 }
  0x32   : > { %1630 = vmatprep.subr.bf16.mxu1 %v1740_v11  ;;  %v293_v11 = vor.u32 %v292_v52, %v289_v51  ;;  %v360_v51 = vshll.u32 %v1417_v41, 16  ;;  %v1423_v52 = vld [vmem:[%s1914_s29 + $0xc] sm:$0x1] }
  0x33   : > { %1603 = vmatpush3.bf16.msra.mxu0 %v1739_v10  ;;  %v1758_v10 = vld [vmem:[%s2118_s1 + $0x138] sm:$0xff]   ;;  %v338_v58 = vshll.u32 %v1423_v52, 16 }
  0x34   : > { %1604 = vmatprep.subr.bf16.mxu0 %v1742_v13  ;;  %v1759_v13 = vld [vmem:[%s2118_s1 + $0x1f8] sm:$0xff]   ;;  %v294_v22 = vrot.slane %v293_v11, 4  ;;  %v362_v5 = vrot.slane %v360_v51, 5  ;;  %v354_v11 = vrot.slane %v352_v63, 5 }
  0x35   : > { %1631 = vmatpush3.bf16.msra.mxu1 %v1741_v12  ;;  %v280_v12 = vrot.slane %v279_v3, 4  ;;  %v348_v3 = vrot.slane %v346_v62, 5  ;;  %v340_v7 = vrot.slane %v338_v58, 5 }
  0x36   : > { %1632 = vmatprep.subr.bf16.mxu1 %v1744_v17  ;;  %v268_v17 = vshll.u32 %v1411_v14, 16  ;;  %v299_v43 = vsel %vm1938_vm2, %v294_v22, %v298_v38  ;;  %v1425_v14 = vld [vmem:[%s1914_s29 + $0x1c] sm:$0x1] }
  0x37   : > { %1605 = vmatpush3.bf16.msra.mxu0 %v1743_v15  ;;  %v307_v15 = vor.u32 %v306_v60, %v303_v53  ;;  %v329_v53 = vshrl.u32 %v1415_v29, 16  ;;  %v374_v60 = vshll.u32 %v1418_v42, 16 }
  0x38   : > { %1606 = vmatprep.subr.bf16.mxu0 %v1746_v21  ;;  %v270_v21 = vrot.slane %v268_v17, 5  ;;  %v363_v17 = vor.u32 %v362_v5, %v359_v4 }
  0x39   : > { %1633 = vmatpush3.bf16.msra.mxu1 %v1745_v19  ;;  %v282_v19 = vshll.u32 %v1412_v16, 16  ;;  %v308_v25 = vrot.slane %v307_v15, 4  ;;  %v1426_v15 = vld [vmem:[%s1914_s29 + $0x24] sm:$0x1] }
  0x3a   : > { %1634 = vmatprep.subr.bf16.mxu1 %v1750_v33  ;;  %v271_v26 = vsel %vm1938_vm2, %v266_v9, %v270_v21  ;;  %v1439_v33 = vcombine.low %v1415_v29, %v1416_v30  ;;  %v376_v9 = vrot.slane %v374_v60, 5  ;;  %v366_v21 = vshll.u32 %v1425_v14, 16  ;;  %v1774_v29 = vld [vmem:[%s2118_s1 + $0x238] sm:$0xff]  }
  0x3b   : > { %1607 = vmatpush3.bf16.msra.mxu0 %v1748_v24  ;;  %v284_v23 = vrot.slane %v282_v19, 5  ;;  %v1761_v24 = vld [vmem:[%s1914_s29 + $0x78] ss:$8 sps:$4 sm:$0xff]   ;;  %v313_v44 = vsel %vm1938_vm2, %v308_v25, %v312_v39  ;;  %v380_v22 = vshll.u32 %v1426_v15, 16  ;;  %v364_v25 = vrot.slane %v363_v17, 4 }
  0x3c   : > { %1608 = vmatprep.subr.bf16.mxu0 %v1753_v61  ;;  %v331_v61 = vrot.slane %v329_v53, 4  ;;  %v368_v27 = vrot.slane %v366_v21, 5  ;;  %v1445_v39 = vld [vmem:[%s2119_s2] ss:$0 sm:$0xff] }
  0x3d   : > { %1635 = vmatpush3.bf16.msra.mxu1 %v1752_v46  ;;  %v285_v28 = vsel %vm1938_vm2, %v280_v12, %v284_v23  ;;  %v1438_v46 = vcombine.low %v299_v43, %v313_v44  ;;  %v1772_v12 = vld [vmem:[%s2118_s1 + $0x228] sm:$0xff]   ;;  %v1773_v23 = vld [vmem:[%s2118_s1 + $0x230] sm:$0xff]  }
  0x3e   : > { %1636 = vmatprep.subr.bf16.mxu1 %v1755_v2  ;;  %v1437_v32 = vcombine.low %v271_v26, %v285_v28  ;;  %v345_v2 = vrot.slane %v343_v59, 4  ;;  %v382_v28 = vrot.slane %v380_v22, 5  ;;  %v369_v30 = vsel %vm1938_vm2, %v364_v25, %v368_v27 }
  0x3f   : > { %1609 = vmatpush3.bf16.msra.mxu0 %v1754_v1  ;;  %v334_v1 = vrot.slane %v332_v57, 5 }
  0x40   : > { %1610 = vmatprep.subr.bf16.mxu0 %v1757_v8  ;;  %1193 = vmatprep.mubr.bf16.mxu0 %v1437_v32  ;;  %v373_v8 = vrot.slane %v371_v54, 4 }
  0x41   : > { %1637 = vmatpush3.bf16.msra.mxu1 %v1756_v6  ;;  %v335_v6 = vor.u32 %v334_v1, %v331_v61 }
  0x42   : > { %1638 = vmatprep.subr.bf16.mxu1 %v1759_v13  ;;  %v377_v19 = vor.u32 %v376_v9, %v373_v8 }
  0x43   : > { %1611 = vmatpush3.bf16.msra.mxu0 %v1758_v10  ;;  %v349_v10 = vor.u32 %v348_v3, %v345_v2  ;;  %v336_v13 = vrot.slane %v335_v6, 4 }
  0x44   : > { %1662 = vmatprep.subr.bf16.mxu0 %v1762_v20  ;;  %v378_v26 = vrot.slane %v377_v19, 4 }
  0x45   : > { %1639 = vmatpush3.bf16.msra.mxu1 %v1760_v18  ;;  %v350_v16 = vrot.slane %v349_v10, 4  ;;  %v341_v18 = vsel %vm1938_vm2, %v336_v13, %v340_v7 }
  0x46   : > { %1194 = vmatmul.mubr.bf16.vlgmr.msra.gmra.mrb[8].mxu0 %v1761_v24 }
  0x47   : > { %1663 = vmatpush3.bf16.msra.mxu0 %v1762_v20  ;;  %1201 = vmatprep.mubr.bf16.mxu0 %v1438_v46  ;;  %v355_v20 = vsel %vm1938_vm2, %v350_v16, %v354_v11 }
  0x48   : > { %1243 = vmatmul.mubr.bf16.vlgmr.msra.gmra.mrb[8].mxu1 %v1439_v33  ;;  %1664 = vmatprep.subr.bf16.mxu0 %v1765_v31  ;;  %v1443_v24 = vcombine.low %v341_v18, %v355_v20 }
  0x49   : > { %1250 = vmatprep.mubr.bf16.mxu1 %v1768_v40 }
  0x4b   : > { %1665 = vmatpush3.bf16.msra.mxu0 %v1765_v31  ;;  %v383_v31 = vsel %vm1938_vm2, %v378_v26, %v382_v28 }
  0x4c   : > { %1666 = vmatprep.subr.bf16.mxu0 %v1767_v45  ;;  %v1444_v32 = vcombine.low %v369_v30, %v383_v31 }
  0x4e   : > { %1202 = vmatmul.mubr.bf16.gmra.mrb[12].mxu0 %v1766_v48 }
  0x4f   : > { %1667 = vmatpush3.bf16.msra.mxu0 %v1767_v45  ;;  %1678 = vmatprep.mubr.bf16.mxu0 %v1443_v24 }
  0x50   : > { %1251 = vmatmul.mubr.bf16.gmra.mrb[12].mxu1 %v1440_v47  ;;  %1668 = vmatprep.subr.bf16.mxu0 %v1770_v50 }
  0x53   : > { %1669 = vmatpush3.bf16.msra.mxu0 %v1770_v50 }
  0x54   : > { %1670 = vmatprep.subr.bf16.mxu0 %v1771_v0 }
  0x57   : > { %1671 = vmatpush3.bf16.msra.mxu0 %v1771_v0 }
  0x58   : > { %1672 = vmatprep.subr.bf16.mxu0 %v1772_v12 }
  0x5b   : > { %1673 = vmatpush3.bf16.msra.mxu0 %v1772_v12 }
  0x5c   : > { %1674 = vmatprep.subr.bf16.mxu0 %v1773_v23 }
  0x5f   : > { %1675 = vmatpush3.bf16.msra.mxu0 %v1773_v23 }
  0x60   : > { %1676 = vmatprep.subr.bf16.mxu0 %v1774_v29 }
  0x63   : > { %1677 = vmatpush3.bf16.msra.mxu0 %v1774_v29 }
  0x66   : > { %1679 = vmatmul.mubr.bf16.vlgmr.msra.gmra.mrb[16].mxu0 %v1444_v32 }
  0xf9   : > { %v1556_v33 = vpop.f32.mrb[0].mxu0 }
  0xfa   : > { %v1557_v34 = vpop.f32.mrb[1].mxu0 }
  0xfb   : > { %v1558_v35 = vadd.f32 %v1557_v34, %v1556_v33  ;;  %v1559_v36 = vpop.f32.mrb[2].mxu0  ;;  %v1584_v41 = vpop.f32.mrb[0].mxu1 }
  0xfc   : > { %v1560_v37 = vpop.f32.mrb[3].mxu0  ;;  %v1585_v42 = vpop.f32.mrb[1].mxu1 }
  0xfd   : > { %v1561_v38 = vadd.f32 %v1560_v37, %v1559_v36  ;;  %v1098_v40 = vadd.f32 %v1558_v35, %v1445_v39  ;;  %v1586_v55 = vadd.f32 %v1585_v42, %v1584_v41  ;;  %v1587_v44 = vpop.f32.mrb[2].mxu1 }
  0xfe   : > { %v1588_v45 = vpop.f32.mrb[3].mxu1 }
  0xff   : > { %v1101_v43 = vadd.f32 %v1561_v38, %v1445_v39  ;;  %v1147_v46 = vadd.f32 %v1586_v55, %v1098_v40  ;;  %v1589_v47 = vadd.f32 %v1588_v45, %v1587_v44 }
 0x101   : > { %v1150_v48 = vadd.f32 %v1589_v47, %v1101_v43  ;;  %v1562_v49 = vpop.f32.mrb[4].mxu0 }
 0x102   : > { %v1563_v50 = vpop.f32.mrb[5].mxu0 }
 0x103   : > { %v1564_v51 = vadd.f32 %v1563_v50, %v1562_v49  ;;  %v1565_v52 = vpop.f32.mrb[6].mxu0  ;;  %v1590_v57 = vpop.f32.mrb[4].mxu1 }
 0x104   : > { %v1566_v53 = vpop.f32.mrb[7].mxu0  ;;  %v1591_v58 = vpop.f32.mrb[5].mxu1 }
 0x105   : > { %v1567_v54 = vadd.f32 %v1566_v53, %v1565_v52  ;;  %v1106_v56 = vadd.f32 %v1564_v51, %v1445_v39  ;;  %v1592_v60 = vadd.f32 %v1591_v58, %v1590_v57  ;;  %v1593_v61 = vpop.f32.mrb[6].mxu1 }
 0x106   : > { %v1594_v62 = vpop.f32.mrb[7].mxu1 }
 0x107   : > { %v1109_v59 = vadd.f32 %v1567_v54, %v1445_v39  ;;  %v1155_v63 = vadd.f32 %v1592_v60, %v1106_v56  ;;  %v1595_v0 = vadd.f32 %v1594_v62, %v1593_v61 }
 0x109   : > { %v1158_v1 = vadd.f32 %v1595_v0, %v1109_v59 }
 0x119   : > { %v1612_v3 = vpop.f32.mrb[8].mxu0 }
 0x11a   : > { %v1613_v5 = vpop.f32.mrb[9].mxu0 }
 0x11b   : > { %v1640_v2 = vpop.f32.mrb[8].mxu1  ;;  %v1614_v8 = vadd.f32 %v1613_v5, %v1612_v3  ;;  %v1615_v9 = vpop.f32.mrb[10].mxu0 }
 0x11c   : > { %v1641_v4 = vpop.f32.mrb[9].mxu1  ;;  %v1616_v11 = vpop.f32.mrb[11].mxu0 }
 0x11d   : > { %v1642_v6 = vadd.f32 %v1641_v4, %v1640_v2  ;;  %v1643_v7 = vpop.f32.mrb[10].mxu1  ;;  %v1196_v13 = vadd.f32 %v1614_v8, %v1147_v46  ;;  %v1617_v14 = vadd.f32 %v1616_v11, %v1615_v9 }
 0x11e   : > { %v1644_v10 = vpop.f32.mrb[11].mxu1 }
 0x11f   : > { %v1645_v12 = vadd.f32 %v1644_v10, %v1643_v7  ;;  %v1199_v15 = vadd.f32 %v1617_v14, %v1150_v48  ;;  %v1245_v16 = vadd.f32 %v1642_v6, %v1196_v13 }
 0x121   : > { %v1618_v18 = vpop.f32.mrb[12].mxu0  ;;  %v1248_v20 = vadd.f32 %v1645_v12, %v1199_v15 }
 0x122   : > { %v1619_v21 = vpop.f32.mrb[13].mxu0 }
 0x123   : > { %v1646_v17 = vpop.f32.mrb[12].mxu1  ;;  %v1620_v24 = vadd.f32 %v1619_v21, %v1618_v18  ;;  %v1621_v25 = vpop.f32.mrb[14].mxu0 }
 0x124   : > { %v1647_v19 = vpop.f32.mrb[13].mxu1  ;;  %v1622_v27 = vpop.f32.mrb[15].mxu0 }
 0x125   : > { %v1648_v22 = vadd.f32 %v1647_v19, %v1646_v17  ;;  %v1649_v23 = vpop.f32.mrb[14].mxu1  ;;  %v1204_v29 = vadd.f32 %v1620_v24, %v1155_v63  ;;  %v1623_v30 = vadd.f32 %v1622_v27, %v1621_v25 }
 0x126   : > { %v1650_v26 = vpop.f32.mrb[15].mxu1 }
 0x127   : > { %v1651_v28 = vadd.f32 %v1650_v26, %v1649_v23  ;;  %v1207_v31 = vadd.f32 %v1623_v30, %v1158_v1  ;;  %v1253_v32 = vadd.f32 %v1648_v22, %v1204_v29 }
 0x129   : > { %v1256_v33 = vadd.f32 %v1651_v28, %v1207_v31 }
 0x139   : > { %v1680_v34 = vpop.f32.mrb[16].mxu0 }
 0x13a   : > { %v1302_v35 = vadd.f32 %v1680_v34, %v1253_v32  ;;  %v1293_v36 = vpop.f32.mrb[17].mxu0 }
 0x13b   : > { %v1294_v37 = vadd.f32 %v1293_v36, %v1245_v16  ;;  %v1681_v38 = vpop.f32.mrb[18].mxu0 }
 0x13c   : > { %v1310_v39 = vmul.f32 0.1, %v1302_v35  ;;  %v1305_v40 = vadd.f32 %v1681_v38, %v1256_v33  ;;  %v1296_v41 = vpop.f32.mrb[19].mxu0 }
 0x13d   : > { %v1308_v42 = vmul.f32 0.1, %v1294_v37  ;;  %v1297_v43 = vadd.f32 %v1296_v41, %v1248_v20 }
 0x13e   : > { %v1311_v55 = vmul.f32 0.1, %v1305_v40  ;;  %v1314_v45 = vmax.f32 %v1302_v35, %v1310_v39 }
 0x13f   : > { %v1309_v44 = vmul.f32 0.1, %v1297_v43  ;;  %v1312_v47 = vmax.f32 %v1294_v37, %v1308_v42 }
 0x140   : > { %v1315_v46 = vmax.f32 %v1305_v40, %v1311_v55 }
 0x141   : > { %v1313_v48 = vmax.f32 %v1297_v43, %v1309_v44 }
 0x142   : > { %v1537_v49 = vpack.c.bf16 %v1315_v46, %v1314_v45 }
 0x143   : > { %v1532_v50 = vpack.c.bf16 %v1313_v48, %v1312_v47 }
 0x144   : > { %1539 = vst [vmem:[%s170_s19 + $0x8] sm:$0xff] %v1537_v49  }
 0x145   : > { %1533 = vst [vmem:[%s170_s19] sm:$0xff] %v1532_v50  }
 0x146 PF: > { %s13_s12 = sadd.s32 1, %s1781_s12  }
 0x147   : > { %p10_p4 = scmp.ge.s32.totalorder %s13_s12, 4  }
 0x149   :  { %12 = sbr.rel (!%p10_p4) target bundleno = 1 (0x1), region = 67 }

</bundles_post_ra>
